<compile_context>
chip_gen: v7x
topology: tpu7x:2x2x1
jax: 0.10.0
libtpu: 0.0.40
codegen_flags: <defaults>
</compile_context>

<pallas_src>
import functools
import math

import jax
import jax.numpy as jnp
import numpy as np
from jax.experimental import pallas as pl
from jax.experimental.pallas import tpu as pltpu


def _round_up(x, m):
    return ((x + m - 1) // m) * m


def _corr1d_kernel(x1_ref, x2_ref, o_ref, *, w_tile, pad_l, shifts, inv_sumelems,
                   scale_inputs):
    """One (image, H-tile) step of Corr1d_x.forward.

    x1_ref: (1, C, TH, W128)  img1 tile, lane-padded to a multiple of 128, VMEM
    x2_ref: (1, C, TH, Wp)    img2 tile, zero halo + lane padding, VMEM
    o_ref:  (1, D, TH, W128)  output tile (lane-dense stores), VMEM
    """
    C = x1_ref.shape[1]
    x1 = x1_ref[0].astype(jnp.float32)            # (C, TH, W128)
    if scale_inputs:
        x1 = x1 * inv_sumelems                    # hoisted: C planes cheaper than D
    for ch, s2o in enumerate(shifts):
        off = pad_l + s2o                         # static, >= 0
        # Per-pixel dot product over channels. img2 is sliced from VMEM at the
        # point of use (one (TH, W128) plane per (c, ch)), so temporaries stay
        # 2-D. Out-of-range columns (w + s2o outside [0, W)) come out as zero
        # for free thanks to the zero halo padding — no masks, no rolls.
        acc = x1[0] * x2_ref[0, 0, :, off:off + w_tile]
        for c in range(1, C):
            acc = acc + x1[c] * x2_ref[0, c, :, off:off + w_tile]
        if not scale_inputs:
            acc = acc * inv_sumelems
        o_ref[0, ch] = acc.astype(o_ref.dtype)


def _vmem_capacity_bytes():
    """Physical VMEM on the current chip (v5e/v6e 128 MiB, v7x 64 MiB)."""
    try:
        info = pltpu.get_tpu_info()
        cap = getattr(info, "vmem_capacity_bytes", None)
        if cap:
            return int(cap)
    except Exception:
        pass
    return 64 << 20   # conservative fallback (v7x-sized)


def _pick_h_tile(H, N, per_row_bytes, budget_bytes):
    """Largest multiple-of-8 divisor of H whose per-step footprint fits the
    budget, while keeping >= 2 total grid steps (megacore / pipeline depth)."""
    if H % 8 != 0:
        return H                      # block dim == full array dim is always legal
    cands = [t for t in range(8, H + 1, 8) if H % t == 0]
    fit = [t for t in cands if per_row_bytes * t <= budget_bytes] or [8]
    th = max(fit)
    if N * (H // th) < 2:             # don't collapse the grid to a single step
        smaller = [t for t in fit if N * (H // t) >= 2]
        if smaller:
            th = max(smaller)
    return th


def corr1d_x_forward(img1, img2, *, pad=13, kernel_size=1, max_displacement=13,
                     stride1=1, stride2=1, pad_shift=-10):
    """Corr1d_x.forward (fast prod-corr path), NCHW in / (N, D, H, W) out."""
    N, C, H, W = img1.shape
    assert img2.shape == img1.shape
    kernel_radius = (kernel_size - 1) // 2
    border_size = max_displacement + kernel_radius
    ngr = max_displacement // stride2
    D = 2 * ngr + 1                                     # top_channels
    # Mirror the PyTorch module's output-shape formulas exactly (the H formula
    # is a no-op by construction in the original code as well).
    top_h = int(math.ceil((H + 2 * kernel_radius - 2 * kernel_radius) / stride1))
    top_w = int(math.ceil((W + 2 * pad - 2 * border_size) / stride1))
    # The fast forward writes full-H/W channel slabs of `top`; it is only
    # self-consistent when the output spatial dims equal the input spatial dims.
    assert (top_h, top_w) == (H, W), "unsupported Corr1d_x configuration"
    # TODO(synk): stride1 != 1 has no consistent fast-forward semantics; not implemented.
    assert stride1 == 1

    sumelems = kernel_size * kernel_size * C
    shifts = tuple(int((ch % D - ngr) * stride2) + pad_shift for ch in range(D))
    pad_l = max(0, -min(shifts))

    # Lane-dense layout: last dim padded to a multiple of 128.
    W128 = _round_up(W, 128)
    # img2 additionally carries the displacement halo so every displacement is a
    # static in-kernel lane slice and the boundary zeros come from the padding.
    Wp = pad_l + max(0, max(shifts)) + W128
    img1_p = img1 if W128 == W else jnp.pad(img1, ((0, 0),) * 3 + ((0, W128 - W),))
    img2_p = jnp.pad(img2, ((0, 0),) * 3 + ((pad_l, Wp - pad_l - W),))

    in_bytes = np.dtype(img1.dtype).itemsize
    out_dtype = img1.dtype
    out_bytes = np.dtype(out_dtype).itemsize
    per_row_bytes = in_bytes * C * (W128 + Wp) + out_bytes * D * W128

    vmem_cap = _vmem_capacity_bytes()
    budget = vmem_cap // 5            # per buffer set; Pallas double-buffers + headroom
    TH = _pick_h_tile(H, N, per_row_bytes, budget)
    vmem_limit = min(int(vmem_cap * 3 // 4), 100 << 20)

    kernel = functools.partial(
        _corr1d_kernel, w_tile=W128, pad_l=pad_l, shifts=shifts,
        inv_sumelems=1.0 / float(sumelems), scale_inputs=C <= D)

    # TODO(synk): for very large C*W, tile W with an Element-indexed halo block
    # instead of full-W blocks; full-W blocks are fine for typical flow/stereo shapes.
    out = pl.pallas_call(
        kernel,
        out_shape=jax.ShapeDtypeStruct((N, D, H, W128), out_dtype),
        grid=(N, H // TH),
        in_specs=[
            pl.BlockSpec((1, C, TH, W128), lambda n, h: (n, 0, h, 0)),
            pl.BlockSpec((1, C, TH, Wp), lambda n, h: (n, 0, h, 0)),
        ],
        out_specs=pl.BlockSpec((1, D, TH, W128), lambda n, h: (n, 0, h, 0)),
        compiler_params=pltpu.CompilerParams(
            dimension_semantics=("parallel", "parallel"),
            vmem_limit_bytes=vmem_limit,
            # Let XLA fuse the zero-pads above into the Pallas input DMAs so the
            # padding does not cost a separate HBM round trip.
            allow_input_fusion=[True, True],
        ),
    )(img1_p, img2_p)
    if W128 != W:
        out = out[..., :W]
    return out


def _reference_corr1d(img1, img2, *, kernel_size=1, max_displacement=13,
                      stride2=1, pad_shift=-10):
    """Pure-numpy replica of the PyTorch fast forward (for self-check)."""
    N, C, H, W = img1.shape
    ngr = max_displacement // stride2
    D = 2 * ngr + 1
    sumelems = kernel_size * kernel_size * C
    top = np.zeros((N, D, H, W), np.float32)
    for ch in range(D):
        s2o = int((ch % D - ngr) * stride2) + pad_shift
        if s2o > 0:
            top[:, ch, :, :-s2o] = (img1[:, :, :, :-s2o] * img2[:, :, :, s2o:]).sum(1)
        elif s2o < 0:
            top[:, ch, :, -s2o:] = (img1[:, :, :, -s2o:] * img2[:, :, :, :s2o]).sum(1)
        else:
            top[:, ch] = (img1 * img2).sum(1)
    return top / sumelems


if __name__ == "__main__":
    key = jax.random.PRNGKey(0)
    k1, k2 = jax.random.split(key)

    N, C, H, W = 2, 4, 16, 32
    img1 = jax.random.normal(k1, (N, C, H, W), jnp.float32)
    img2 = jax.random.normal(k2, (N, C, H, W), jnp.float32)

    fwd = jax.jit(corr1d_x_forward)
    out = fwd(img1, img2)
    out = jax.block_until_ready(out)

    assert out.shape == (N, 27, H, W)
    ref = _reference_corr1d(np.asarray(img1), np.asarray(img2))
    np.testing.assert_allclose(np.asarray(out), ref, rtol=1e-5, atol=1e-5)
    print("KERNEL_OK")
</pallas_src>

<mosaic_0001>
module attributes {stable_mosaic.version = 11 : i64} {
  func.func @_corr1d_kernel(%arg0: i32, %arg1: i32, %arg2: memref<1x4x16x128xf32, #tpu.memory_space<vmem>>, %arg3: memref<1x4x16x154xf32, #tpu.memory_space<vmem>>, %arg4: memref<1x27x16x128xf32, #tpu.memory_space<vmem>>) attributes {dimension_semantics = [#tpu.dimension_semantics<parallel>, #tpu.dimension_semantics<parallel>], iteration_bounds = array<i64: 2, 1>, scalar_prefetch = 0 : i64, scratch_operands = 0 : i64, tpu.core_type = #tpu.core_type<tc>, window_params = [{transform_indices = @transform_0, window_bounds = array<i64: 1, 4, 16, 128>}, {transform_indices = @transform_1, window_bounds = array<i64: 1, 4, 16, 154>}, {transform_indices = @transform_2, window_bounds = array<i64: 1, 27, 16, 128>}]} {
    %c0 = arith.constant 0 : index
    %c0_0 = arith.constant 0 : index
    %c0_1 = arith.constant 0 : index
    %c0_2 = arith.constant 0 : index
    %0 = vector.load %arg2[%c0, %c0_0, %c0_1, %c0_2] : memref<1x4x16x128xf32, #tpu.memory_space<vmem>>, vector<1x4x16x128xf32>
    %1 = vector.shape_cast %0 : vector<1x4x16x128xf32> to vector<4x16x128xf32>
    %cst = arith.constant 2.500000e-01 : f32
    %2 = vector.broadcast %cst : f32 to vector<4x16x128xf32>
    %3 = arith.mulf %1, %2 : vector<4x16x128xf32>
    %4 = vector.extract_strided_slice %3 {offsets = [0, 0, 0], sizes = [1, 16, 128], strides = [1, 1, 1]} : vector<4x16x128xf32> to vector<1x16x128xf32>
    %5 = vector.shape_cast %4 : vector<1x16x128xf32> to vector<16x128xf32>
    %c0_3 = arith.constant 0 : index
    %c0_4 = arith.constant 0 : index
    %c0_5 = arith.constant 0 : index
    %c0_6 = arith.constant 0 : index
    %6 = vector.load %arg3[%c0_3, %c0_4, %c0_5, %c0_6] : memref<1x4x16x154xf32, #tpu.memory_space<vmem>>, vector<1x1x16x128xf32>
    %7 = vector.shape_cast %6 : vector<1x1x16x128xf32> to vector<16x128xf32>
    %8 = arith.mulf %5, %7 : vector<16x128xf32>
    %9 = vector.extract_strided_slice %3 {offsets = [1, 0, 0], sizes = [1, 16, 128], strides = [1, 1, 1]} : vector<4x16x128xf32> to vector<1x16x128xf32>
    %10 = vector.shape_cast %9 : vector<1x16x128xf32> to vector<16x128xf32>
    %c0_7 = arith.constant 0 : index
    %c1 = arith.constant 1 : index
    %c0_8 = arith.constant 0 : index
    %c0_9 = arith.constant 0 : index
    %11 = vector.load %arg3[%c0_7, %c1, %c0_8, %c0_9] : memref<1x4x16x154xf32, #tpu.memory_space<vmem>>, vector<1x1x16x128xf32>
    %12 = vector.shape_cast %11 : vector<1x1x16x128xf32> to vector<16x128xf32>
    %13 = arith.mulf %10, %12 : vector<16x128xf32>
    %14 = arith.addf %8, %13 : vector<16x128xf32>
    %15 = vector.extract_strided_slice %3 {offsets = [2, 0, 0], sizes = [1, 16, 128], strides = [1, 1, 1]} : vector<4x16x128xf32> to vector<1x16x128xf32>
    %16 = vector.shape_cast %15 : vector<1x16x128xf32> to vector<16x128xf32>
    %c0_10 = arith.constant 0 : index
    %c2 = arith.constant 2 : index
    %c0_11 = arith.constant 0 : index
    %c0_12 = arith.constant 0 : index
    %17 = vector.load %arg3[%c0_10, %c2, %c0_11, %c0_12] : memref<1x4x16x154xf32, #tpu.memory_space<vmem>>, vector<1x1x16x128xf32>
    %18 = vector.shape_cast %17 : vector<1x1x16x128xf32> to vector<16x128xf32>
    %19 = arith.mulf %16, %18 : vector<16x128xf32>
    %20 = arith.addf %14, %19 : vector<16x128xf32>
    %21 = vector.extract_strided_slice %3 {offsets = [3, 0, 0], sizes = [1, 16, 128], strides = [1, 1, 1]} : vector<4x16x128xf32> to vector<1x16x128xf32>
    %22 = vector.shape_cast %21 : vector<1x16x128xf32> to vector<16x128xf32>
    %c0_13 = arith.constant 0 : index
    %c3 = arith.constant 3 : index
    %c0_14 = arith.constant 0 : index
    %c0_15 = arith.constant 0 : index
    %23 = vector.load %arg3[%c0_13, %c3, %c0_14, %c0_15] : memref<1x4x16x154xf32, #tpu.memory_space<vmem>>, vector<1x1x16x128xf32>
    %24 = vector.shape_cast %23 : vector<1x1x16x128xf32> to vector<16x128xf32>
    %25 = arith.mulf %22, %24 : vector<16x128xf32>
    %26 = arith.addf %20, %25 : vector<16x128xf32>
    %c0_16 = arith.constant 0 : index
    %c0_17 = arith.constant 0 : index
    %c0_18 = arith.constant 0 : index
    %c0_19 = arith.constant 0 : index
    %27 = vector.load %arg4[%c0_16, %c0_17, %c0_18, %c0_19] : memref<1x27x16x128xf32, #tpu.memory_space<vmem>>, vector<1x1x16x128xf32>
    %28 = vector.shape_cast %27 : vector<1x1x16x128xf32> to vector<16x128xf32>
    %29 = vector.shape_cast %26 : vector<16x128xf32> to vector<1x1x16x128xf32>
    tpu.vector_store %arg4[%c0_16, %c0_17, %c0_18, %c0_19], %29 {strides = array<i32>} : memref<1x27x16x128xf32, #tpu.memory_space<vmem>>, vector<1x1x16x128xf32>,
    %30 = vector.extract_strided_slice %3 {offsets = [0, 0, 0], sizes = [1, 16, 128], strides = [1, 1, 1]} : vector<4x16x128xf32> to vector<1x16x128xf32>
    %31 = vector.shape_cast %30 : vector<1x16x128xf32> to vector<16x128xf32>
    %c0_20 = arith.constant 0 : index
    %c0_21 = arith.constant 0 : index
    %c0_22 = arith.constant 0 : index
    %c1_23 = arith.constant 1 : index
    %32 = vector.load %arg3[%c0_20, %c0_21, %c0_22, %c1_23] : memref<1x4x16x154xf32, #tpu.memory_space<vmem>>, vector<1x1x16x128xf32>
    %33 = vector.shape_cast %32 : vector<1x1x16x128xf32> to vector<16x128xf32>
    %34 = arith.mulf %31, %33 : vector<16x128xf32>
    %35 = vector.extract_strided_slice %3 {offsets = [1, 0, 0], sizes = [1, 16, 128], strides = [1, 1, 1]} : vector<4x16x128xf32> to vector<1x16x128xf32>
    %36 = vector.shape_cast %35 : vector<1x16x128xf32> to vector<16x128xf32>
    %c0_24 = arith.constant 0 : index
    %c1_25 = arith.constant 1 : index
    %c0_26 = arith.constant 0 : index
    %c1_27 = arith.constant 1 : index
    %37 = vector.load %arg3[%c0_24, %c1_25, %c0_26, %c1_27] : memref<1x4x16x154xf32, #tpu.memory_space<vmem>>, vector<1x1x16x128xf32>
    %38 = vector.shape_cast %37 : vector<1x1x16x128xf32> to vector<16x128xf32>
    %39 = arith.mulf %36, %38 : vector<16x128xf32>
    %40 = arith.addf %34, %39 : vector<16x128xf32>
    %41 = vector.extract_strided_slice %3 {offsets = [2, 0, 0], sizes = [1, 16, 128], strides = [1, 1, 1]} : vector<4x16x128xf32> to vector<1x16x128xf32>
    %42 = vector.shape_cast %41 : vector<1x16x128xf32> to vector<16x128xf32>
    %c0_28 = arith.constant 0 : index
    %c2_29 = arith.constant 2 : index
    %c0_30 = arith.constant 0 : index
    %c1_31 = arith.constant 1 : index
    %43 = vector.load %arg3[%c0_28, %c2_29, %c0_30, %c1_31] : memref<1x4x16x154xf32, #tpu.memory_space<vmem>>, vector<1x1x16x128xf32>
    %44 = vector.shape_cast %43 : vector<1x1x16x128xf32> to vector<16x128xf32>
    %45 = arith.mulf %42, %44 : vector<16x128xf32>
    %46 = arith.addf %40, %45 : vector<16x128xf32>
    %47 = vector.extract_strided_slice %3 {offsets = [3, 0, 0], sizes = [1, 16, 128], strides = [1, 1, 1]} : vector<4x16x128xf32> to vector<1x16x128xf32>
    %48 = vector.shape_cast %47 : vector<1x16x128xf32> to vector<16x128xf32>
    %c0_32 = arith.constant 0 : index
    %c3_33 = arith.constant 3 : index
    %c0_34 = arith.constant 0 : index
    %c1_35 = arith.constant 1 : index
    %49 = vector.load %arg3[%c0_32, %c3_33, %c0_34, %c1_35] : memref<1x4x16x154xf32, #tpu.memory_space<vmem>>, vector<1x1x16x128xf32>
    %50 = vector.shape_cast %49 : vector<1x1x16x128xf32> to vector<16x128xf32>
    %51 = arith.mulf %48, %50 : vector<16x128xf32>
    %52 = arith.addf %46, %51 : vector<16x128xf32>
    %c0_36 = arith.constant 0 : index
    %c1_37 = arith.constant 1 : index
    %c0_38 = arith.constant 0 : index
    %c0_39 = arith.constant 0 : index
    %53 = vector.load %arg4[%c0_36, %c1_37, %c0_38, %c0_39] : memref<1x27x16x128xf32, #tpu.memory_space<vmem>>, vector<1x1x16x128xf32>
    %54 = vector.shape_cast %53 : vector<1x1x16x128xf32> to vector<16x128xf32>
    %55 = vector.shape_cast %52 : vector<16x128xf32> to vector<1x1x16x128xf32>
    tpu.vector_store %arg4[%c0_36, %c1_37, %c0_38, %c0_39], %55 {strides = array<i32>} : memref<1x27x16x128xf32, #tpu.memory_space<vmem>>, vector<1x1x16x128xf32>,
    %56 = vector.extract_strided_slice %3 {offsets = [0, 0, 0], sizes = [1, 16, 128], strides = [1, 1, 1]} : vector<4x16x128xf32> to vector<1x16x128xf32>
    %57 = vector.shape_cast %56 : vector<1x16x128xf32> to vector<16x128xf32>
    %c0_40 = arith.constant 0 : index
    %c0_41 = arith.constant 0 : index
    %c0_42 = arith.constant 0 : index
    %c2_43 = arith.constant 2 : index
    %58 = vector.load %arg3[%c0_40, %c0_41, %c0_42, %c2_43] : memref<1x4x16x154xf32, #tpu.memory_space<vmem>>, vector<1x1x16x128xf32>
    %59 = vector.shape_cast %58 : vector<1x1x16x128xf32> to vector<16x128xf32>
    %60 = arith.mulf %57, %59 : vector<16x128xf32>
    %61 = vector.extract_strided_slice %3 {offsets = [1, 0, 0], sizes = [1, 16, 128], strides = [1, 1, 1]} : vector<4x16x128xf32> to vector<1x16x128xf32>
    %62 = vector.shape_cast %61 : vector<1x16x128xf32> to vector<16x128xf32>
    %c0_44 = arith.constant 0 : index
    %c1_45 = arith.constant 1 : index
    %c0_46 = arith.constant 0 : index
    %c2_47 = arith.constant 2 : index
    %63 = vector.load %arg3[%c0_44, %c1_45, %c0_46, %c2_47] : memref<1x4x16x154xf32, #tpu.memory_space<vmem>>, vector<1x1x16x128xf32>
    %64 = vector.shape_cast %63 : vector<1x1x16x128xf32> to vector<16x128xf32>
    %65 = arith.mulf %62, %64 : vector<16x128xf32>
    %66 = arith.addf %60, %65 : vector<16x128xf32>
    %67 = vector.extract_strided_slice %3 {offsets = [2, 0, 0], sizes = [1, 16, 128], strides = [1, 1, 1]} : vector<4x16x128xf32> to vector<1x16x128xf32>
    %68 = vector.shape_cast %67 : vector<1x16x128xf32> to vector<16x128xf32>
    %c0_48 = arith.constant 0 : index
    %c2_49 = arith.constant 2 : index
    %c0_50 = arith.constant 0 : index
    %c2_51 = arith.constant 2 : index
    %69 = vector.load %arg3[%c0_48, %c2_49, %c0_50, %c2_51] : memref<1x4x16x154xf32, #tpu.memory_space<vmem>>, vector<1x1x16x128xf32>
    %70 = vector.shape_cast %69 : vector<1x1x16x128xf32> to vector<16x128xf32>
    %71 = arith.mulf %68, %70 : vector<16x128xf32>
    %72 = arith.addf %66, %71 : vector<16x128xf32>
    %73 = vector.extract_strided_slice %3 {offsets = [3, 0, 0], sizes = [1, 16, 128], strides = [1, 1, 1]} : vector<4x16x128xf32> to vector<1x16x128xf32>
    %74 = vector.shape_cast %73 : vector<1x16x128xf32> to vector<16x128xf32>
    %c0_52 = arith.constant 0 : index
    %c3_53 = arith.constant 3 : index
    %c0_54 = arith.constant 0 : index
    %c2_55 = arith.constant 2 : index
    %75 = vector.load %arg3[%c0_52, %c3_53, %c0_54, %c2_55] : memref<1x4x16x154xf32, #tpu.memory_space<vmem>>, vector<1x1x16x128xf32>
    %76 = vector.shape_cast %75 : vector<1x1x16x128xf32> to vector<16x128xf32>
    %77 = arith.mulf %74, %76 : vector<16x128xf32>
    %78 = arith.addf %72, %77 : vector<16x128xf32>
    %c0_56 = arith.constant 0 : index
    %c2_57 = arith.constant 2 : index
    %c0_58 = arith.constant 0 : index
    %c0_59 = arith.constant 0 : index
    %79 = vector.load %arg4[%c0_56, %c2_57, %c0_58, %c0_59] : memref<1x27x16x128xf32, #tpu.memory_space<vmem>>, vector<1x1x16x128xf32>
    %80 = vector.shape_cast %79 : vector<1x1x16x128xf32> to vector<16x128xf32>
    %81 = vector.shape_cast %78 : vector<16x128xf32> to vector<1x1x16x128xf32>
    tpu.vector_store %arg4[%c0_56, %c2_57, %c0_58, %c0_59], %81 {strides = array<i32>} : memref<1x27x16x128xf32, #tpu.memory_space<vmem>>, vector<1x1x16x128xf32>,
    %82 = vector.extract_strided_slice %3 {offsets = [0, 0, 0], sizes = [1, 16, 128], strides = [1, 1, 1]} : vector<4x16x128xf32> to vector<1x16x128xf32>
    %83 = vector.shape_cast %82 : vector<1x16x128xf32> to vector<16x128xf32>
    %c0_60 = arith.constant 0 : index
    %c0_61 = arith.constant 0 : index
    %c0_62 = arith.constant 0 : index
    %c3_63 = arith.constant 3 : index
    %84 = vector.load %arg3[%c0_60, %c0_61, %c0_62, %c3_63] : memref<1x4x16x154xf32, #tpu.memory_space<vmem>>, vector<1x1x16x128xf32>
    %85 = vector.shape_cast %84 : vector<1x1x16x128xf32> to vector<16x128xf32>
    %86 = arith.mulf %83, %85 : vector<16x128xf32>
    %87 = vector.extract_strided_slice %3 {offsets = [1, 0, 0], sizes = [1, 16, 128], strides = [1, 1, 1]} : vector<4x16x128xf32> to vector<1x16x128xf32>
    %88 = vector.shape_cast %87 : vector<1x16x128xf32> to vector<16x128xf32>
    %c0_64 = arith.constant 0 : index
    %c1_65 = arith.constant 1 : index
    %c0_66 = arith.constant 0 : index
    %c3_67 = arith.constant 3 : index
    %89 = vector.load %arg3[%c0_64, %c1_65, %c0_66, %c3_67] : memref<1x4x16x154xf32, #tpu.memory_space<vmem>>, vector<1x1x16x128xf32>
    %90 = vector.shape_cast %89 : vector<1x1x16x128xf32> to vector<16x128xf32>
    %91 = arith.mulf %88, %90 : vector<16x128xf32>
    %92 = arith.addf %86, %91 : vector<16x128xf32>
    %93 = vector.extract_strided_slice %3 {offsets = [2, 0, 0], sizes = [1, 16, 128], strides = [1, 1, 1]} : vector<4x16x128xf32> to vector<1x16x128xf32>
    %94 = vector.shape_cast %93 : vector<1x16x128xf32> to vector<16x128xf32>
    %c0_68 = arith.constant 0 : index
    %c2_69 = arith.constant 2 : index
    %c0_70 = arith.constant 0 : index
    %c3_71 = arith.constant 3 : index
    %95 = vector.load %arg3[%c0_68, %c2_69, %c0_70, %c3_71] : memref<1x4x16x154xf32, #tpu.memory_space<vmem>>, vector<1x1x16x128xf32>
    %96 = vector.shape_cast %95 : vector<1x1x16x128xf32> to vector<16x128xf32>
    %97 = arith.mulf %94, %96 : vector<16x128xf32>
    %98 = arith.addf %92, %97 : vector<16x128xf32>
    %99 = vector.extract_strided_slice %3 {offsets = [3, 0, 0], sizes = [1, 16, 128], strides = [1, 1, 1]} : vector<4x16x128xf32> to vector<1x16x128xf32>
    %100 = vector.shape_cast %99 : vector<1x16x128xf32> to vector<16x128xf32>
    %c0_72 = arith.constant 0 : index
    %c3_73 = arith.constant 3 : index
    %c0_74 = arith.constant 0 : index
    %c3_75 = arith.constant 3 : index
    %101 = vector.load %arg3[%c0_72, %c3_73, %c0_74, %c3_75] : memref<1x4x16x154xf32, #tpu.memory_space<vmem>>, vector<1x1x16x128xf32>
    %102 = vector.shape_cast %101 : vector<1x1x16x128xf32> to vector<16x128xf32>
    %103 = arith.mulf %100, %102 : vector<16x128xf32>
    %104 = arith.addf %98, %103 : vector<16x128xf32>
    %c0_76 = arith.constant 0 : index
    %c3_77 = arith.constant 3 : index
    %c0_78 = arith.constant 0 : index
    %c0_79 = arith.constant 0 : index
    %105 = vector.load %arg4[%c0_76, %c3_77, %c0_78, %c0_79] : memref<1x27x16x128xf32, #tpu.memory_space<vmem>>, vector<1x1x16x128xf32>
    %106 = vector.shape_cast %105 : vector<1x1x16x128xf32> to vector<16x128xf32>
    %107 = vector.shape_cast %104 : vector<16x128xf32> to vector<1x1x16x128xf32>
    tpu.vector_store %arg4[%c0_76, %c3_77, %c0_78, %c0_79], %107 {strides = array<i32>} : memref<1x27x16x128xf32, #tpu.memory_space<vmem>>, vector<1x1x16x128xf32>,
    %108 = vector.extract_strided_slice %3 {offsets = [0, 0, 0], sizes = [1, 16, 128], strides = [1, 1, 1]} : vector<4x16x128xf32> to vector<1x16x128xf32>
    %109 = vector.shape_cast %108 : vector<1x16x128xf32> to vector<16x128xf32>
    %c0_80 = arith.constant 0 : index
    %c0_81 = arith.constant 0 : index
    %c0_82 = arith.constant 0 : index
    %c4 = arith.constant 4 : index
    %110 = vector.load %arg3[%c0_80, %c0_81, %c0_82, %c4] : memref<1x4x16x154xf32, #tpu.memory_space<vmem>>, vector<1x1x16x128xf32>
    %111 = vector.shape_cast %110 : vector<1x1x16x128xf32> to vector<16x128xf32>
    %112 = arith.mulf %109, %111 : vector<16x128xf32>
    %113 = vector.extract_strided_slice %3 {offsets = [1, 0, 0], sizes = [1, 16, 128], strides = [1, 1, 1]} : vector<4x16x128xf32> to vector<1x16x128xf32>
    %114 = vector.shape_cast %113 : vector<1x16x128xf32> to vector<16x128xf32>
    %c0_83 = arith.constant 0 : index
    %c1_84 = arith.constant 1 : index
    %c0_85 = arith.constant 0 : index
    %c4_86 = arith.constant 4 : index
    %115 = vector.load %arg3[%c0_83, %c1_84, %c0_85, %c4_86] : memref<1x4x16x154xf32, #tpu.memory_space<vmem>>, vector<1x1x16x128xf32>
    %116 = vector.shape_cast %115 : vector<1x1x16x128xf32> to vector<16x128xf32>
    %117 = arith.mulf %114, %116 : vector<16x128xf32>
    %118 = arith.addf %112, %117 : vector<16x128xf32>
    %119 = vector.extract_strided_slice %3 {offsets = [2, 0, 0], sizes = [1, 16, 128], strides = [1, 1, 1]} : vector<4x16x128xf32> to vector<1x16x128xf32>
    %120 = vector.shape_cast %119 : vector<1x16x128xf32> to vector<16x128xf32>
    %c0_87 = arith.constant 0 : index
    %c2_88 = arith.constant 2 : index
    %c0_89 = arith.constant 0 : index
    %c4_90 = arith.constant 4 : index
    %121 = vector.load %arg3[%c0_87, %c2_88, %c0_89, %c4_90] : memref<1x4x16x154xf32, #tpu.memory_space<vmem>>, vector<1x1x16x128xf32>
    %122 = vector.shape_cast %121 : vector<1x1x16x128xf32> to vector<16x128xf32>
    %123 = arith.mulf %120, %122 : vector<16x128xf32>
    %124 = arith.addf %118, %123 : vector<16x128xf32>
    %125 = vector.extract_strided_slice %3 {offsets = [3, 0, 0], sizes = [1, 16, 128], strides = [1, 1, 1]} : vector<4x16x128xf32> to vector<1x16x128xf32>
    %126 = vector.shape_cast %125 : vector<1x16x128xf32> to vector<16x128xf32>
    %c0_91 = arith.constant 0 : index
    %c3_92 = arith.constant 3 : index
    %c0_93 = arith.constant 0 : index
    %c4_94 = arith.constant 4 : index
    %127 = vector.load %arg3[%c0_91, %c3_92, %c0_93, %c4_94] : memref<1x4x16x154xf32, #tpu.memory_space<vmem>>, vector<1x1x16x128xf32>
    %128 = vector.shape_cast %127 : vector<1x1x16x128xf32> to vector<16x128xf32>
    %129 = arith.mulf %126, %128 : vector<16x128xf32>
    %130 = arith.addf %124, %129 : vector<16x128xf32>
    %c0_95 = arith.constant 0 : index
    %c4_96 = arith.constant 4 : index
    %c0_97 = arith.constant 0 : index
    %c0_98 = arith.constant 0 : index
    %131 = vector.load %arg4[%c0_95, %c4_96, %c0_97, %c0_98] : memref<1x27x16x128xf32, #tpu.memory_space<vmem>>, vector<1x1x16x128xf32>
    %132 = vector.shape_cast %131 : vector<1x1x16x128xf32> to vector<16x128xf32>
    %133 = vector.shape_cast %130 : vector<16x128xf32> to vector<1x1x16x128xf32>
    tpu.vector_store %arg4[%c0_95, %c4_96, %c0_97, %c0_98], %133 {strides = array<i32>} : memref<1x27x16x128xf32, #tpu.memory_space<vmem>>, vector<1x1x16x128xf32>,
    %134 = vector.extract_strided_slice %3 {offsets = [0, 0, 0], sizes = [1, 16, 128], strides = [1, 1, 1]} : vector<4x16x128xf32> to vector<1x16x128xf32>
    %135 = vector.shape_cast %134 : vector<1x16x128xf32> to vector<16x128xf32>
    %c0_99 = arith.constant 0 : index
    %c0_100 = arith.constant 0 : index
    %c0_101 = arith.constant 0 : index
    %c5 = arith.constant 5 : index
    %136 = vector.load %arg3[%c0_99, %c0_100, %c0_101, %c5] : memref<1x4x16x154xf32, #tpu.memory_space<vmem>>, vector<1x1x16x128xf32>
    %137 = vector.shape_cast %136 : vector<1x1x16x128xf32> to vector<16x128xf32>
    %138 = arith.mulf %135, %137 : vector<16x128xf32>
    %139 = vector.extract_strided_slice %3 {offsets = [1, 0, 0], sizes = [1, 16, 128], strides = [1, 1, 1]} : vector<4x16x128xf32> to vector<1x16x128xf32>
    %140 = vector.shape_cast %139 : vector<1x16x128xf32> to vector<16x128xf32>
    %c0_102 = arith.constant 0 : index
    %c1_103 = arith.constant 1 : index
    %c0_104 = arith.constant 0 : index
    %c5_105 = arith.constant 5 : index
    %141 = vector.load %arg3[%c0_102, %c1_103, %c0_104, %c5_105] : memref<1x4x16x154xf32, #tpu.memory_space<vmem>>, vector<1x1x16x128xf32>
    %142 = vector.shape_cast %141 : vector<1x1x16x128xf32> to vector<16x128xf32>
    %143 = arith.mulf %140, %142 : vector<16x128xf32>
    %144 = arith.addf %138, %143 : vector<16x128xf32>
    %145 = vector.extract_strided_slice %3 {offsets = [2, 0, 0], sizes = [1, 16, 128], strides = [1, 1, 1]} : vector<4x16x128xf32> to vector<1x16x128xf32>
    %146 = vector.shape_cast %145 : vector<1x16x128xf32> to vector<16x128xf32>
    %c0_106 = arith.constant 0 : index
    %c2_107 = arith.constant 2 : index
    %c0_108 = arith.constant 0 : index
    %c5_109 = arith.constant 5 : index
    %147 = vector.load %arg3[%c0_106, %c2_107, %c0_108, %c5_109] : memref<1x4x16x154xf32, #tpu.memory_space<vmem>>, vector<1x1x16x128xf32>
    %148 = vector.shape_cast %147 : vector<1x1x16x128xf32> to vector<16x128xf32>
    %149 = arith.mulf %146, %148 : vector<16x128xf32>
    %150 = arith.addf %144, %149 : vector<16x128xf32>
    %151 = vector.extract_strided_slice %3 {offsets = [3, 0, 0], sizes = [1, 16, 128], strides = [1, 1, 1]} : vector<4x16x128xf32> to vector<1x16x128xf32>
    %152 = vector.shape_cast %151 : vector<1x16x128xf32> to vector<16x128xf32>
    %c0_110 = arith.constant 0 : index
    %c3_111 = arith.constant 3 : index
    %c0_112 = arith.constant 0 : index
    %c5_113 = arith.constant 5 : index
    %153 = vector.load %arg3[%c0_110, %c3_111, %c0_112, %c5_113] : memref<1x4x16x154xf32, #tpu.memory_space<vmem>>, vector<1x1x16x128xf32>
    %154 = vector.shape_cast %153 : vector<1x1x16x128xf32> to vector<16x128xf32>
    %155 = arith.mulf %152, %154 : vector<16x128xf32>
    %156 = arith.addf %150, %155 : vector<16x128xf32>
    %c0_114 = arith.constant 0 : index
    %c5_115 = arith.constant 5 : index
    %c0_116 = arith.constant 0 : index
    %c0_117 = arith.constant 0 : index
    %157 = vector.load %arg4[%c0_114, %c5_115, %c0_116, %c0_117] : memref<1x27x16x128xf32, #tpu.memory_space<vmem>>, vector<1x1x16x128xf32>
    %158 = vector.shape_cast %157 : vector<1x1x16x128xf32> to vector<16x128xf32>
    %159 = vector.shape_cast %156 : vector<16x128xf32> to vector<1x1x16x128xf32>
    tpu.vector_store %arg4[%c0_114, %c5_115, %c0_116, %c0_117], %159 {strides = array<i32>} : memref<1x27x16x128xf32, #tpu.memory_space<vmem>>, vector<1x1x16x128xf32>,
    %160 = vector.extract_strided_slice %3 {offsets = [0, 0, 0], sizes = [1, 16, 128], strides = [1, 1, 1]} : vector<4x16x128xf32> to vector<1x16x128xf32>
    %161 = vector.shape_cast %160 : vector<1x16x128xf32> to vector<16x128xf32>
    %c0_118 = arith.constant 0 : index
    %c0_119 = arith.constant 0 : index
    %c0_120 = arith.constant 0 : index
    %c6 = arith.constant 6 : index
    %162 = vector.load %arg3[%c0_118, %c0_119, %c0_120, %c6] : memref<1x4x16x154xf32, #tpu.memory_space<vmem>>, vector<1x1x16x128xf32>
    %163 = vector.shape_cast %162 : vector<1x1x16x128xf32> to vector<16x128xf32>
    %164 = arith.mulf %161, %163 : vector<16x128xf32>
    %165 = vector.extract_strided_slice %3 {offsets = [1, 0, 0], sizes = [1, 16, 128], strides = [1, 1, 1]} : vector<4x16x128xf32> to vector<1x16x128xf32>
    %166 = vector.shape_cast %165 : vector<1x16x128xf32> to vector<16x128xf32>
    %c0_121 = arith.constant 0 : index
    %c1_122 = arith.constant 1 : index
    %c0_123 = arith.constant 0 : index
    %c6_124 = arith.constant 6 : index
    %167 = vector.load %arg3[%c0_121, %c1_122, %c0_123, %c6_124] : memref<1x4x16x154xf32, #tpu.memory_space<vmem>>, vector<1x1x16x128xf32>
    %168 = vector.shape_cast %167 : vector<1x1x16x128xf32> to vector<16x128xf32>
    %169 = arith.mulf %166, %168 : vector<16x128xf32>
    %170 = arith.addf %164, %169 : vector<16x128xf32>
    %171 = vector.extract_strided_slice %3 {offsets = [2, 0, 0], sizes = [1, 16, 128], strides = [1, 1, 1]} : vector<4x16x128xf32> to vector<1x16x128xf32>
    %172 = vector.shape_cast %171 : vector<1x16x128xf32> to vector<16x128xf32>
    %c0_125 = arith.constant 0 : index
    %c2_126 = arith.constant 2 : index
    %c0_127 = arith.constant 0 : index
    %c6_128 = arith.constant 6 : index
    %173 = vector.load %arg3[%c0_125, %c2_126, %c0_127, %c6_128] : memref<1x4x16x154xf32, #tpu.memory_space<vmem>>, vector<1x1x16x128xf32>
    %174 = vector.shape_cast %173 : vector<1x1x16x128xf32> to vector<16x128xf32>
    %175 = arith.mulf %172, %174 : vector<16x128xf32>
    %176 = arith.addf %170, %175 : vector<16x128xf32>
    %177 = vector.extract_strided_slice %3 {offsets = [3, 0, 0], sizes = [1, 16, 128], strides = [1, 1, 1]} : vector<4x16x128xf32> to vector<1x16x128xf32>
    %178 = vector.shape_cast %177 : vector<1x16x128xf32> to vector<16x128xf32>
    %c0_129 = arith.constant 0 : index
    %c3_130 = arith.constant 3 : index
    %c0_131 = arith.constant 0 : index
    %c6_132 = arith.constant 6 : index
    %179 = vector.load %arg3[%c0_129, %c3_130, %c0_131, %c6_132] : memref<1x4x16x154xf32, #tpu.memory_space<vmem>>, vector<1x1x16x128xf32>
    %180 = vector.shape_cast %179 : vector<1x1x16x128xf32> to vector<16x128xf32>
    %181 = arith.mulf %178, %180 : vector<16x128xf32>
    %182 = arith.addf %176, %181 : vector<16x128xf32>
    %c0_133 = arith.constant 0 : index
    %c6_134 = arith.constant 6 : index
    %c0_135 = arith.constant 0 : index
    %c0_136 = arith.constant 0 : index
    %183 = vector.load %arg4[%c0_133, %c6_134, %c0_135, %c0_136] : memref<1x27x16x128xf32, #tpu.memory_space<vmem>>, vector<1x1x16x128xf32>
    %184 = vector.shape_cast %183 : vector<1x1x16x128xf32> to vector<16x128xf32>
    %185 = vector.shape_cast %182 : vector<16x128xf32> to vector<1x1x16x128xf32>
    tpu.vector_store %arg4[%c0_133, %c6_134, %c0_135, %c0_136], %185 {strides = array<i32>} : memref<1x27x16x128xf32, #tpu.memory_space<vmem>>, vector<1x1x16x128xf32>,
    %186 = vector.extract_strided_slice %3 {offsets = [0, 0, 0], sizes = [1, 16, 128], strides = [1, 1, 1]} : vector<4x16x128xf32> to vector<1x16x128xf32>
    %187 = vector.shape_cast %186 : vector<1x16x128xf32> to vector<16x128xf32>
    %c0_137 = arith.constant 0 : index
    %c0_138 = arith.constant 0 : index
    %c0_139 = arith.constant 0 : index
    %c7 = arith.constant 7 : index
    %188 = vector.load %arg3[%c0_137, %c0_138, %c0_139, %c7] : memref<1x4x16x154xf32, #tpu.memory_space<vmem>>, vector<1x1x16x128xf32>
    %189 = vector.shape_cast %188 : vector<1x1x16x128xf32> to vector<16x128xf32>
    %190 = arith.mulf %187, %189 : vector<16x128xf32>
    %191 = vector.extract_strided_slice %3 {offsets = [1, 0, 0], sizes = [1, 16, 128], strides = [1, 1, 1]} : vector<4x16x128xf32> to vector<1x16x128xf32>
    %192 = vector.shape_cast %191 : vector<1x16x128xf32> to vector<16x128xf32>
    %c0_140 = arith.constant 0 : index
    %c1_141 = arith.constant 1 : index
    %c0_142 = arith.constant 0 : index
    %c7_143 = arith.constant 7 : index
    %193 = vector.load %arg3[%c0_140, %c1_141, %c0_142, %c7_143] : memref<1x4x16x154xf32, #tpu.memory_space<vmem>>, vector<1x1x16x128xf32>
    %194 = vector.shape_cast %193 : vector<1x1x16x128xf32> to vector<16x128xf32>
    %195 = arith.mulf %192, %194 : vector<16x128xf32>
    %196 = arith.addf %190, %195 : vector<16x128xf32>
    %197 = vector.extract_strided_slice %3 {offsets = [2, 0, 0], sizes = [1, 16, 128], strides = [1, 1, 1]} : vector<4x16x128xf32> to vector<1x16x128xf32>
    %198 = vector.shape_cast %197 : vector<1x16x128xf32> to vector<16x128xf32>
    %c0_144 = arith.constant 0 : index
    %c2_145 = arith.constant 2 : index
    %c0_146 = arith.constant 0 : index
    %c7_147 = arith.constant 7 : index
    %199 = vector.load %arg3[%c0_144, %c2_145, %c0_146, %c7_147] : memref<1x4x16x154xf32, #tpu.memory_space<vmem>>, vector<1x1x16x128xf32>
    %200 = vector.shape_cast %199 : vector<1x1x16x128xf32> to vector<16x128xf32>
    %201 = arith.mulf %198, %200 : vector<16x128xf32>
    %202 = arith.addf %196, %201 : vector<16x128xf32>
    %203 = vector.extract_strided_slice %3 {offsets = [3, 0, 0], sizes = [1, 16, 128], strides = [1, 1, 1]} : vector<4x16x128xf32> to vector<1x16x128xf32>
    %204 = vector.shape_cast %203 : vector<1x16x128xf32> to vector<16x128xf32>
    %c0_148 = arith.constant 0 : index
    %c3_149 = arith.constant 3 : index
    %c0_150 = arith.constant 0 : index
    %c7_151 = arith.constant 7 : index
    %205 = vector.load %arg3[%c0_148, %c3_149, %c0_150, %c7_151] : memref<1x4x16x154xf32, #tpu.memory_space<vmem>>, vector<1x1x16x128xf32>
    %206 = vector.shape_cast %205 : vector<1x1x16x128xf32> to vector<16x128xf32>
    %207 = arith.mulf %204, %206 : vector<16x128xf32>
    %208 = arith.addf %202, %207 : vector<16x128xf32>
    %c0_152 = arith.constant 0 : index
    %c7_153 = arith.constant 7 : index
    %c0_154 = arith.constant 0 : index
    %c0_155 = arith.constant 0 : index
    %209 = vector.load %arg4[%c0_152, %c7_153, %c0_154, %c0_155] : memref<1x27x16x128xf32, #tpu.memory_space<vmem>>, vector<1x1x16x128xf32>
    %210 = vector.shape_cast %209 : vector<1x1x16x128xf32> to vector<16x128xf32>
    %211 = vector.shape_cast %208 : vector<16x128xf32> to vector<1x1x16x128xf32>
    tpu.vector_store %arg4[%c0_152, %c7_153, %c0_154, %c0_155], %211 {strides = array<i32>} : memref<1x27x16x128xf32, #tpu.memory_space<vmem>>, vector<1x1x16x128xf32>,
    %212 = vector.extract_strided_slice %3 {offsets = [0, 0, 0], sizes = [1, 16, 128], strides = [1, 1, 1]} : vector<4x16x128xf32> to vector<1x16x128xf32>
    %213 = vector.shape_cast %212 : vector<1x16x128xf32> to vector<16x128xf32>
    %c0_156 = arith.constant 0 : index
    %c0_157 = arith.constant 0 : index
    %c0_158 = arith.constant 0 : index
    %c8 = arith.constant 8 : index
    %214 = vector.load %arg3[%c0_156, %c0_157, %c0_158, %c8] : memref<1x4x16x154xf32, #tpu.memory_space<vmem>>, vector<1x1x16x128xf32>
    %215 = vector.shape_cast %214 : vector<1x1x16x128xf32> to vector<16x128xf32>
    %216 = arith.mulf %213, %215 : vector<16x128xf32>
    %217 = vector.extract_strided_slice %3 {offsets = [1, 0, 0], sizes = [1, 16, 128], strides = [1, 1, 1]} : vector<4x16x128xf32> to vector<1x16x128xf32>
    %218 = vector.shape_cast %217 : vector<1x16x128xf32> to vector<16x128xf32>
    %c0_159 = arith.constant 0 : index
    %c1_160 = arith.constant 1 : index
    %c0_161 = arith.constant 0 : index
    %c8_162 = arith.constant 8 : index
    %219 = vector.load %arg3[%c0_159, %c1_160, %c0_161, %c8_162] : memref<1x4x16x154xf32, #tpu.memory_space<vmem>>, vector<1x1x16x128xf32>
    %220 = vector.shape_cast %219 : vector<1x1x16x128xf32> to vector<16x128xf32>
    %221 = arith.mulf %218, %220 : vector<16x128xf32>
    %222 = arith.addf %216, %221 : vector<16x128xf32>
    %223 = vector.extract_strided_slice %3 {offsets = [2, 0, 0], sizes = [1, 16, 128], strides = [1, 1, 1]} : vector<4x16x128xf32> to vector<1x16x128xf32>
    %224 = vector.shape_cast %223 : vector<1x16x128xf32> to vector<16x128xf32>
    %c0_163 = arith.constant 0 : index
    %c2_164 = arith.constant 2 : index
    %c0_165 = arith.constant 0 : index
    %c8_166 = arith.constant 8 : index
    %225 = vector.load %arg3[%c0_163, %c2_164, %c0_165, %c8_166] : memref<1x4x16x154xf32, #tpu.memory_space<vmem>>, vector<1x1x16x128xf32>
    %226 = vector.shape_cast %225 : vector<1x1x16x128xf32> to vector<16x128xf32>
    %227 = arith.mulf %224, %226 : vector<16x128xf32>
    %228 = arith.addf %222, %227 : vector<16x128xf32>
    %229 = vector.extract_strided_slice %3 {offsets = [3, 0, 0], sizes = [1, 16, 128], strides = [1, 1, 1]} : vector<4x16x128xf32> to vector<1x16x128xf32>
    %230 = vector.shape_cast %229 : vector<1x16x128xf32> to vector<16x128xf32>
    %c0_167 = arith.constant 0 : index
    %c3_168 = arith.constant 3 : index
    %c0_169 = arith.constant 0 : index
    %c8_170 = arith.constant 8 : index
    %231 = vector.load %arg3[%c0_167, %c3_168, %c0_169, %c8_170] : memref<1x4x16x154xf32, #tpu.memory_space<vmem>>, vector<1x1x16x128xf32>
    %232 = vector.shape_cast %231 : vector<1x1x16x128xf32> to vector<16x128xf32>
    %233 = arith.mulf %230, %232 : vector<16x128xf32>
    %234 = arith.addf %228, %233 : vector<16x128xf32>
    %c0_171 = arith.constant 0 : index
    %c8_172 = arith.constant 8 : index
    %c0_173 = arith.constant 0 : index
    %c0_174 = arith.constant 0 : index
    %235 = vector.load %arg4[%c0_171, %c8_172, %c0_173, %c0_174] : memref<1x27x16x128xf32, #tpu.memory_space<vmem>>, vector<1x1x16x128xf32>
    %236 = vector.shape_cast %235 : vector<1x1x16x128xf32> to vector<16x128xf32>
    %237 = vector.shape_cast %234 : vector<16x128xf32> to vector<1x1x16x128xf32>
    tpu.vector_store %arg4[%c0_171, %c8_172, %c0_173, %c0_174], %237 {strides = array<i32>} : memref<1x27x16x128xf32, #tpu.memory_space<vmem>>, vector<1x1x16x128xf32>,
    %238 = vector.extract_strided_slice %3 {offsets = [0, 0, 0], sizes = [1, 16, 128], strides = [1, 1, 1]} : vector<4x16x128xf32> to vector<1x16x128xf32>
    %239 = vector.shape_cast %238 : vector<1x16x128xf32> to vector<16x128xf32>
    %c0_175 = arith.constant 0 : index
    %c0_176 = arith.constant 0 : index
    %c0_177 = arith.constant 0 : index
    %c9 = arith.constant 9 : index
    %240 = vector.load %arg3[%c0_175, %c0_176, %c0_177, %c9] : memref<1x4x16x154xf32, #tpu.memory_space<vmem>>, vector<1x1x16x128xf32>
    %241 = vector.shape_cast %240 : vector<1x1x16x128xf32> to vector<16x128xf32>
    %242 = arith.mulf %239, %241 : vector<16x128xf32>
    %243 = vector.extract_strided_slice %3 {offsets = [1, 0, 0], sizes = [1, 16, 128], strides = [1, 1, 1]} : vector<4x16x128xf32> to vector<1x16x128xf32>
    %244 = vector.shape_cast %243 : vector<1x16x128xf32> to vector<16x128xf32>
    %c0_178 = arith.constant 0 : index
    %c1_179 = arith.constant 1 : index
    %c0_180 = arith.constant 0 : index
    %c9_181 = arith.constant 9 : index
    %245 = vector.load %arg3[%c0_178, %c1_179, %c0_180, %c9_181] : memref<1x4x16x154xf32, #tpu.memory_space<vmem>>, vector<1x1x16x128xf32>
    %246 = vector.shape_cast %245 : vector<1x1x16x128xf32> to vector<16x128xf32>
    %247 = arith.mulf %244, %246 : vector<16x128xf32>
    %248 = arith.addf %242, %247 : vector<16x128xf32>
    %249 = vector.extract_strided_slice %3 {offsets = [2, 0, 0], sizes = [1, 16, 128], strides = [1, 1, 1]} : vector<4x16x128xf32> to vector<1x16x128xf32>
    %250 = vector.shape_cast %249 : vector<1x16x128xf32> to vector<16x128xf32>
    %c0_182 = arith.constant 0 : index
    %c2_183 = arith.constant 2 : index
    %c0_184 = arith.constant 0 : index
    %c9_185 = arith.constant 9 : index
    %251 = vector.load %arg3[%c0_182, %c2_183, %c0_184, %c9_185] : memref<1x4x16x154xf32, #tpu.memory_space<vmem>>, vector<1x1x16x128xf32>
    %252 = vector.shape_cast %251 : vector<1x1x16x128xf32> to vector<16x128xf32>
    %253 = arith.mulf %250, %252 : vector<16x128xf32>
    %254 = arith.addf %248, %253 : vector<16x128xf32>
    %255 = vector.extract_strided_slice %3 {offsets = [3, 0, 0], sizes = [1, 16, 128], strides = [1, 1, 1]} : vector<4x16x128xf32> to vector<1x16x128xf32>
    %256 = vector.shape_cast %255 : vector<1x16x128xf32> to vector<16x128xf32>
    %c0_186 = arith.constant 0 : index
    %c3_187 = arith.constant 3 : index
    %c0_188 = arith.constant 0 : index
    %c9_189 = arith.constant 9 : index
    %257 = vector.load %arg3[%c0_186, %c3_187, %c0_188, %c9_189] : memref<1x4x16x154xf32, #tpu.memory_space<vmem>>, vector<1x1x16x128xf32>
    %258 = vector.shape_cast %257 : vector<1x1x16x128xf32> to vector<16x128xf32>
    %259 = arith.mulf %256, %258 : vector<16x128xf32>
    %260 = arith.addf %254, %259 : vector<16x128xf32>
    %c0_190 = arith.constant 0 : index
    %c9_191 = arith.constant 9 : index
    %c0_192 = arith.constant 0 : index
    %c0_193 = arith.constant 0 : index
    %261 = vector.load %arg4[%c0_190, %c9_191, %c0_192, %c0_193] : memref<1x27x16x128xf32, #tpu.memory_space<vmem>>, vector<1x1x16x128xf32>
    %262 = vector.shape_cast %261 : vector<1x1x16x128xf32> to vector<16x128xf32>
    %263 = vector.shape_cast %260 : vector<16x128xf32> to vector<1x1x16x128xf32>
    tpu.vector_store %arg4[%c0_190, %c9_191, %c0_192, %c0_193], %263 {strides = array<i32>} : memref<1x27x16x128xf32, #tpu.memory_space<vmem>>, vector<1x1x16x128xf32>,
    %264 = vector.extract_strided_slice %3 {offsets = [0, 0, 0], sizes = [1, 16, 128], strides = [1, 1, 1]} : vector<4x16x128xf32> to vector<1x16x128xf32>
    %265 = vector.shape_cast %264 : vector<1x16x128xf32> to vector<16x128xf32>
    %c0_194 = arith.constant 0 : index
    %c0_195 = arith.constant 0 : index
    %c0_196 = arith.constant 0 : index
    %c10 = arith.constant 10 : index
    %266 = vector.load %arg3[%c0_194, %c0_195, %c0_196, %c10] : memref<1x4x16x154xf32, #tpu.memory_space<vmem>>, vector<1x1x16x128xf32>
    %267 = vector.shape_cast %266 : vector<1x1x16x128xf32> to vector<16x128xf32>
    %268 = arith.mulf %265, %267 : vector<16x128xf32>
    %269 = vector.extract_strided_slice %3 {offsets = [1, 0, 0], sizes = [1, 16, 128], strides = [1, 1, 1]} : vector<4x16x128xf32> to vector<1x16x128xf32>
    %270 = vector.shape_cast %269 : vector<1x16x128xf32> to vector<16x128xf32>
    %c0_197 = arith.constant 0 : index
    %c1_198 = arith.constant 1 : index
    %c0_199 = arith.constant 0 : index
    %c10_200 = arith.constant 10 : index
    %271 = vector.load %arg3[%c0_197, %c1_198, %c0_199, %c10_200] : memref<1x4x16x154xf32, #tpu.memory_space<vmem>>, vector<1x1x16x128xf32>
    %272 = vector.shape_cast %271 : vector<1x1x16x128xf32> to vector<16x128xf32>
    %273 = arith.mulf %270, %272 : vector<16x128xf32>
    %274 = arith.addf %268, %273 : vector<16x128xf32>
    %275 = vector.extract_strided_slice %3 {offsets = [2, 0, 0], sizes = [1, 16, 128], strides = [1, 1, 1]} : vector<4x16x128xf32> to vector<1x16x128xf32>
    %276 = vector.shape_cast %275 : vector<1x16x128xf32> to vector<16x128xf32>
    %c0_201 = arith.constant 0 : index
    %c2_202 = arith.constant 2 : index
    %c0_203 = arith.constant 0 : index
    %c10_204 = arith.constant 10 : index
    %277 = vector.load %arg3[%c0_201, %c2_202, %c0_203, %c10_204] : memref<1x4x16x154xf32, #tpu.memory_space<vmem>>, vector<1x1x16x128xf32>
    %278 = vector.shape_cast %277 : vector<1x1x16x128xf32> to vector<16x128xf32>
    %279 = arith.mulf %276, %278 : vector<16x128xf32>
    %280 = arith.addf %274, %279 : vector<16x128xf32>
    %281 = vector.extract_strided_slice %3 {offsets = [3, 0, 0], sizes = [1, 16, 128], strides = [1, 1, 1]} : vector<4x16x128xf32> to vector<1x16x128xf32>
    %282 = vector.shape_cast %281 : vector<1x16x128xf32> to vector<16x128xf32>
    %c0_205 = arith.constant 0 : index
    %c3_206 = arith.constant 3 : index
    %c0_207 = arith.constant 0 : index
    %c10_208 = arith.constant 10 : index
    %283 = vector.load %arg3[%c0_205, %c3_206, %c0_207, %c10_208] : memref<1x4x16x154xf32, #tpu.memory_space<vmem>>, vector<1x1x16x128xf32>
    %284 = vector.shape_cast %283 : vector<1x1x16x128xf32> to vector<16x128xf32>
    %285 = arith.mulf %282, %284 : vector<16x128xf32>
    %286 = arith.addf %280, %285 : vector<16x128xf32>
    %c0_209 = arith.constant 0 : index
    %c10_210 = arith.constant 10 : index
    %c0_211 = arith.constant 0 : index
    %c0_212 = arith.constant 0 : index
    %287 = vector.load %arg4[%c0_209, %c10_210, %c0_211, %c0_212] : memref<1x27x16x128xf32, #tpu.memory_space<vmem>>, vector<1x1x16x128xf32>
    %288 = vector.shape_cast %287 : vector<1x1x16x128xf32> to vector<16x128xf32>
    %289 = vector.shape_cast %286 : vector<16x128xf32> to vector<1x1x16x128xf32>
    tpu.vector_store %arg4[%c0_209, %c10_210, %c0_211, %c0_212], %289 {strides = array<i32>} : memref<1x27x16x128xf32, #tpu.memory_space<vmem>>, vector<1x1x16x128xf32>,
    %290 = vector.extract_strided_slice %3 {offsets = [0, 0, 0], sizes = [1, 16, 128], strides = [1, 1, 1]} : vector<4x16x128xf32> to vector<1x16x128xf32>
    %291 = vector.shape_cast %290 : vector<1x16x128xf32> to vector<16x128xf32>
    %c0_213 = arith.constant 0 : index
    %c0_214 = arith.constant 0 : index
    %c0_215 = arith.constant 0 : index
    %c11 = arith.constant 11 : index
    %292 = vector.load %arg3[%c0_213, %c0_214, %c0_215, %c11] : memref<1x4x16x154xf32, #tpu.memory_space<vmem>>, vector<1x1x16x128xf32>
    %293 = vector.shape_cast %292 : vector<1x1x16x128xf32> to vector<16x128xf32>
    %294 = arith.mulf %291, %293 : vector<16x128xf32>
    %295 = vector.extract_strided_slice %3 {offsets = [1, 0, 0], sizes = [1, 16, 128], strides = [1, 1, 1]} : vector<4x16x128xf32> to vector<1x16x128xf32>
    %296 = vector.shape_cast %295 : vector<1x16x128xf32> to vector<16x128xf32>
    %c0_216 = arith.constant 0 : index
    %c1_217 = arith.constant 1 : index
    %c0_218 = arith.constant 0 : index
    %c11_219 = arith.constant 11 : index
    %297 = vector.load %arg3[%c0_216, %c1_217, %c0_218, %c11_219] : memref<1x4x16x154xf32, #tpu.memory_space<vmem>>, vector<1x1x16x128xf32>
    %298 = vector.shape_cast %297 : vector<1x1x16x128xf32> to vector<16x128xf32>
    %299 = arith.mulf %296, %298 : vector<16x128xf32>
    %300 = arith.addf %294, %299 : vector<16x128xf32>
    %301 = vector.extract_strided_slice %3 {offsets = [2, 0, 0], sizes = [1, 16, 128], strides = [1, 1, 1]} : vector<4x16x128xf32> to vector<1x16x128xf32>
    %302 = vector.shape_cast %301 : vector<1x16x128xf32> to vector<16x128xf32>
    %c0_220 = arith.constant 0 : index
    %c2_221 = arith.constant 2 : index
    %c0_222 = arith.constant 0 : index
    %c11_223 = arith.constant 11 : index
    %303 = vector.load %arg3[%c0_220, %c2_221, %c0_222, %c11_223] : memref<1x4x16x154xf32, #tpu.memory_space<vmem>>, vector<1x1x16x128xf32>
    %304 = vector.shape_cast %303 : vector<1x1x16x128xf32> to vector<16x128xf32>
    %305 = arith.mulf %302, %304 : vector<16x128xf32>
    %306 = arith.addf %300, %305 : vector<16x128xf32>
    %307 = vector.extract_strided_slice %3 {offsets = [3, 0, 0], sizes = [1, 16, 128], strides = [1, 1, 1]} : vector<4x16x128xf32> to vector<1x16x128xf32>
    %308 = vector.shape_cast %307 : vector<1x16x128xf32> to vector<16x128xf32>
    %c0_224 = arith.constant 0 : index
    %c3_225 = arith.constant 3 : index
    %c0_226 = arith.constant 0 : index
    %c11_227 = arith.constant 11 : index
    %309 = vector.load %arg3[%c0_224, %c3_225, %c0_226, %c11_227] : memref<1x4x16x154xf32, #tpu.memory_space<vmem>>, vector<1x1x16x128xf32>
    %310 = vector.shape_cast %309 : vector<1x1x16x128xf32> to vector<16x128xf32>
    %311 = arith.mulf %308, %310 : vector<16x128xf32>
    %312 = arith.addf %306, %311 : vector<16x128xf32>
    %c0_228 = arith.constant 0 : index
    %c11_229 = arith.constant 11 : index
    %c0_230 = arith.constant 0 : index
    %c0_231 = arith.constant 0 : index
    %313 = vector.load %arg4[%c0_228, %c11_229, %c0_230, %c0_231] : memref<1x27x16x128xf32, #tpu.memory_space<vmem>>, vector<1x1x16x128xf32>
    %314 = vector.shape_cast %313 : vector<1x1x16x128xf32> to vector<16x128xf32>
    %315 = vector.shape_cast %312 : vector<16x128xf32> to vector<1x1x16x128xf32>
    tpu.vector_store %arg4[%c0_228, %c11_229, %c0_230, %c0_231], %315 {strides = array<i32>} : memref<1x27x16x128xf32, #tpu.memory_space<vmem>>, vector<1x1x16x128xf32>,
    %316 = vector.extract_strided_slice %3 {offsets = [0, 0, 0], sizes = [1, 16, 128], strides = [1, 1, 1]} : vector<4x16x128xf32> to vector<1x16x128xf32>
    %317 = vector.shape_cast %316 : vector<1x16x128xf32> to vector<16x128xf32>
    %c0_232 = arith.constant 0 : index
    %c0_233 = arith.constant 0 : index
    %c0_234 = arith.constant 0 : index
    %c12 = arith.constant 12 : index
    %318 = vector.load %arg3[%c0_232, %c0_233, %c0_234, %c12] : memref<1x4x16x154xf32, #tpu.memory_space<vmem>>, vector<1x1x16x128xf32>
    %319 = vector.shape_cast %318 : vector<1x1x16x128xf32> to vector<16x128xf32>
    %320 = arith.mulf %317, %319 : vector<16x128xf32>
    %321 = vector.extract_strided_slice %3 {offsets = [1, 0, 0], sizes = [1, 16, 128], strides = [1, 1, 1]} : vector<4x16x128xf32> to vector<1x16x128xf32>
    %322 = vector.shape_cast %321 : vector<1x16x128xf32> to vector<16x128xf32>
    %c0_235 = arith.constant 0 : index
    %c1_236 = arith.constant 1 : index
    %c0_237 = arith.constant 0 : index
    %c12_238 = arith.constant 12 : index
    %323 = vector.load %arg3[%c0_235, %c1_236, %c0_237, %c12_238] : memref<1x4x16x154xf32, #tpu.memory_space<vmem>>, vector<1x1x16x128xf32>
    %324 = vector.shape_cast %323 : vector<1x1x16x128xf32> to vector<16x128xf32>
    %325 = arith.mulf %322, %324 : vector<16x128xf32>
    %326 = arith.addf %320, %325 : vector<16x128xf32>
    %327 = vector.extract_strided_slice %3 {offsets = [2, 0, 0], sizes = [1, 16, 128], strides = [1, 1, 1]} : vector<4x16x128xf32> to vector<1x16x128xf32>
    %328 = vector.shape_cast %327 : vector<1x16x128xf32> to vector<16x128xf32>
    %c0_239 = arith.constant 0 : index
    %c2_240 = arith.constant 2 : index
    %c0_241 = arith.constant 0 : index
    %c12_242 = arith.constant 12 : index
    %329 = vector.load %arg3[%c0_239, %c2_240, %c0_241, %c12_242] : memref<1x4x16x154xf32, #tpu.memory_space<vmem>>, vector<1x1x16x128xf32>
    %330 = vector.shape_cast %329 : vector<1x1x16x128xf32> to vector<16x128xf32>
    %331 = arith.mulf %328, %330 : vector<16x128xf32>
    %332 = arith.addf %326, %331 : vector<16x128xf32>
    %333 = vector.extract_strided_slice %3 {offsets = [3, 0, 0], sizes = [1, 16, 128], strides = [1, 1, 1]} : vector<4x16x128xf32> to vector<1x16x128xf32>
    %334 = vector.shape_cast %333 : vector<1x16x128xf32> to vector<16x128xf32>
    %c0_243 = arith.constant 0 : index
    %c3_244 = arith.constant 3 : index
    %c0_245 = arith.constant 0 : index
    %c12_246 = arith.constant 12 : index
    %335 = vector.load %arg3[%c0_243, %c3_244, %c0_245, %c12_246] : memref<1x4x16x154xf32, #tpu.memory_space<vmem>>, vector<1x1x16x128xf32>
    %336 = vector.shape_cast %335 : vector<1x1x16x128xf32> to vector<16x128xf32>
    %337 = arith.mulf %334, %336 : vector<16x128xf32>
    %338 = arith.addf %332, %337 : vector<16x128xf32>
    %c0_247 = arith.constant 0 : index
    %c12_248 = arith.constant 12 : index
    %c0_249 = arith.constant 0 : index
    %c0_250 = arith.constant 0 : index
    %339 = vector.load %arg4[%c0_247, %c12_248, %c0_249, %c0_250] : memref<1x27x16x128xf32, #tpu.memory_space<vmem>>, vector<1x1x16x128xf32>
    %340 = vector.shape_cast %339 : vector<1x1x16x128xf32> to vector<16x128xf32>
    %341 = vector.shape_cast %338 : vector<16x128xf32> to vector<1x1x16x128xf32>
    tpu.vector_store %arg4[%c0_247, %c12_248, %c0_249, %c0_250], %341 {strides = array<i32>} : memref<1x27x16x128xf32, #tpu.memory_space<vmem>>, vector<1x1x16x128xf32>,
    %342 = vector.extract_strided_slice %3 {offsets = [0, 0, 0], sizes = [1, 16, 128], strides = [1, 1, 1]} : vector<4x16x128xf32> to vector<1x16x128xf32>
    %343 = vector.shape_cast %342 : vector<1x16x128xf32> to vector<16x128xf32>
    %c0_251 = arith.constant 0 : index
    %c0_252 = arith.constant 0 : index
    %c0_253 = arith.constant 0 : index
    %c13 = arith.constant 13 : index
    %344 = vector.load %arg3[%c0_251, %c0_252, %c0_253, %c13] : memref<1x4x16x154xf32, #tpu.memory_space<vmem>>, vector<1x1x16x128xf32>
    %345 = vector.shape_cast %344 : vector<1x1x16x128xf32> to vector<16x128xf32>
    %346 = arith.mulf %343, %345 : vector<16x128xf32>
    %347 = vector.extract_strided_slice %3 {offsets = [1, 0, 0], sizes = [1, 16, 128], strides = [1, 1, 1]} : vector<4x16x128xf32> to vector<1x16x128xf32>
    %348 = vector.shape_cast %347 : vector<1x16x128xf32> to vector<16x128xf32>
    %c0_254 = arith.constant 0 : index
    %c1_255 = arith.constant 1 : index
    %c0_256 = arith.constant 0 : index
    %c13_257 = arith.constant 13 : index
    %349 = vector.load %arg3[%c0_254, %c1_255, %c0_256, %c13_257] : memref<1x4x16x154xf32, #tpu.memory_space<vmem>>, vector<1x1x16x128xf32>
    %350 = vector.shape_cast %349 : vector<1x1x16x128xf32> to vector<16x128xf32>
    %351 = arith.mulf %348, %350 : vector<16x128xf32>
    %352 = arith.addf %346, %351 : vector<16x128xf32>
    %353 = vector.extract_strided_slice %3 {offsets = [2, 0, 0], sizes = [1, 16, 128], strides = [1, 1, 1]} : vector<4x16x128xf32> to vector<1x16x128xf32>
    %354 = vector.shape_cast %353 : vector<1x16x128xf32> to vector<16x128xf32>
    %c0_258 = arith.constant 0 : index
    %c2_259 = arith.constant 2 : index
    %c0_260 = arith.constant 0 : index
    %c13_261 = arith.constant 13 : index
    %355 = vector.load %arg3[%c0_258, %c2_259, %c0_260, %c13_261] : memref<1x4x16x154xf32, #tpu.memory_space<vmem>>, vector<1x1x16x128xf32>
    %356 = vector.shape_cast %355 : vector<1x1x16x128xf32> to vector<16x128xf32>
    %357 = arith.mulf %354, %356 : vector<16x128xf32>
    %358 = arith.addf %352, %357 : vector<16x128xf32>
    %359 = vector.extract_strided_slice %3 {offsets = [3, 0, 0], sizes = [1, 16, 128], strides = [1, 1, 1]} : vector<4x16x128xf32> to vector<1x16x128xf32>
    %360 = vector.shape_cast %359 : vector<1x16x128xf32> to vector<16x128xf32>
    %c0_262 = arith.constant 0 : index
    %c3_263 = arith.constant 3 : index
    %c0_264 = arith.constant 0 : index
    %c13_265 = arith.constant 13 : index
    %361 = vector.load %arg3[%c0_262, %c3_263, %c0_264, %c13_265] : memref<1x4x16x154xf32, #tpu.memory_space<vmem>>, vector<1x1x16x128xf32>
    %362 = vector.shape_cast %361 : vector<1x1x16x128xf32> to vector<16x128xf32>
    %363 = arith.mulf %360, %362 : vector<16x128xf32>
    %364 = arith.addf %358, %363 : vector<16x128xf32>
    %c0_266 = arith.constant 0 : index
    %c13_267 = arith.constant 13 : index
    %c0_268 = arith.constant 0 : index
    %c0_269 = arith.constant 0 : index
    %365 = vector.load %arg4[%c0_266, %c13_267, %c0_268, %c0_269] : memref<1x27x16x128xf32, #tpu.memory_space<vmem>>, vector<1x1x16x128xf32>
    %366 = vector.shape_cast %365 : vector<1x1x16x128xf32> to vector<16x128xf32>
    %367 = vector.shape_cast %364 : vector<16x128xf32> to vector<1x1x16x128xf32>
    tpu.vector_store %arg4[%c0_266, %c13_267, %c0_268, %c0_269], %367 {strides = array<i32>} : memref<1x27x16x128xf32, #tpu.memory_space<vmem>>, vector<1x1x16x128xf32>,
    %368 = vector.extract_strided_slice %3 {offsets = [0, 0, 0], sizes = [1, 16, 128], strides = [1, 1, 1]} : vector<4x16x128xf32> to vector<1x16x128xf32>
    %369 = vector.shape_cast %368 : vector<1x16x128xf32> to vector<16x128xf32>
    %c0_270 = arith.constant 0 : index
    %c0_271 = arith.constant 0 : index
    %c0_272 = arith.constant 0 : index
    %c14 = arith.constant 14 : index
    %370 = vector.load %arg3[%c0_270, %c0_271, %c0_272, %c14] : memref<1x4x16x154xf32, #tpu.memory_space<vmem>>, vector<1x1x16x128xf32>
    %371 = vector.shape_cast %370 : vector<1x1x16x128xf32> to vector<16x128xf32>
    %372 = arith.mulf %369, %371 : vector<16x128xf32>
    %373 = vector.extract_strided_slice %3 {offsets = [1, 0, 0], sizes = [1, 16, 128], strides = [1, 1, 1]} : vector<4x16x128xf32> to vector<1x16x128xf32>
    %374 = vector.shape_cast %373 : vector<1x16x128xf32> to vector<16x128xf32>
    %c0_273 = arith.constant 0 : index
    %c1_274 = arith.constant 1 : index
    %c0_275 = arith.constant 0 : index
    %c14_276 = arith.constant 14 : index
    %375 = vector.load %arg3[%c0_273, %c1_274, %c0_275, %c14_276] : memref<1x4x16x154xf32, #tpu.memory_space<vmem>>, vector<1x1x16x128xf32>
    %376 = vector.shape_cast %375 : vector<1x1x16x128xf32> to vector<16x128xf32>
    %377 = arith.mulf %374, %376 : vector<16x128xf32>
    %378 = arith.addf %372, %377 : vector<16x128xf32>
    %379 = vector.extract_strided_slice %3 {offsets = [2, 0, 0], sizes = [1, 16, 128], strides = [1, 1, 1]} : vector<4x16x128xf32> to vector<1x16x128xf32>
    %380 = vector.shape_cast %379 : vector<1x16x128xf32> to vector<16x128xf32>
    %c0_277 = arith.constant 0 : index
    %c2_278 = arith.constant 2 : index
    %c0_279 = arith.constant 0 : index
    %c14_280 = arith.constant 14 : index
    %381 = vector.load %arg3[%c0_277, %c2_278, %c0_279, %c14_280] : memref<1x4x16x154xf32, #tpu.memory_space<vmem>>, vector<1x1x16x128xf32>
    %382 = vector.shape_cast %381 : vector<1x1x16x128xf32> to vector<16x128xf32>
    %383 = arith.mulf %380, %382 : vector<16x128xf32>
    %384 = arith.addf %378, %383 : vector<16x128xf32>
    %385 = vector.extract_strided_slice %3 {offsets = [3, 0, 0], sizes = [1, 16, 128], strides = [1, 1, 1]} : vector<4x16x128xf32> to vector<1x16x128xf32>
    %386 = vector.shape_cast %385 : vector<1x16x128xf32> to vector<16x128xf32>
    %c0_281 = arith.constant 0 : index
    %c3_282 = arith.constant 3 : index
    %c0_283 = arith.constant 0 : index
    %c14_284 = arith.constant 14 : index
    %387 = vector.load %arg3[%c0_281, %c3_282, %c0_283, %c14_284] : memref<1x4x16x154xf32, #tpu.memory_space<vmem>>, vector<1x1x16x128xf32>
    %388 = vector.shape_cast %387 : vector<1x1x16x128xf32> to vector<16x128xf32>
    %389 = arith.mulf %386, %388 : vector<16x128xf32>
    %390 = arith.addf %384, %389 : vector<16x128xf32>
    %c0_285 = arith.constant 0 : index
    %c14_286 = arith.constant 14 : index
    %c0_287 = arith.constant 0 : index
    %c0_288 = arith.constant 0 : index
    %391 = vector.load %arg4[%c0_285, %c14_286, %c0_287, %c0_288] : memref<1x27x16x128xf32, #tpu.memory_space<vmem>>, vector<1x1x16x128xf32>
    %392 = vector.shape_cast %391 : vector<1x1x16x128xf32> to vector<16x128xf32>
    %393 = vector.shape_cast %390 : vector<16x128xf32> to vector<1x1x16x128xf32>
    tpu.vector_store %arg4[%c0_285, %c14_286, %c0_287, %c0_288], %393 {strides = array<i32>} : memref<1x27x16x128xf32, #tpu.memory_space<vmem>>, vector<1x1x16x128xf32>,
    %394 = vector.extract_strided_slice %3 {offsets = [0, 0, 0], sizes = [1, 16, 128], strides = [1, 1, 1]} : vector<4x16x128xf32> to vector<1x16x128xf32>
    %395 = vector.shape_cast %394 : vector<1x16x128xf32> to vector<16x128xf32>
    %c0_289 = arith.constant 0 : index
    %c0_290 = arith.constant 0 : index
    %c0_291 = arith.constant 0 : index
    %c15 = arith.constant 15 : index
    %396 = vector.load %arg3[%c0_289, %c0_290, %c0_291, %c15] : memref<1x4x16x154xf32, #tpu.memory_space<vmem>>, vector<1x1x16x128xf32>
    %397 = vector.shape_cast %396 : vector<1x1x16x128xf32> to vector<16x128xf32>
    %398 = arith.mulf %395, %397 : vector<16x128xf32>
    %399 = vector.extract_strided_slice %3 {offsets = [1, 0, 0], sizes = [1, 16, 128], strides = [1, 1, 1]} : vector<4x16x128xf32> to vector<1x16x128xf32>
    %400 = vector.shape_cast %399 : vector<1x16x128xf32> to vector<16x128xf32>
    %c0_292 = arith.constant 0 : index
    %c1_293 = arith.constant 1 : index
    %c0_294 = arith.constant 0 : index
    %c15_295 = arith.constant 15 : index
    %401 = vector.load %arg3[%c0_292, %c1_293, %c0_294, %c15_295] : memref<1x4x16x154xf32, #tpu.memory_space<vmem>>, vector<1x1x16x128xf32>
    %402 = vector.shape_cast %401 : vector<1x1x16x128xf32> to vector<16x128xf32>
    %403 = arith.mulf %400, %402 : vector<16x128xf32>
    %404 = arith.addf %398, %403 : vector<16x128xf32>
    %405 = vector.extract_strided_slice %3 {offsets = [2, 0, 0], sizes = [1, 16, 128], strides = [1, 1, 1]} : vector<4x16x128xf32> to vector<1x16x128xf32>
    %406 = vector.shape_cast %405 : vector<1x16x128xf32> to vector<16x128xf32>
    %c0_296 = arith.constant 0 : index
    %c2_297 = arith.constant 2 : index
    %c0_298 = arith.constant 0 : index
    %c15_299 = arith.constant 15 : index
    %407 = vector.load %arg3[%c0_296, %c2_297, %c0_298, %c15_299] : memref<1x4x16x154xf32, #tpu.memory_space<vmem>>, vector<1x1x16x128xf32>
    %408 = vector.shape_cast %407 : vector<1x1x16x128xf32> to vector<16x128xf32>
    %409 = arith.mulf %406, %408 : vector<16x128xf32>
    %410 = arith.addf %404, %409 : vector<16x128xf32>
    %411 = vector.extract_strided_slice %3 {offsets = [3, 0, 0], sizes = [1, 16, 128], strides = [1, 1, 1]} : vector<4x16x128xf32> to vector<1x16x128xf32>
    %412 = vector.shape_cast %411 : vector<1x16x128xf32> to vector<16x128xf32>
    %c0_300 = arith.constant 0 : index
    %c3_301 = arith.constant 3 : index
    %c0_302 = arith.constant 0 : index
    %c15_303 = arith.constant 15 : index
    %413 = vector.load %arg3[%c0_300, %c3_301, %c0_302, %c15_303] : memref<1x4x16x154xf32, #tpu.memory_space<vmem>>, vector<1x1x16x128xf32>
    %414 = vector.shape_cast %413 : vector<1x1x16x128xf32> to vector<16x128xf32>
    %415 = arith.mulf %412, %414 : vector<16x128xf32>
    %416 = arith.addf %410, %415 : vector<16x128xf32>
    %c0_304 = arith.constant 0 : index
    %c15_305 = arith.constant 15 : index
    %c0_306 = arith.constant 0 : index
    %c0_307 = arith.constant 0 : index
    %417 = vector.load %arg4[%c0_304, %c15_305, %c0_306, %c0_307] : memref<1x27x16x128xf32, #tpu.memory_space<vmem>>, vector<1x1x16x128xf32>
    %418 = vector.shape_cast %417 : vector<1x1x16x128xf32> to vector<16x128xf32>
    %419 = vector.shape_cast %416 : vector<16x128xf32> to vector<1x1x16x128xf32>
    tpu.vector_store %arg4[%c0_304, %c15_305, %c0_306, %c0_307], %419 {strides = array<i32>} : memref<1x27x16x128xf32, #tpu.memory_space<vmem>>, vector<1x1x16x128xf32>,
    %420 = vector.extract_strided_slice %3 {offsets = [0, 0, 0], sizes = [1, 16, 128], strides = [1, 1, 1]} : vector<4x16x128xf32> to vector<1x16x128xf32>
    %421 = vector.shape_cast %420 : vector<1x16x128xf32> to vector<16x128xf32>
    %c0_308 = arith.constant 0 : index
    %c0_309 = arith.constant 0 : index
    %c0_310 = arith.constant 0 : index
    %c16 = arith.constant 16 : index
    %422 = vector.load %arg3[%c0_308, %c0_309, %c0_310, %c16] : memref<1x4x16x154xf32, #tpu.memory_space<vmem>>, vector<1x1x16x128xf32>
    %423 = vector.shape_cast %422 : vector<1x1x16x128xf32> to vector<16x128xf32>
    %424 = arith.mulf %421, %423 : vector<16x128xf32>
    %425 = vector.extract_strided_slice %3 {offsets = [1, 0, 0], sizes = [1, 16, 128], strides = [1, 1, 1]} : vector<4x16x128xf32> to vector<1x16x128xf32>
    %426 = vector.shape_cast %425 : vector<1x16x128xf32> to vector<16x128xf32>
    %c0_311 = arith.constant 0 : index
    %c1_312 = arith.constant 1 : index
    %c0_313 = arith.constant 0 : index
    %c16_314 = arith.constant 16 : index
    %427 = vector.load %arg3[%c0_311, %c1_312, %c0_313, %c16_314] : memref<1x4x16x154xf32, #tpu.memory_space<vmem>>, vector<1x1x16x128xf32>
    %428 = vector.shape_cast %427 : vector<1x1x16x128xf32> to vector<16x128xf32>
    %429 = arith.mulf %426, %428 : vector<16x128xf32>
    %430 = arith.addf %424, %429 : vector<16x128xf32>
    %431 = vector.extract_strided_slice %3 {offsets = [2, 0, 0], sizes = [1, 16, 128], strides = [1, 1, 1]} : vector<4x16x128xf32> to vector<1x16x128xf32>
    %432 = vector.shape_cast %431 : vector<1x16x128xf32> to vector<16x128xf32>
    %c0_315 = arith.constant 0 : index
    %c2_316 = arith.constant 2 : index
    %c0_317 = arith.constant 0 : index
    %c16_318 = arith.constant 16 : index
    %433 = vector.load %arg3[%c0_315, %c2_316, %c0_317, %c16_318] : memref<1x4x16x154xf32, #tpu.memory_space<vmem>>, vector<1x1x16x128xf32>
    %434 = vector.shape_cast %433 : vector<1x1x16x128xf32> to vector<16x128xf32>
    %435 = arith.mulf %432, %434 : vector<16x128xf32>
    %436 = arith.addf %430, %435 : vector<16x128xf32>
    %437 = vector.extract_strided_slice %3 {offsets = [3, 0, 0], sizes = [1, 16, 128], strides = [1, 1, 1]} : vector<4x16x128xf32> to vector<1x16x128xf32>
    %438 = vector.shape_cast %437 : vector<1x16x128xf32> to vector<16x128xf32>
    %c0_319 = arith.constant 0 : index
    %c3_320 = arith.constant 3 : index
    %c0_321 = arith.constant 0 : index
    %c16_322 = arith.constant 16 : index
    %439 = vector.load %arg3[%c0_319, %c3_320, %c0_321, %c16_322] : memref<1x4x16x154xf32, #tpu.memory_space<vmem>>, vector<1x1x16x128xf32>
    %440 = vector.shape_cast %439 : vector<1x1x16x128xf32> to vector<16x128xf32>
    %441 = arith.mulf %438, %440 : vector<16x128xf32>
    %442 = arith.addf %436, %441 : vector<16x128xf32>
    %c0_323 = arith.constant 0 : index
    %c16_324 = arith.constant 16 : index
    %c0_325 = arith.constant 0 : index
    %c0_326 = arith.constant 0 : index
    %443 = vector.load %arg4[%c0_323, %c16_324, %c0_325, %c0_326] : memref<1x27x16x128xf32, #tpu.memory_space<vmem>>, vector<1x1x16x128xf32>
    %444 = vector.shape_cast %443 : vector<1x1x16x128xf32> to vector<16x128xf32>
    %445 = vector.shape_cast %442 : vector<16x128xf32> to vector<1x1x16x128xf32>
    tpu.vector_store %arg4[%c0_323, %c16_324, %c0_325, %c0_326], %445 {strides = array<i32>} : memref<1x27x16x128xf32, #tpu.memory_space<vmem>>, vector<1x1x16x128xf32>,
    %446 = vector.extract_strided_slice %3 {offsets = [0, 0, 0], sizes = [1, 16, 128], strides = [1, 1, 1]} : vector<4x16x128xf32> to vector<1x16x128xf32>
    %447 = vector.shape_cast %446 : vector<1x16x128xf32> to vector<16x128xf32>
    %c0_327 = arith.constant 0 : index
    %c0_328 = arith.constant 0 : index
    %c0_329 = arith.constant 0 : index
    %c17 = arith.constant 17 : index
    %448 = vector.load %arg3[%c0_327, %c0_328, %c0_329, %c17] : memref<1x4x16x154xf32, #tpu.memory_space<vmem>>, vector<1x1x16x128xf32>
    %449 = vector.shape_cast %448 : vector<1x1x16x128xf32> to vector<16x128xf32>
    %450 = arith.mulf %447, %449 : vector<16x128xf32>
    %451 = vector.extract_strided_slice %3 {offsets = [1, 0, 0], sizes = [1, 16, 128], strides = [1, 1, 1]} : vector<4x16x128xf32> to vector<1x16x128xf32>
    %452 = vector.shape_cast %451 : vector<1x16x128xf32> to vector<16x128xf32>
    %c0_330 = arith.constant 0 : index
    %c1_331 = arith.constant 1 : index
    %c0_332 = arith.constant 0 : index
    %c17_333 = arith.constant 17 : index
    %453 = vector.load %arg3[%c0_330, %c1_331, %c0_332, %c17_333] : memref<1x4x16x154xf32, #tpu.memory_space<vmem>>, vector<1x1x16x128xf32>
    %454 = vector.shape_cast %453 : vector<1x1x16x128xf32> to vector<16x128xf32>
    %455 = arith.mulf %452, %454 : vector<16x128xf32>
    %456 = arith.addf %450, %455 : vector<16x128xf32>
    %457 = vector.extract_strided_slice %3 {offsets = [2, 0, 0], sizes = [1, 16, 128], strides = [1, 1, 1]} : vector<4x16x128xf32> to vector<1x16x128xf32>
    %458 = vector.shape_cast %457 : vector<1x16x128xf32> to vector<16x128xf32>
    %c0_334 = arith.constant 0 : index
    %c2_335 = arith.constant 2 : index
    %c0_336 = arith.constant 0 : index
    %c17_337 = arith.constant 17 : index
    %459 = vector.load %arg3[%c0_334, %c2_335, %c0_336, %c17_337] : memref<1x4x16x154xf32, #tpu.memory_space<vmem>>, vector<1x1x16x128xf32>
    %460 = vector.shape_cast %459 : vector<1x1x16x128xf32> to vector<16x128xf32>
    %461 = arith.mulf %458, %460 : vector<16x128xf32>
    %462 = arith.addf %456, %461 : vector<16x128xf32>
    %463 = vector.extract_strided_slice %3 {offsets = [3, 0, 0], sizes = [1, 16, 128], strides = [1, 1, 1]} : vector<4x16x128xf32> to vector<1x16x128xf32>
    %464 = vector.shape_cast %463 : vector<1x16x128xf32> to vector<16x128xf32>
    %c0_338 = arith.constant 0 : index
    %c3_339 = arith.constant 3 : index
    %c0_340 = arith.constant 0 : index
    %c17_341 = arith.constant 17 : index
    %465 = vector.load %arg3[%c0_338, %c3_339, %c0_340, %c17_341] : memref<1x4x16x154xf32, #tpu.memory_space<vmem>>, vector<1x1x16x128xf32>
    %466 = vector.shape_cast %465 : vector<1x1x16x128xf32> to vector<16x128xf32>
    %467 = arith.mulf %464, %466 : vector<16x128xf32>
    %468 = arith.addf %462, %467 : vector<16x128xf32>
    %c0_342 = arith.constant 0 : index
    %c17_343 = arith.constant 17 : index
    %c0_344 = arith.constant 0 : index
    %c0_345 = arith.constant 0 : index
    %469 = vector.load %arg4[%c0_342, %c17_343, %c0_344, %c0_345] : memref<1x27x16x128xf32, #tpu.memory_space<vmem>>, vector<1x1x16x128xf32>
    %470 = vector.shape_cast %469 : vector<1x1x16x128xf32> to vector<16x128xf32>
    %471 = vector.shape_cast %468 : vector<16x128xf32> to vector<1x1x16x128xf32>
    tpu.vector_store %arg4[%c0_342, %c17_343, %c0_344, %c0_345], %471 {strides = array<i32>} : memref<1x27x16x128xf32, #tpu.memory_space<vmem>>, vector<1x1x16x128xf32>,
    %472 = vector.extract_strided_slice %3 {offsets = [0, 0, 0], sizes = [1, 16, 128], strides = [1, 1, 1]} : vector<4x16x128xf32> to vector<1x16x128xf32>
    %473 = vector.shape_cast %472 : vector<1x16x128xf32> to vector<16x128xf32>
    %c0_346 = arith.constant 0 : index
    %c0_347 = arith.constant 0 : index
    %c0_348 = arith.constant 0 : index
    %c18 = arith.constant 18 : index
    %474 = vector.load %arg3[%c0_346, %c0_347, %c0_348, %c18] : memref<1x4x16x154xf32, #tpu.memory_space<vmem>>, vector<1x1x16x128xf32>
    %475 = vector.shape_cast %474 : vector<1x1x16x128xf32> to vector<16x128xf32>
    %476 = arith.mulf %473, %475 : vector<16x128xf32>
    %477 = vector.extract_strided_slice %3 {offsets = [1, 0, 0], sizes = [1, 16, 128], strides = [1, 1, 1]} : vector<4x16x128xf32> to vector<1x16x128xf32>
    %478 = vector.shape_cast %477 : vector<1x16x128xf32> to vector<16x128xf32>
    %c0_349 = arith.constant 0 : index
    %c1_350 = arith.constant 1 : index
    %c0_351 = arith.constant 0 : index
    %c18_352 = arith.constant 18 : index
    %479 = vector.load %arg3[%c0_349, %c1_350, %c0_351, %c18_352] : memref<1x4x16x154xf32, #tpu.memory_space<vmem>>, vector<1x1x16x128xf32>
    %480 = vector.shape_cast %479 : vector<1x1x16x128xf32> to vector<16x128xf32>
    %481 = arith.mulf %478, %480 : vector<16x128xf32>
    %482 = arith.addf %476, %481 : vector<16x128xf32>
    %483 = vector.extract_strided_slice %3 {offsets = [2, 0, 0], sizes = [1, 16, 128], strides = [1, 1, 1]} : vector<4x16x128xf32> to vector<1x16x128xf32>
    %484 = vector.shape_cast %483 : vector<1x16x128xf32> to vector<16x128xf32>
    %c0_353 = arith.constant 0 : index
    %c2_354 = arith.constant 2 : index
    %c0_355 = arith.constant 0 : index
    %c18_356 = arith.constant 18 : index
    %485 = vector.load %arg3[%c0_353, %c2_354, %c0_355, %c18_356] : memref<1x4x16x154xf32, #tpu.memory_space<vmem>>, vector<1x1x16x128xf32>
    %486 = vector.shape_cast %485 : vector<1x1x16x128xf32> to vector<16x128xf32>
    %487 = arith.mulf %484, %486 : vector<16x128xf32>
    %488 = arith.addf %482, %487 : vector<16x128xf32>
    %489 = vector.extract_strided_slice %3 {offsets = [3, 0, 0], sizes = [1, 16, 128], strides = [1, 1, 1]} : vector<4x16x128xf32> to vector<1x16x128xf32>
    %490 = vector.shape_cast %489 : vector<1x16x128xf32> to vector<16x128xf32>
    %c0_357 = arith.constant 0 : index
    %c3_358 = arith.constant 3 : index
    %c0_359 = arith.constant 0 : index
    %c18_360 = arith.constant 18 : index
    %491 = vector.load %arg3[%c0_357, %c3_358, %c0_359, %c18_360] : memref<1x4x16x154xf32, #tpu.memory_space<vmem>>, vector<1x1x16x128xf32>
    %492 = vector.shape_cast %491 : vector<1x1x16x128xf32> to vector<16x128xf32>
    %493 = arith.mulf %490, %492 : vector<16x128xf32>
    %494 = arith.addf %488, %493 : vector<16x128xf32>
    %c0_361 = arith.constant 0 : index
    %c18_362 = arith.constant 18 : index
    %c0_363 = arith.constant 0 : index
    %c0_364 = arith.constant 0 : index
    %495 = vector.load %arg4[%c0_361, %c18_362, %c0_363, %c0_364] : memref<1x27x16x128xf32, #tpu.memory_space<vmem>>, vector<1x1x16x128xf32>
    %496 = vector.shape_cast %495 : vector<1x1x16x128xf32> to vector<16x128xf32>
    %497 = vector.shape_cast %494 : vector<16x128xf32> to vector<1x1x16x128xf32>
    tpu.vector_store %arg4[%c0_361, %c18_362, %c0_363, %c0_364], %497 {strides = array<i32>} : memref<1x27x16x128xf32, #tpu.memory_space<vmem>>, vector<1x1x16x128xf32>,
    %498 = vector.extract_strided_slice %3 {offsets = [0, 0, 0], sizes = [1, 16, 128], strides = [1, 1, 1]} : vector<4x16x128xf32> to vector<1x16x128xf32>
    %499 = vector.shape_cast %498 : vector<1x16x128xf32> to vector<16x128xf32>
    %c0_365 = arith.constant 0 : index
    %c0_366 = arith.constant 0 : index
    %c0_367 = arith.constant 0 : index
    %c19 = arith.constant 19 : index
    %500 = vector.load %arg3[%c0_365, %c0_366, %c0_367, %c19] : memref<1x4x16x154xf32, #tpu.memory_space<vmem>>, vector<1x1x16x128xf32>
    %501 = vector.shape_cast %500 : vector<1x1x16x128xf32> to vector<16x128xf32>
    %502 = arith.mulf %499, %501 : vector<16x128xf32>
    %503 = vector.extract_strided_slice %3 {offsets = [1, 0, 0], sizes = [1, 16, 128], strides = [1, 1, 1]} : vector<4x16x128xf32> to vector<1x16x128xf32>
    %504 = vector.shape_cast %503 : vector<1x16x128xf32> to vector<16x128xf32>
    %c0_368 = arith.constant 0 : index
    %c1_369 = arith.constant 1 : index
    %c0_370 = arith.constant 0 : index
    %c19_371 = arith.constant 19 : index
    %505 = vector.load %arg3[%c0_368, %c1_369, %c0_370, %c19_371] : memref<1x4x16x154xf32, #tpu.memory_space<vmem>>, vector<1x1x16x128xf32>
    %506 = vector.shape_cast %505 : vector<1x1x16x128xf32> to vector<16x128xf32>
    %507 = arith.mulf %504, %506 : vector<16x128xf32>
    %508 = arith.addf %502, %507 : vector<16x128xf32>
    %509 = vector.extract_strided_slice %3 {offsets = [2, 0, 0], sizes = [1, 16, 128], strides = [1, 1, 1]} : vector<4x16x128xf32> to vector<1x16x128xf32>
    %510 = vector.shape_cast %509 : vector<1x16x128xf32> to vector<16x128xf32>
    %c0_372 = arith.constant 0 : index
    %c2_373 = arith.constant 2 : index
    %c0_374 = arith.constant 0 : index
    %c19_375 = arith.constant 19 : index
    %511 = vector.load %arg3[%c0_372, %c2_373, %c0_374, %c19_375] : memref<1x4x16x154xf32, #tpu.memory_space<vmem>>, vector<1x1x16x128xf32>
    %512 = vector.shape_cast %511 : vector<1x1x16x128xf32> to vector<16x128xf32>
    %513 = arith.mulf %510, %512 : vector<16x128xf32>
    %514 = arith.addf %508, %513 : vector<16x128xf32>
    %515 = vector.extract_strided_slice %3 {offsets = [3, 0, 0], sizes = [1, 16, 128], strides = [1, 1, 1]} : vector<4x16x128xf32> to vector<1x16x128xf32>
    %516 = vector.shape_cast %515 : vector<1x16x128xf32> to vector<16x128xf32>
    %c0_376 = arith.constant 0 : index
    %c3_377 = arith.constant 3 : index
    %c0_378 = arith.constant 0 : index
    %c19_379 = arith.constant 19 : index
    %517 = vector.load %arg3[%c0_376, %c3_377, %c0_378, %c19_379] : memref<1x4x16x154xf32, #tpu.memory_space<vmem>>, vector<1x1x16x128xf32>
    %518 = vector.shape_cast %517 : vector<1x1x16x128xf32> to vector<16x128xf32>
    %519 = arith.mulf %516, %518 : vector<16x128xf32>
    %520 = arith.addf %514, %519 : vector<16x128xf32>
    %c0_380 = arith.constant 0 : index
    %c19_381 = arith.constant 19 : index
    %c0_382 = arith.constant 0 : index
    %c0_383 = arith.constant 0 : index
    %521 = vector.load %arg4[%c0_380, %c19_381, %c0_382, %c0_383] : memref<1x27x16x128xf32, #tpu.memory_space<vmem>>, vector<1x1x16x128xf32>
    %522 = vector.shape_cast %521 : vector<1x1x16x128xf32> to vector<16x128xf32>
    %523 = vector.shape_cast %520 : vector<16x128xf32> to vector<1x1x16x128xf32>
    tpu.vector_store %arg4[%c0_380, %c19_381, %c0_382, %c0_383], %523 {strides = array<i32>} : memref<1x27x16x128xf32, #tpu.memory_space<vmem>>, vector<1x1x16x128xf32>,
    %524 = vector.extract_strided_slice %3 {offsets = [0, 0, 0], sizes = [1, 16, 128], strides = [1, 1, 1]} : vector<4x16x128xf32> to vector<1x16x128xf32>
    %525 = vector.shape_cast %524 : vector<1x16x128xf32> to vector<16x128xf32>
    %c0_384 = arith.constant 0 : index
    %c0_385 = arith.constant 0 : index
    %c0_386 = arith.constant 0 : index
    %c20 = arith.constant 20 : index
    %526 = vector.load %arg3[%c0_384, %c0_385, %c0_386, %c20] : memref<1x4x16x154xf32, #tpu.memory_space<vmem>>, vector<1x1x16x128xf32>
    %527 = vector.shape_cast %526 : vector<1x1x16x128xf32> to vector<16x128xf32>
    %528 = arith.mulf %525, %527 : vector<16x128xf32>
    %529 = vector.extract_strided_slice %3 {offsets = [1, 0, 0], sizes = [1, 16, 128], strides = [1, 1, 1]} : vector<4x16x128xf32> to vector<1x16x128xf32>
    %530 = vector.shape_cast %529 : vector<1x16x128xf32> to vector<16x128xf32>
    %c0_387 = arith.constant 0 : index
    %c1_388 = arith.constant 1 : index
    %c0_389 = arith.constant 0 : index
    %c20_390 = arith.constant 20 : index
    %531 = vector.load %arg3[%c0_387, %c1_388, %c0_389, %c20_390] : memref<1x4x16x154xf32, #tpu.memory_space<vmem>>, vector<1x1x16x128xf32>
    %532 = vector.shape_cast %531 : vector<1x1x16x128xf32> to vector<16x128xf32>
    %533 = arith.mulf %530, %532 : vector<16x128xf32>
    %534 = arith.addf %528, %533 : vector<16x128xf32>
    %535 = vector.extract_strided_slice %3 {offsets = [2, 0, 0], sizes = [1, 16, 128], strides = [1, 1, 1]} : vector<4x16x128xf32> to vector<1x16x128xf32>
    %536 = vector.shape_cast %535 : vector<1x16x128xf32> to vector<16x128xf32>
    %c0_391 = arith.constant 0 : index
    %c2_392 = arith.constant 2 : index
    %c0_393 = arith.constant 0 : index
    %c20_394 = arith.constant 20 : index
    %537 = vector.load %arg3[%c0_391, %c2_392, %c0_393, %c20_394] : memref<1x4x16x154xf32, #tpu.memory_space<vmem>>, vector<1x1x16x128xf32>
    %538 = vector.shape_cast %537 : vector<1x1x16x128xf32> to vector<16x128xf32>
    %539 = arith.mulf %536, %538 : vector<16x128xf32>
    %540 = arith.addf %534, %539 : vector<16x128xf32>
    %541 = vector.extract_strided_slice %3 {offsets = [3, 0, 0], sizes = [1, 16, 128], strides = [1, 1, 1]} : vector<4x16x128xf32> to vector<1x16x128xf32>
    %542 = vector.shape_cast %541 : vector<1x16x128xf32> to vector<16x128xf32>
    %c0_395 = arith.constant 0 : index
    %c3_396 = arith.constant 3 : index
    %c0_397 = arith.constant 0 : index
    %c20_398 = arith.constant 20 : index
    %543 = vector.load %arg3[%c0_395, %c3_396, %c0_397, %c20_398] : memref<1x4x16x154xf32, #tpu.memory_space<vmem>>, vector<1x1x16x128xf32>
    %544 = vector.shape_cast %543 : vector<1x1x16x128xf32> to vector<16x128xf32>
    %545 = arith.mulf %542, %544 : vector<16x128xf32>
    %546 = arith.addf %540, %545 : vector<16x128xf32>
    %c0_399 = arith.constant 0 : index
    %c20_400 = arith.constant 20 : index
    %c0_401 = arith.constant 0 : index
    %c0_402 = arith.constant 0 : index
    %547 = vector.load %arg4[%c0_399, %c20_400, %c0_401, %c0_402] : memref<1x27x16x128xf32, #tpu.memory_space<vmem>>, vector<1x1x16x128xf32>
    %548 = vector.shape_cast %547 : vector<1x1x16x128xf32> to vector<16x128xf32>
    %549 = vector.shape_cast %546 : vector<16x128xf32> to vector<1x1x16x128xf32>
    tpu.vector_store %arg4[%c0_399, %c20_400, %c0_401, %c0_402], %549 {strides = array<i32>} : memref<1x27x16x128xf32, #tpu.memory_space<vmem>>, vector<1x1x16x128xf32>,
    %550 = vector.extract_strided_slice %3 {offsets = [0, 0, 0], sizes = [1, 16, 128], strides = [1, 1, 1]} : vector<4x16x128xf32> to vector<1x16x128xf32>
    %551 = vector.shape_cast %550 : vector<1x16x128xf32> to vector<16x128xf32>
    %c0_403 = arith.constant 0 : index
    %c0_404 = arith.constant 0 : index
    %c0_405 = arith.constant 0 : index
    %c21 = arith.constant 21 : index
    %552 = vector.load %arg3[%c0_403, %c0_404, %c0_405, %c21] : memref<1x4x16x154xf32, #tpu.memory_space<vmem>>, vector<1x1x16x128xf32>
    %553 = vector.shape_cast %552 : vector<1x1x16x128xf32> to vector<16x128xf32>
    %554 = arith.mulf %551, %553 : vector<16x128xf32>
    %555 = vector.extract_strided_slice %3 {offsets = [1, 0, 0], sizes = [1, 16, 128], strides = [1, 1, 1]} : vector<4x16x128xf32> to vector<1x16x128xf32>
    %556 = vector.shape_cast %555 : vector<1x16x128xf32> to vector<16x128xf32>
    %c0_406 = arith.constant 0 : index
    %c1_407 = arith.constant 1 : index
    %c0_408 = arith.constant 0 : index
    %c21_409 = arith.constant 21 : index
    %557 = vector.load %arg3[%c0_406, %c1_407, %c0_408, %c21_409] : memref<1x4x16x154xf32, #tpu.memory_space<vmem>>, vector<1x1x16x128xf32>
    %558 = vector.shape_cast %557 : vector<1x1x16x128xf32> to vector<16x128xf32>
    %559 = arith.mulf %556, %558 : vector<16x128xf32>
    %560 = arith.addf %554, %559 : vector<16x128xf32>
    %561 = vector.extract_strided_slice %3 {offsets = [2, 0, 0], sizes = [1, 16, 128], strides = [1, 1, 1]} : vector<4x16x128xf32> to vector<1x16x128xf32>
    %562 = vector.shape_cast %561 : vector<1x16x128xf32> to vector<16x128xf32>
    %c0_410 = arith.constant 0 : index
    %c2_411 = arith.constant 2 : index
    %c0_412 = arith.constant 0 : index
    %c21_413 = arith.constant 21 : index
    %563 = vector.load %arg3[%c0_410, %c2_411, %c0_412, %c21_413] : memref<1x4x16x154xf32, #tpu.memory_space<vmem>>, vector<1x1x16x128xf32>
    %564 = vector.shape_cast %563 : vector<1x1x16x128xf32> to vector<16x128xf32>
    %565 = arith.mulf %562, %564 : vector<16x128xf32>
    %566 = arith.addf %560, %565 : vector<16x128xf32>
    %567 = vector.extract_strided_slice %3 {offsets = [3, 0, 0], sizes = [1, 16, 128], strides = [1, 1, 1]} : vector<4x16x128xf32> to vector<1x16x128xf32>
    %568 = vector.shape_cast %567 : vector<1x16x128xf32> to vector<16x128xf32>
    %c0_414 = arith.constant 0 : index
    %c3_415 = arith.constant 3 : index
    %c0_416 = arith.constant 0 : index
    %c21_417 = arith.constant 21 : index
    %569 = vector.load %arg3[%c0_414, %c3_415, %c0_416, %c21_417] : memref<1x4x16x154xf32, #tpu.memory_space<vmem>>, vector<1x1x16x128xf32>
    %570 = vector.shape_cast %569 : vector<1x1x16x128xf32> to vector<16x128xf32>
    %571 = arith.mulf %568, %570 : vector<16x128xf32>
    %572 = arith.addf %566, %571 : vector<16x128xf32>
    %c0_418 = arith.constant 0 : index
    %c21_419 = arith.constant 21 : index
    %c0_420 = arith.constant 0 : index
    %c0_421 = arith.constant 0 : index
    %573 = vector.load %arg4[%c0_418, %c21_419, %c0_420, %c0_421] : memref<1x27x16x128xf32, #tpu.memory_space<vmem>>, vector<1x1x16x128xf32>
    %574 = vector.shape_cast %573 : vector<1x1x16x128xf32> to vector<16x128xf32>
    %575 = vector.shape_cast %572 : vector<16x128xf32> to vector<1x1x16x128xf32>
    tpu.vector_store %arg4[%c0_418, %c21_419, %c0_420, %c0_421], %575 {strides = array<i32>} : memref<1x27x16x128xf32, #tpu.memory_space<vmem>>, vector<1x1x16x128xf32>,
    %576 = vector.extract_strided_slice %3 {offsets = [0, 0, 0], sizes = [1, 16, 128], strides = [1, 1, 1]} : vector<4x16x128xf32> to vector<1x16x128xf32>
    %577 = vector.shape_cast %576 : vector<1x16x128xf32> to vector<16x128xf32>
    %c0_422 = arith.constant 0 : index
    %c0_423 = arith.constant 0 : index
    %c0_424 = arith.constant 0 : index
    %c22 = arith.constant 22 : index
    %578 = vector.load %arg3[%c0_422, %c0_423, %c0_424, %c22] : memref<1x4x16x154xf32, #tpu.memory_space<vmem>>, vector<1x1x16x128xf32>
    %579 = vector.shape_cast %578 : vector<1x1x16x128xf32> to vector<16x128xf32>
    %580 = arith.mulf %577, %579 : vector<16x128xf32>
    %581 = vector.extract_strided_slice %3 {offsets = [1, 0, 0], sizes = [1, 16, 128], strides = [1, 1, 1]} : vector<4x16x128xf32> to vector<1x16x128xf32>
    %582 = vector.shape_cast %581 : vector<1x16x128xf32> to vector<16x128xf32>
    %c0_425 = arith.constant 0 : index
    %c1_426 = arith.constant 1 : index
    %c0_427 = arith.constant 0 : index
    %c22_428 = arith.constant 22 : index
    %583 = vector.load %arg3[%c0_425, %c1_426, %c0_427, %c22_428] : memref<1x4x16x154xf32, #tpu.memory_space<vmem>>, vector<1x1x16x128xf32>
    %584 = vector.shape_cast %583 : vector<1x1x16x128xf32> to vector<16x128xf32>
    %585 = arith.mulf %582, %584 : vector<16x128xf32>
    %586 = arith.addf %580, %585 : vector<16x128xf32>
    %587 = vector.extract_strided_slice %3 {offsets = [2, 0, 0], sizes = [1, 16, 128], strides = [1, 1, 1]} : vector<4x16x128xf32> to vector<1x16x128xf32>
    %588 = vector.shape_cast %587 : vector<1x16x128xf32> to vector<16x128xf32>
    %c0_429 = arith.constant 0 : index
    %c2_430 = arith.constant 2 : index
    %c0_431 = arith.constant 0 : index
    %c22_432 = arith.constant 22 : index
    %589 = vector.load %arg3[%c0_429, %c2_430, %c0_431, %c22_432] : memref<1x4x16x154xf32, #tpu.memory_space<vmem>>, vector<1x1x16x128xf32>
    %590 = vector.shape_cast %589 : vector<1x1x16x128xf32> to vector<16x128xf32>
    %591 = arith.mulf %588, %590 : vector<16x128xf32>
    %592 = arith.addf %586, %591 : vector<16x128xf32>
    %593 = vector.extract_strided_slice %3 {offsets = [3, 0, 0], sizes = [1, 16, 128], strides = [1, 1, 1]} : vector<4x16x128xf32> to vector<1x16x128xf32>
    %594 = vector.shape_cast %593 : vector<1x16x128xf32> to vector<16x128xf32>
    %c0_433 = arith.constant 0 : index
    %c3_434 = arith.constant 3 : index
    %c0_435 = arith.constant 0 : index
    %c22_436 = arith.constant 22 : index
    %595 = vector.load %arg3[%c0_433, %c3_434, %c0_435, %c22_436] : memref<1x4x16x154xf32, #tpu.memory_space<vmem>>, vector<1x1x16x128xf32>
    %596 = vector.shape_cast %595 : vector<1x1x16x128xf32> to vector<16x128xf32>
    %597 = arith.mulf %594, %596 : vector<16x128xf32>
    %598 = arith.addf %592, %597 : vector<16x128xf32>
    %c0_437 = arith.constant 0 : index
    %c22_438 = arith.constant 22 : index
    %c0_439 = arith.constant 0 : index
    %c0_440 = arith.constant 0 : index
    %599 = vector.load %arg4[%c0_437, %c22_438, %c0_439, %c0_440] : memref<1x27x16x128xf32, #tpu.memory_space<vmem>>, vector<1x1x16x128xf32>
    %600 = vector.shape_cast %599 : vector<1x1x16x128xf32> to vector<16x128xf32>
    %601 = vector.shape_cast %598 : vector<16x128xf32> to vector<1x1x16x128xf32>
    tpu.vector_store %arg4[%c0_437, %c22_438, %c0_439, %c0_440], %601 {strides = array<i32>} : memref<1x27x16x128xf32, #tpu.memory_space<vmem>>, vector<1x1x16x128xf32>,
    %602 = vector.extract_strided_slice %3 {offsets = [0, 0, 0], sizes = [1, 16, 128], strides = [1, 1, 1]} : vector<4x16x128xf32> to vector<1x16x128xf32>
    %603 = vector.shape_cast %602 : vector<1x16x128xf32> to vector<16x128xf32>
    %c0_441 = arith.constant 0 : index
    %c0_442 = arith.constant 0 : index
    %c0_443 = arith.constant 0 : index
    %c23 = arith.constant 23 : index
    %604 = vector.load %arg3[%c0_441, %c0_442, %c0_443, %c23] : memref<1x4x16x154xf32, #tpu.memory_space<vmem>>, vector<1x1x16x128xf32>
    %605 = vector.shape_cast %604 : vector<1x1x16x128xf32> to vector<16x128xf32>
    %606 = arith.mulf %603, %605 : vector<16x128xf32>
    %607 = vector.extract_strided_slice %3 {offsets = [1, 0, 0], sizes = [1, 16, 128], strides = [1, 1, 1]} : vector<4x16x128xf32> to vector<1x16x128xf32>
    %608 = vector.shape_cast %607 : vector<1x16x128xf32> to vector<16x128xf32>
    %c0_444 = arith.constant 0 : index
    %c1_445 = arith.constant 1 : index
    %c0_446 = arith.constant 0 : index
    %c23_447 = arith.constant 23 : index
    %609 = vector.load %arg3[%c0_444, %c1_445, %c0_446, %c23_447] : memref<1x4x16x154xf32, #tpu.memory_space<vmem>>, vector<1x1x16x128xf32>
    %610 = vector.shape_cast %609 : vector<1x1x16x128xf32> to vector<16x128xf32>
    %611 = arith.mulf %608, %610 : vector<16x128xf32>
    %612 = arith.addf %606, %611 : vector<16x128xf32>
    %613 = vector.extract_strided_slice %3 {offsets = [2, 0, 0], sizes = [1, 16, 128], strides = [1, 1, 1]} : vector<4x16x128xf32> to vector<1x16x128xf32>
    %614 = vector.shape_cast %613 : vector<1x16x128xf32> to vector<16x128xf32>
    %c0_448 = arith.constant 0 : index
    %c2_449 = arith.constant 2 : index
    %c0_450 = arith.constant 0 : index
    %c23_451 = arith.constant 23 : index
    %615 = vector.load %arg3[%c0_448, %c2_449, %c0_450, %c23_451] : memref<1x4x16x154xf32, #tpu.memory_space<vmem>>, vector<1x1x16x128xf32>
    %616 = vector.shape_cast %615 : vector<1x1x16x128xf32> to vector<16x128xf32>
    %617 = arith.mulf %614, %616 : vector<16x128xf32>
    %618 = arith.addf %612, %617 : vector<16x128xf32>
    %619 = vector.extract_strided_slice %3 {offsets = [3, 0, 0], sizes = [1, 16, 128], strides = [1, 1, 1]} : vector<4x16x128xf32> to vector<1x16x128xf32>
    %620 = vector.shape_cast %619 : vector<1x16x128xf32> to vector<16x128xf32>
    %c0_452 = arith.constant 0 : index
    %c3_453 = arith.constant 3 : index
    %c0_454 = arith.constant 0 : index
    %c23_455 = arith.constant 23 : index
    %621 = vector.load %arg3[%c0_452, %c3_453, %c0_454, %c23_455] : memref<1x4x16x154xf32, #tpu.memory_space<vmem>>, vector<1x1x16x128xf32>
    %622 = vector.shape_cast %621 : vector<1x1x16x128xf32> to vector<16x128xf32>
    %623 = arith.mulf %620, %622 : vector<16x128xf32>
    %624 = arith.addf %618, %623 : vector<16x128xf32>
    %c0_456 = arith.constant 0 : index
    %c23_457 = arith.constant 23 : index
    %c0_458 = arith.constant 0 : index
    %c0_459 = arith.constant 0 : index
    %625 = vector.load %arg4[%c0_456, %c23_457, %c0_458, %c0_459] : memref<1x27x16x128xf32, #tpu.memory_space<vmem>>, vector<1x1x16x128xf32>
    %626 = vector.shape_cast %625 : vector<1x1x16x128xf32> to vector<16x128xf32>
    %627 = vector.shape_cast %624 : vector<16x128xf32> to vector<1x1x16x128xf32>
    tpu.vector_store %arg4[%c0_456, %c23_457, %c0_458, %c0_459], %627 {strides = array<i32>} : memref<1x27x16x128xf32, #tpu.memory_space<vmem>>, vector<1x1x16x128xf32>,
    %628 = vector.extract_strided_slice %3 {offsets = [0, 0, 0], sizes = [1, 16, 128], strides = [1, 1, 1]} : vector<4x16x128xf32> to vector<1x16x128xf32>
    %629 = vector.shape_cast %628 : vector<1x16x128xf32> to vector<16x128xf32>
    %c0_460 = arith.constant 0 : index
    %c0_461 = arith.constant 0 : index
    %c0_462 = arith.constant 0 : index
    %c24 = arith.constant 24 : index
    %630 = vector.load %arg3[%c0_460, %c0_461, %c0_462, %c24] : memref<1x4x16x154xf32, #tpu.memory_space<vmem>>, vector<1x1x16x128xf32>
    %631 = vector.shape_cast %630 : vector<1x1x16x128xf32> to vector<16x128xf32>
    %632 = arith.mulf %629, %631 : vector<16x128xf32>
    %633 = vector.extract_strided_slice %3 {offsets = [1, 0, 0], sizes = [1, 16, 128], strides = [1, 1, 1]} : vector<4x16x128xf32> to vector<1x16x128xf32>
    %634 = vector.shape_cast %633 : vector<1x16x128xf32> to vector<16x128xf32>
    %c0_463 = arith.constant 0 : index
    %c1_464 = arith.constant 1 : index
    %c0_465 = arith.constant 0 : index
    %c24_466 = arith.constant 24 : index
    %635 = vector.load %arg3[%c0_463, %c1_464, %c0_465, %c24_466] : memref<1x4x16x154xf32, #tpu.memory_space<vmem>>, vector<1x1x16x128xf32>
    %636 = vector.shape_cast %635 : vector<1x1x16x128xf32> to vector<16x128xf32>
    %637 = arith.mulf %634, %636 : vector<16x128xf32>
    %638 = arith.addf %632, %637 : vector<16x128xf32>
    %639 = vector.extract_strided_slice %3 {offsets = [2, 0, 0], sizes = [1, 16, 128], strides = [1, 1, 1]} : vector<4x16x128xf32> to vector<1x16x128xf32>
    %640 = vector.shape_cast %639 : vector<1x16x128xf32> to vector<16x128xf32>
    %c0_467 = arith.constant 0 : index
    %c2_468 = arith.constant 2 : index
    %c0_469 = arith.constant 0 : index
    %c24_470 = arith.constant 24 : index
    %641 = vector.load %arg3[%c0_467, %c2_468, %c0_469, %c24_470] : memref<1x4x16x154xf32, #tpu.memory_space<vmem>>, vector<1x1x16x128xf32>
    %642 = vector.shape_cast %641 : vector<1x1x16x128xf32> to vector<16x128xf32>
    %643 = arith.mulf %640, %642 : vector<16x128xf32>
    %644 = arith.addf %638, %643 : vector<16x128xf32>
    %645 = vector.extract_strided_slice %3 {offsets = [3, 0, 0], sizes = [1, 16, 128], strides = [1, 1, 1]} : vector<4x16x128xf32> to vector<1x16x128xf32>
    %646 = vector.shape_cast %645 : vector<1x16x128xf32> to vector<16x128xf32>
    %c0_471 = arith.constant 0 : index
    %c3_472 = arith.constant 3 : index
    %c0_473 = arith.constant 0 : index
    %c24_474 = arith.constant 24 : index
    %647 = vector.load %arg3[%c0_471, %c3_472, %c0_473, %c24_474] : memref<1x4x16x154xf32, #tpu.memory_space<vmem>>, vector<1x1x16x128xf32>
    %648 = vector.shape_cast %647 : vector<1x1x16x128xf32> to vector<16x128xf32>
    %649 = arith.mulf %646, %648 : vector<16x128xf32>
    %650 = arith.addf %644, %649 : vector<16x128xf32>
    %c0_475 = arith.constant 0 : index
    %c24_476 = arith.constant 24 : index
    %c0_477 = arith.constant 0 : index
    %c0_478 = arith.constant 0 : index
    %651 = vector.load %arg4[%c0_475, %c24_476, %c0_477, %c0_478] : memref<1x27x16x128xf32, #tpu.memory_space<vmem>>, vector<1x1x16x128xf32>
    %652 = vector.shape_cast %651 : vector<1x1x16x128xf32> to vector<16x128xf32>
    %653 = vector.shape_cast %650 : vector<16x128xf32> to vector<1x1x16x128xf32>
    tpu.vector_store %arg4[%c0_475, %c24_476, %c0_477, %c0_478], %653 {strides = array<i32>} : memref<1x27x16x128xf32, #tpu.memory_space<vmem>>, vector<1x1x16x128xf32>,
    %654 = vector.extract_strided_slice %3 {offsets = [0, 0, 0], sizes = [1, 16, 128], strides = [1, 1, 1]} : vector<4x16x128xf32> to vector<1x16x128xf32>
    %655 = vector.shape_cast %654 : vector<1x16x128xf32> to vector<16x128xf32>
    %c0_479 = arith.constant 0 : index
    %c0_480 = arith.constant 0 : index
    %c0_481 = arith.constant 0 : index
    %c25 = arith.constant 25 : index
    %656 = vector.load %arg3[%c0_479, %c0_480, %c0_481, %c25] : memref<1x4x16x154xf32, #tpu.memory_space<vmem>>, vector<1x1x16x128xf32>
    %657 = vector.shape_cast %656 : vector<1x1x16x128xf32> to vector<16x128xf32>
    %658 = arith.mulf %655, %657 : vector<16x128xf32>
    %659 = vector.extract_strided_slice %3 {offsets = [1, 0, 0], sizes = [1, 16, 128], strides = [1, 1, 1]} : vector<4x16x128xf32> to vector<1x16x128xf32>
    %660 = vector.shape_cast %659 : vector<1x16x128xf32> to vector<16x128xf32>
    %c0_482 = arith.constant 0 : index
    %c1_483 = arith.constant 1 : index
    %c0_484 = arith.constant 0 : index
    %c25_485 = arith.constant 25 : index
    %661 = vector.load %arg3[%c0_482, %c1_483, %c0_484, %c25_485] : memref<1x4x16x154xf32, #tpu.memory_space<vmem>>, vector<1x1x16x128xf32>
    %662 = vector.shape_cast %661 : vector<1x1x16x128xf32> to vector<16x128xf32>
    %663 = arith.mulf %660, %662 : vector<16x128xf32>
    %664 = arith.addf %658, %663 : vector<16x128xf32>
    %665 = vector.extract_strided_slice %3 {offsets = [2, 0, 0], sizes = [1, 16, 128], strides = [1, 1, 1]} : vector<4x16x128xf32> to vector<1x16x128xf32>
    %666 = vector.shape_cast %665 : vector<1x16x128xf32> to vector<16x128xf32>
    %c0_486 = arith.constant 0 : index
    %c2_487 = arith.constant 2 : index
    %c0_488 = arith.constant 0 : index
    %c25_489 = arith.constant 25 : index
    %667 = vector.load %arg3[%c0_486, %c2_487, %c0_488, %c25_489] : memref<1x4x16x154xf32, #tpu.memory_space<vmem>>, vector<1x1x16x128xf32>
    %668 = vector.shape_cast %667 : vector<1x1x16x128xf32> to vector<16x128xf32>
    %669 = arith.mulf %666, %668 : vector<16x128xf32>
    %670 = arith.addf %664, %669 : vector<16x128xf32>
    %671 = vector.extract_strided_slice %3 {offsets = [3, 0, 0], sizes = [1, 16, 128], strides = [1, 1, 1]} : vector<4x16x128xf32> to vector<1x16x128xf32>
    %672 = vector.shape_cast %671 : vector<1x16x128xf32> to vector<16x128xf32>
    %c0_490 = arith.constant 0 : index
    %c3_491 = arith.constant 3 : index
    %c0_492 = arith.constant 0 : index
    %c25_493 = arith.constant 25 : index
    %673 = vector.load %arg3[%c0_490, %c3_491, %c0_492, %c25_493] : memref<1x4x16x154xf32, #tpu.memory_space<vmem>>, vector<1x1x16x128xf32>
    %674 = vector.shape_cast %673 : vector<1x1x16x128xf32> to vector<16x128xf32>
    %675 = arith.mulf %672, %674 : vector<16x128xf32>
    %676 = arith.addf %670, %675 : vector<16x128xf32>
    %c0_494 = arith.constant 0 : index
    %c25_495 = arith.constant 25 : index
    %c0_496 = arith.constant 0 : index
    %c0_497 = arith.constant 0 : index
    %677 = vector.load %arg4[%c0_494, %c25_495, %c0_496, %c0_497] : memref<1x27x16x128xf32, #tpu.memory_space<vmem>>, vector<1x1x16x128xf32>
    %678 = vector.shape_cast %677 : vector<1x1x16x128xf32> to vector<16x128xf32>
    %679 = vector.shape_cast %676 : vector<16x128xf32> to vector<1x1x16x128xf32>
    tpu.vector_store %arg4[%c0_494, %c25_495, %c0_496, %c0_497], %679 {strides = array<i32>} : memref<1x27x16x128xf32, #tpu.memory_space<vmem>>, vector<1x1x16x128xf32>,
    %680 = vector.extract_strided_slice %3 {offsets = [0, 0, 0], sizes = [1, 16, 128], strides = [1, 1, 1]} : vector<4x16x128xf32> to vector<1x16x128xf32>
    %681 = vector.shape_cast %680 : vector<1x16x128xf32> to vector<16x128xf32>
    %c0_498 = arith.constant 0 : index
    %c0_499 = arith.constant 0 : index
    %c0_500 = arith.constant 0 : index
    %c26 = arith.constant 26 : index
    %682 = vector.load %arg3[%c0_498, %c0_499, %c0_500, %c26] : memref<1x4x16x154xf32, #tpu.memory_space<vmem>>, vector<1x1x16x128xf32>
    %683 = vector.shape_cast %682 : vector<1x1x16x128xf32> to vector<16x128xf32>
    %684 = arith.mulf %681, %683 : vector<16x128xf32>
    %685 = vector.extract_strided_slice %3 {offsets = [1, 0, 0], sizes = [1, 16, 128], strides = [1, 1, 1]} : vector<4x16x128xf32> to vector<1x16x128xf32>
    %686 = vector.shape_cast %685 : vector<1x16x128xf32> to vector<16x128xf32>
    %c0_501 = arith.constant 0 : index
    %c1_502 = arith.constant 1 : index
    %c0_503 = arith.constant 0 : index
    %c26_504 = arith.constant 26 : index
    %687 = vector.load %arg3[%c0_501, %c1_502, %c0_503, %c26_504] : memref<1x4x16x154xf32, #tpu.memory_space<vmem>>, vector<1x1x16x128xf32>
    %688 = vector.shape_cast %687 : vector<1x1x16x128xf32> to vector<16x128xf32>
    %689 = arith.mulf %686, %688 : vector<16x128xf32>
    %690 = arith.addf %684, %689 : vector<16x128xf32>
    %691 = vector.extract_strided_slice %3 {offsets = [2, 0, 0], sizes = [1, 16, 128], strides = [1, 1, 1]} : vector<4x16x128xf32> to vector<1x16x128xf32>
    %692 = vector.shape_cast %691 : vector<1x16x128xf32> to vector<16x128xf32>
    %c0_505 = arith.constant 0 : index
    %c2_506 = arith.constant 2 : index
    %c0_507 = arith.constant 0 : index
    %c26_508 = arith.constant 26 : index
    %693 = vector.load %arg3[%c0_505, %c2_506, %c0_507, %c26_508] : memref<1x4x16x154xf32, #tpu.memory_space<vmem>>, vector<1x1x16x128xf32>
    %694 = vector.shape_cast %693 : vector<1x1x16x128xf32> to vector<16x128xf32>
    %695 = arith.mulf %692, %694 : vector<16x128xf32>
    %696 = arith.addf %690, %695 : vector<16x128xf32>
    %697 = vector.extract_strided_slice %3 {offsets = [3, 0, 0], sizes = [1, 16, 128], strides = [1, 1, 1]} : vector<4x16x128xf32> to vector<1x16x128xf32>
    %698 = vector.shape_cast %697 : vector<1x16x128xf32> to vector<16x128xf32>
    %c0_509 = arith.constant 0 : index
    %c3_510 = arith.constant 3 : index
    %c0_511 = arith.constant 0 : index
    %c26_512 = arith.constant 26 : index
    %699 = vector.load %arg3[%c0_509, %c3_510, %c0_511, %c26_512] : memref<1x4x16x154xf32, #tpu.memory_space<vmem>>, vector<1x1x16x128xf32>
    %700 = vector.shape_cast %699 : vector<1x1x16x128xf32> to vector<16x128xf32>
    %701 = arith.mulf %698, %700 : vector<16x128xf32>
    %702 = arith.addf %696, %701 : vector<16x128xf32>
    %c0_513 = arith.constant 0 : index
    %c26_514 = arith.constant 26 : index
    %c0_515 = arith.constant 0 : index
    %c0_516 = arith.constant 0 : index
    %703 = vector.load %arg4[%c0_513, %c26_514, %c0_515, %c0_516] : memref<1x27x16x128xf32, #tpu.memory_space<vmem>>, vector<1x1x16x128xf32>
    %704 = vector.shape_cast %703 : vector<1x1x16x128xf32> to vector<16x128xf32>
    %705 = vector.shape_cast %702 : vector<16x128xf32> to vector<1x1x16x128xf32>
    tpu.vector_store %arg4[%c0_513, %c26_514, %c0_515, %c0_516], %705 {strides = array<i32>} : memref<1x27x16x128xf32, #tpu.memory_space<vmem>>, vector<1x1x16x128xf32>,
    return
  }
  func.func @transform_0(%arg0: i32, %arg1: i32) -> (i32, i32, i32, i32) {
    %c0_i32 = arith.constant 0 : i32
    %c0_i32_0 = arith.constant 0 : i32
    %c0_i32_1 = arith.constant 0 : i32
    return %arg0, %c0_i32, %arg1, %c0_i32_0 : i32, i32, i32, i32
  }
  func.func @transform_1(%arg0: i32, %arg1: i32) -> (i32, i32, i32, i32) {
    %c0_i32 = arith.constant 0 : i32
    %c0_i32_0 = arith.constant 0 : i32
    %c0_i32_1 = arith.constant 0 : i32
    return %arg0, %c0_i32, %arg1, %c0_i32_0 : i32, i32, i32, i32
  }
  func.func @transform_2(%arg0: i32, %arg1: i32) -> (i32, i32, i32, i32) {
    %c0_i32 = arith.constant 0 : i32
    %c0_i32_0 = arith.constant 0 : i32
    %c0_i32_1 = arith.constant 0 : i32
    return %arg0, %c0_i32, %arg1, %c0_i32_0 : i32, i32, i32, i32
  }
}

</mosaic_0001>

<bundles_post_ra>
// kernel: corr1d_x_forward.2
= control target key start
LH: loop header
LB: loop body
LE: loop exit
PB: predicated region body
PF: predicated region fallthrough
CT: control target
= control target key end

     0   :  { %s5339_s0 = inlined_call_operand.hbm [shape: f32[2,4,16,32], index: 0, kind: input, shape index: {}]   ;;  %s5340_s1 = inlined_call_operand.<no memory space> [shape: f32[], index: 1, kind: input, shape index: {}]   ;;  %s5341_s2 = inlined_call_operand.hbm [shape: f32[2,4,16,32], index: 2, kind: input, shape index: {}]   ;;  %s5342_s3 = inlined_call_operand.hbm [shape: f32[2,27,16,128], index: 3, kind: output, shape index: {}]  }
   0x1   :  { %v3644_v0 = vstv %s5340_s1 }
   0x2   :  { %10 = vsyncpa [#allocation13], 0 }
   0x3   :  { %12 = vsyncpa [#allocation13 + $0x1], 0 }
   0x4   :  { %13 = vsyncpa [#allocation16], 0 }
   0x5   :  { %15 = vsyncpa [#allocation16 + $0x1], 0 }
   0x6   :  { %16 = vsyncpa [#allocation14], 0 }
   0x7   :  { %18 = vsyncpa [#allocation14 + $0x1], 0  ;;  %s3646_s14 = smov 0   ;;  %s3648_s15 = smov 0  }
   0x8   :  { %s3650_s16 = smov 0   ;;  %s3652_s17 = smov 0  }
   0x9   :  { %s3654_s18 = smov 0   ;;  %s3656_s19 = smov 0  }
   0xa LB: > { %s3255_s1 = sadd.s32 4294967295, %s3585_s19   ;;  %s3256_s20 = sadd.s32 4294967294, %s3585_s19   ;;  %s3585_s19 = sphi %s3656_s19, %s24_s19   ;;  %s3581_s18 = sphi %s3654_s18, %s5360_s18   ;;  %s3577_s17 = sphi %s3652_s17, %s5359_s17   ;;  %s3573_s16 = sphi %s3650_s16, %s5358_s16   ;;  %s3569_s15 = sphi %s3648_s15, %s5357_s15   ;;  %s3565_s14 = sphi %s3646_s14, %s5356_s14  }
   0xb   : > { %s36_s21 = sadd.s32 1, %s3581_s18  ;;  %s45_s22 = sadd.s32 1, %s3573_s16 }
   0xc   : > { %p38_p0 = scmp.ge.s32.totalorder %s36_s21, 2  ;;  %p52_p1 = scmp.ne.s32.totalorder %s3573_s16, %s3569_s15 }
   0xd   : > { %p53_p2 = scmp.eq.s32.totalorder %s3585_s19, 0  ;;  %p58_p3 = scmp.ne.s32.totalorder %s3569_s15, %s3565_s14 }
   0xe   : > { %s5362_s21 = smov (%p38_p0, %s36_s21), 0  ;;  %p59_p5 = scmp.eq.s32.totalorder %s3255_s1, 0 }
   0xf   : > { %p3687_p4 = por %p53_p2, %p52_p1  ;;  %s40_s24 = ssub.s32 %s3581_s18, %s5362_s21 }
  0x10   : > { %p116_p6 = scmp.eq.s32.totalorder %s3255_s1, 1  ;;  %p43_p7 = scmp.eq.s32.totalorder %s40_s24, 0 }
  0x11   : > { %p3693_p8 = por %p59_p5, %p58_p3  ;;  %p122_p10 = scmp.eq.s32.totalorder %s3256_s20, 1 }
  0x12   : > { %p3697_p9 = por %p116_p6, %p52_p1  ;;  %p3358_p13 = scmp.lt.s32.totalorder %s3585_s19, 2 }
  0x13   : > { %s5346_s25 = scalar_select %p3693_p8, 1, 0 }
  0x14   : > { %s5347_s26 = scalar_select %p3697_p9, 1, 0 }
  0x15   : > { %s3702_s27 = scalar_select %p43_p7, %s3573_s16, %s45_s22  }
  0x16   : > { %p3704_p11 = por %p122_p10, %p58_p3  ;;  %s3711_s29 = sand.u32 1, %s3573_s16  }
  0x17   : > { %s3259_s30 = sshll.u32 %s3711_s29, 6  ;;  %s3337_s4 = sshll.u32 %s3581_s18, 10 }
  0x18   : > { %s5348_s28 = scalar_select %p3704_p11, 1, 0 }
  0x19   : > { %s3720_s7 = scalar_lea.hbm %s5341_s2, %s3337_s4  ;;  %s146_s8 = scalar_lea.vmem [#allocation12], %s3259_s30 }
  0x1a   : > { %s155_s9 = sshll.u32 %s146_s8, 4  ;;  %p3728_p0 = pnand %p3358_p13, %p3687_p4  ;;  %s3724_s9 = int_to_ptr.vmem [resolvable:$true] %s155_s9 }
  0x1b   : > { %s143_s11 = scalar_lea.sflag [#allocation13], %s3711_s29  ;;  %s3439_s12 = scalar_lea.hbm %s3720_s7, 1024 }
  0x1c   : > { %p3440_p2 = scmp.ne.s32.totalorder %s3720_s7, %s3439_s12  ;;  %p3441_p3 = pneg %p3728_p0 }
  0x1d   : > { %s3444_s20 = scalar_lea.hbm %s5341_s2, 2048  ;;  %p3445_p4 = scmp.lt.u32.totalorder %s3720_s7, %s5341_s2 }
  0x1e   : > { %p3442_p5 = pnand %p3441_p3, %p3440_p2  ;;  %p3446_p7 = scmp.lt.u32.totalorder %s3444_s20, %s3439_s12 }
  0x1f   : > { %p3448_p13 = scmp.lt.u32.totalorder %s3439_s12, %s3720_s7 }
  0x20   : > { %p3443_p6 = pneg %p3442_p5  ;;  %p3447_p10 = por %p3446_p7, %p3445_p4 }
  0x22   : > { %p3449_p12 = por %p3448_p13, %p3447_p10 }
  0x24   : > { %p3450_p1 = pnand %p3449_p12, %p3443_p6 }
  0x26   : > { %3453 = shalt.err (!%p3450_p1)
}
  0x27   : > { %s3454_s24 = scalar_lea.vmem %s3724_s9, 1024  ;;  %s3587_s5 = smov [#allocation12]  }
  0x28   : > { %p3455_p2 = scmp.ne.s32.totalorder %s3724_s9, %s3454_s24  ;;  %s3459_s6 = sshll.u32 %s3587_s5, 4  ;;  %s3460_s6 = int_to_ptr.vmem [resolvable:$false] %s3459_s6 }
  0x29   : > { %s3461_s8 = scalar_lea.vmem %s3460_s6, 2048  ;;  %p3462_p9 = scmp.lt.s32.totalorder %s3724_s9, %s3460_s6 }
  0x2a   : > { %p3457_p5 = pnand %p3455_p2, %p3441_p3  ;;  %p3463_p4 = scmp.lt.s32.totalorder %s3461_s8, %s3454_s24 }
  0x2c   : > { %p3458_p11 = pneg %p3457_p5  ;;  %p3464_p7 = por %p3463_p4, %p3462_p9 }
  0x2e   : > { %p3465_p10 = pnand %p3464_p7, %p3458_p11 }
  0x30   : > { %3468 = shalt.err (!%p3465_p10)
}
  0x31   : > { %s3588_s12 = smov 128   ;;  %s3589_s13 = smov 8  }
  0x32   : > { %3350 = dma.hbm_to_vmem [thread:$0]  (!%p3728_p0), %s3720_s7, 1024, %s3724_s9, %s143_s11, %s3588_s12, %s3588_s12, %s3589_s13  }
  0x33   : > { %p193_p9 = scmp.lt.s32.totalorder %s3585_s19, 3  ;;  %s3770_s22 = scalar_lea.hbm %s5339_s0, %s3337_s4 }
  0x34   : > { %p5350_p11 = scmp.ge.s32.totalorder %s3585_s19, 1  ;;  %s169_s24 = scalar_lea.vmem [#allocation15], %s3259_s30 }
  0x35   : > { %s185_s5 = sshll.u32 %s169_s24, 4  ;;  %s166_s7 = scalar_lea.sflag [#allocation16], %s3711_s29  ;;  %s3780_s5 = int_to_ptr.vmem [resolvable:$true] %s185_s5 }
  0x36   : > { %p3774_p12 = pnand %p5350_p11, %p193_p9  ;;  %s3469_s9 = scalar_lea.hbm %s3770_s22, 1024 }
  0x37   : > { %p3470_p1 = scmp.ne.s32.totalorder %s3770_s22, %s3469_s9  ;;  %s3474_s6 = scalar_lea.hbm %s5339_s0, 2048 }
  0x38   : > { %p3475_p2 = scmp.lt.u32.totalorder %s3770_s22, %s5339_s0  ;;  %p3476_p5 = scmp.lt.u32.totalorder %s3474_s6, %s3469_s9 }
  0x39   : > { %p3472_p6 = pnand %p3470_p1, %p3441_p3  ;;  %p3478_p7 = scmp.lt.u32.totalorder %s3469_s9, %s3770_s22 }
  0x3a   : > { %p3477_p4 = por %p3476_p5, %p3475_p2 }
  0x3b   : > { %p3473_p13 = pneg %p3472_p6 }
  0x3c   : > { %p3479_p10 = por %p3478_p7, %p3477_p4 }
  0x3e   : > { %p3480_p9 = pnand %p3479_p10, %p3473_p13 }
  0x40   : > { %3483 = shalt.err (!%p3480_p9)
}
  0x41   : > { %s3484_s30 = scalar_lea.vmem %s3780_s5, 1024  ;;  %s3590_s20 = smov [#allocation15]  }
  0x42   : > { %p3485_p11 = scmp.ne.s32.totalorder %s3780_s5, %s3484_s30  ;;  %s3489_s24 = sshll.u32 %s3590_s20, 4  ;;  %s3490_s24 = int_to_ptr.vmem [resolvable:$false] %s3489_s24 }
  0x43   : > { %s3491_s4 = scalar_lea.vmem %s3490_s24, 2048  ;;  %p3492_p8 = scmp.lt.s32.totalorder %s3780_s5, %s3490_s24 }
  0x44   : > { %p3487_p1 = pnand %p3485_p11, %p3441_p3  ;;  %p3493_p2 = scmp.lt.s32.totalorder %s3491_s4, %s3484_s30 }
  0x46   : > { %p3488_p6 = pneg %p3487_p1  ;;  %p3494_p5 = por %p3493_p2, %p3492_p8 }
  0x48   : > { %p3495_p4 = pnand %p3494_p5, %p3488_p6 }
  0x4a   : > { %3498 = shalt.err (!%p3495_p4)
}
  0x4b   : > { %3353 = dma.hbm_to_vmem [thread:$0]  (!%p3728_p0), %s3770_s22, 1024, %s3780_s5, %s166_s7, %s3588_s12, %s3588_s12, %s3589_s13  }
  0x4c   : > { %197 = sbr.rel (%p3774_p12) target bundleno = 1177 (0x499), region = 28  ;;  %s3814_s9 = sand.u32 (!%p3774_p12), 1, %s3569_s15  }
  0x4d   : > { %s3266_s11 = sshll.u32 (!%p3774_p12), %s3814_s9, 6  ;;  %s200_s6 = scalar_lea.sflag (!%p3774_p12), [#allocation13], %s3814_s9 }
  0x4e   : > { %s3818_s10 = scalar_lea.vmem (!%p3774_p12), [#allocation12], %s3266_s11  ;;  %p5352_p8 = scmp.ne.s32.totalorder (!%p3774_p12), %s5346_s25, 0 }
  0x53   : > { %3552 = dma.done.wait (%p5352_p8), %s200_s6, 1024  }
  0x54   : > { %3554 = vsyncadd (%p5352_p8), %s200_s6, 4294966272  ;;  %s209_s29 = scalar_lea.sflag [#allocation16], %s3814_s9  ;;  %s3825_s12 = scalar_lea.vmem [#allocation15], %s3266_s11 }
  0x55   : > { %3556 = dma.done.wait (%p5352_p8), %s209_s29, 1024  }
  0x56   : > { %3558 = vsyncadd (%p5352_p8), %s209_s29, 4294966272  ;;  %v245_v1 = vlaneseq  ;;  %v322_v4 = vld [vmem:[%s3825_s12] sm:$0xff]  ;;  %v3275_v5 = vld [vmem:[%s3825_s12 + $0x8] sm:$0xff]  ;;  %s3591_s25 = smov 23   ;;  %s3592_s13 = smov 127   ;;  %vm594_vm3 = vcmask 1039360  }
  0x57   : > { %v3276_v10 = vld [vmem:[%s3825_s12 + $0x10] sm:$0xff]  ;;  %v3277_v14 = vld [vmem:[%s3825_s12 + $0x18] sm:$0xff]  ;;  %v3278_v18 = vld [vmem:[%s3825_s12 + $0x20] sm:$0xff]  ;;  %s3339_s22 = smul.u32 432, %s3814_s9  ;;  %s3593_s5 = smov 126   ;;  %vm692_vm4 = vcmask 1031168  }
  0x58   : > { %v3831_v2 = vand.u32 127, %v245_v1  ;;  %v3279_v22 = vld [vmem:[%s3825_s12 + $0x28] sm:$0xff]  ;;  %v3280_v26 = vld [vmem:[%s3825_s12 + $0x30] sm:$0xff]  ;;  %v3281_v30 = vld [vmem:[%s3825_s12 + $0x38] sm:$0xff]  ;;  %s3594_s7 = smov 125   ;;  %s3595_s8 = smov 124  }
  0x59   : > { %v3269_v42 = vld [vmem:[%s3818_s10 + $0x10] sm:$0xff]  ;;  %v244_v43 = vld [vmem:[%s3818_s10] sm:$0xff]  ;;  %v3270_v48 = vld [vmem:[%s3818_s10 + $0x18] sm:$0xff]  ;;  %s4043_s23 = scalar_lea.vmem [#allocation17], %s3339_s22  ;;  %s3596_s1 = smov 123   ;;  %vm790_vm5 = vcmask 1022976  }
  0x5a   : > { %v326_v3 = vadd.s32 128, %v3831_v2  ;;  %vm331_vm1 = vcmp.lt.s32.totalorder %v3831_v2, 105  ;;  %vm248_vm2 = vcmp.lt.s32.totalorder %v3831_v2, 32  ;;  %v3271_v44 = vld [vmem:[%s3818_s10 + $0x20] sm:$0xff]  ;;  %v3268_v50 = vld [vmem:[%s3818_s10 + $0x8] sm:$0xff]  ;;  %v3273_v54 = vld [vmem:[%s3818_s10 + $0x30] sm:$0xff] }
  0x5b   : > { %v268_v45 = vsel %vm248_vm2, %v3269_v42, %v3644_v0  ;;  %v249_v49 = vsel %vm248_vm2, %v244_v43, %v3644_v0  ;;  %v288_v51 = vsel %vm248_vm2, %v3271_v44, %v3644_v0  ;;  %v3272_v53 = vld [vmem:[%s3818_s10 + $0x28] sm:$0xff]  ;;  %v278_v55 = vsel %vm248_vm2, %v3270_v48, %v3644_v0  ;;  %s3597_s30 = smov 122   ;;  %s3598_s20 = smov 121  }
  0x5c   : > { %vm327_vm0 = vcmp.lt.s32.totalorder %v326_v3, 160  ;;  %v3968_v52 = vmul.f32 0.25, %v268_v45  ;;  %v3979_v58 = vmul.f32 0.25, %v249_v49  ;;  %v258_v59 = vsel %vm248_vm2, %v3268_v50, %v3644_v0  ;;  %v3274_v3 = vld [vmem:[%s3818_s10 + $0x38] sm:$0xff]  ;;  %s3599_s24 = smov 120   ;;  %s3600_s4 = smov 119  }
  0x5d   : > { %v328_v6 = vsel %vm327_vm0, %v322_v4, %v3644_v0  ;;  %v353_v7 = vsel %vm327_vm0, %v3275_v5, %v3644_v0  ;;  %v380_v13 = vsel %vm327_vm0, %v3276_v10, %v3644_v0  ;;  %v407_v17 = vsel %vm327_vm0, %v3277_v14, %v3644_v0  ;;  %s3601_s11 = smov 118   ;;  %s3602_s6 = smov 117  }
  0x5e   : > { %v332_v8 = vsel %vm331_vm1, %v328_v6, %v3644_v0  ;;  %v357_v9 = vsel %vm331_vm1, %v353_v7, %v3644_v0  ;;  %v340_v11 = vsel %vm331_vm1, %v3644_v0, %v328_v6  ;;  %v367_v12 = vsel %vm331_vm1, %v3644_v0, %v353_v7  ;;  %s3603_s10 = smov 116   ;;  %s3604_s29 = smov 115  }
  0x5f   : > { %333 = vrot.lane.b32.xlu0 %v332_v8, %s3591_s25  ;;  %358 = vrot.lane.b32.xlu1 %v357_v9, %s3591_s25  ;;  %v384_v15 = vsel %vm331_vm1, %v380_v13, %v3644_v0  ;;  %v394_v16 = vsel %vm331_vm1, %v3644_v0, %v380_v13  ;;  %v411_v19 = vsel %vm331_vm1, %v407_v17, %v3644_v0  ;;  %v3984_v60 = vmul.f32 0.25, %v288_v51  ;;  %s3605_s12 = smov 114   ;;  %s3608_s22 = smov 111  }
  0x60   : > { %v421_v20 = vsel %vm331_vm1, %v3644_v0, %v407_v17  ;;  %v434_v21 = vsel %vm327_vm0, %v3278_v18, %v3644_v0  ;;  %v461_v25 = vsel %vm327_vm0, %v3279_v22, %v3644_v0  ;;  %v488_v29 = vsel %vm327_vm0, %v3280_v26, %v3644_v0  ;;  %p5353_p3 = scmp.ne.s32.totalorder %s5347_s26, 0 }
  0x61   : > { %v438_v23 = vsel %vm331_vm1, %v434_v21, %v3644_v0  ;;  %v448_v24 = vsel %vm331_vm1, %v3644_v0, %v434_v21  ;;  %v465_v27 = vsel %vm331_vm1, %v461_v25, %v3644_v0  ;;  %v475_v28 = vsel %vm331_vm1, %v3644_v0, %v461_v25 }
  0x62   : > { %v492_v31 = vsel %vm331_vm1, %v488_v29, %v3644_v0  ;;  %v502_v32 = vsel %vm331_vm1, %v3644_v0, %v488_v29  ;;  %v515_v33 = vsel %vm327_vm0, %v3281_v30, %v3644_v0  ;;  %v298_v61 = vsel %vm248_vm2, %v3272_v53, %v3644_v0 }
  0x63   : > { %341 = vrot.lane.b32.xlu0 %v340_v11, %s3591_s25  ;;  %368 = vrot.lane.b32.xlu1 %v367_v12, %s3591_s25  ;;  %v519_v34 = vsel %vm331_vm1, %v515_v33, %v3644_v0  ;;  %v529_v35 = vsel %vm331_vm1, %v3644_v0, %v515_v33  ;;  %v308_v62 = vsel %vm248_vm2, %v3273_v54, %v3644_v0  ;;  %v3998_v1 = vmul.f32 0.25, %v278_v55 }
  0x64   : > { %v4001_v4 = vmul.f32 0.25, %v258_v59  ;;  %v4011_v9 = vmul.f32 0.25, %v298_v61  ;;  %v4017_v10 = vmul.f32 0.25, %v308_v62  ;;  %v318_v11 = vsel %vm248_vm2, %v3274_v3, %v3644_v0 }
  0x65   : > { %v4039_v2 = vmul.f32 0.25, %v318_v11  ;;  %vm888_vm6 = vcmask 1014784   ;;  %vm986_vm7 = vcmask 1006592   ;;  %vm1084_vm8 = vcmask 998400  }
  0x66   : > { %vm1182_vm9 = vcmask 990208   ;;  %vm1280_vm10 = vcmask 982016   ;;  %vm1378_vm11 = vcmask 973824   ;;  %vm1476_vm12 = vcmask 965632  }
  0x67   : > { %385 = vrot.lane.b32.xlu0 %v384_v15, %s3591_s25  ;;  %395 = vrot.lane.b32.xlu1 %v394_v16, %s3591_s25  ;;  %vm1574_vm13 = vcmask 957440   ;;  %vm1672_vm14 = vcmask 949248   ;;  %vm1770_vm15 = vcmask 941056   ;;  %vm1868_vm0 = vcmask 932864  }
  0x68   : > { %vm1966_vm1 = vcmask 924672   ;;  %vm2064_vm2 = vcmask 916480  }
  0x6b   : > { %412 = vrot.lane.b32.xlu0 %v411_v19, %s3591_s25  ;;  %422 = vrot.lane.b32.xlu1 %v421_v20, %s3591_s25 }
  0x6f   : > { %439 = vrot.lane.b32.xlu0 %v438_v23, %s3591_s25  ;;  %449 = vrot.lane.b32.xlu1 %v448_v24, %s3591_s25 }
  0x73   : > { %466 = vrot.lane.b32.xlu0 %v465_v27, %s3591_s25  ;;  %476 = vrot.lane.b32.xlu1 %v475_v28, %s3591_s25 }
  0x77   : > { %493 = vrot.lane.b32.xlu0 %v492_v31, %s3591_s25  ;;  %503 = vrot.lane.b32.xlu1 %v502_v32, %s3591_s25 }
  0x7b   : > { %520 = vrot.lane.b32.xlu0 %v519_v34, %s3591_s25  ;;  %530 = vrot.lane.b32.xlu1 %v529_v35, %s3591_s25  ;;  %s3606_s25 = smov 113  }
  0xd1   : > { %v3923_v36 = vpop.permute.xlu0 %333  ;;  %v3925_v37 = vpop.permute.xlu1 %358 }
  0xd2   : > { %586 = vrot.lane.b32.xlu0 %v3923_v36, %s3592_s13  ;;  %v553_v7 = vmul.f32 %v3979_v58, %v3923_v36  ;;  %v554_v14 = vmul.f32 %v4001_v4, %v3925_v37 }
  0xd5   : > { %v3929_v38 = vpop.permute.xlu0 %341  ;;  %v3931_v39 = vpop.permute.xlu1 %368 }
  0xd6   : > { %590 = vrot.lane.b32.xlu0 %v3925_v37, %s3592_s13  ;;  %588 = vrot.lane.b32.xlu1 %v3929_v38, %s3592_s13 }
  0xd9   : > { %v3937_v40 = vpop.permute.xlu0 %385  ;;  %v3939_v41 = vpop.permute.xlu1 %395 }
  0xda   : > { %592 = vrot.lane.b32.xlu1 %v3931_v39, %s3592_s13  ;;  %609 = vrot.lane.b32.xlu0 %v3937_v40, %s3592_s13  ;;  %v558_v63 = vmul.f32 %v3968_v52, %v3937_v40 }
  0xdc   : > { %v560_v12 = vadd.f32 %v558_v63, %v553_v7 }
  0xdd   : > { %v3952_v46 = vpop.permute.xlu0 %412  ;;  %v3954_v47 = vpop.permute.xlu1 %422 }
  0xde   : > { %611 = vrot.lane.b32.xlu1 %v3939_v41, %s3592_s13  ;;  %613 = vrot.lane.b32.xlu0 %v3952_v46, %s3592_s13  ;;  %v559_v13 = vmul.f32 %v3998_v1, %v3952_v46 }
  0xe0   : > { %v561_v20 = vadd.f32 %v559_v13, %v554_v14 }
  0xe1   : > { %v3975_v56 = vpop.permute.xlu0 %439  ;;  %v3977_v57 = vpop.permute.xlu1 %449 }
  0xe2   : > { %615 = vrot.lane.b32.xlu1 %v3954_v47, %s3592_s13  ;;  %633 = vrot.lane.b32.xlu0 %v3975_v56, %s3592_s13  ;;  %v565_v8 = vmul.f32 %v3984_v60, %v3975_v56 }
  0xe4   : > { %v567_v17 = vadd.f32 %v565_v8, %v560_v12 }
  0xe5   : > { %v4003_v5 = vpop.permute.xlu0 %466  ;;  %v4005_v6 = vpop.permute.xlu1 %476 }
  0xe6   : > { %635 = vrot.lane.b32.xlu1 %v3977_v57, %s3592_s13  ;;  %637 = vrot.lane.b32.xlu0 %v4003_v5, %s3592_s13  ;;  %v566_v18 = vmul.f32 %v4011_v9, %v4003_v5 }
  0xe8   : > { %v568_v23 = vadd.f32 %v566_v18, %v561_v20 }
  0xe9   : > { %v4027_v15 = vpop.permute.xlu0 %493  ;;  %v4029_v16 = vpop.permute.xlu1 %503 }
  0xea   : > { %v572_v19 = vmul.f32 %v4017_v10, %v4027_v15  ;;  %639 = vrot.lane.b32.xlu1 %v4005_v6, %s3592_s13  ;;  %657 = vrot.lane.b32.xlu0 %v4027_v15, %s3592_s13 }
  0xec   : > { %v574_v21 = vadd.f32 %v572_v19, %v567_v17 }
  0xed   : > { %v4041_v22 = vpop.permute.xlu0 %520  ;;  %v4052_v25 = vpop.permute.xlu1 %530 }
  0xee   : > { %576 = vst [vmem:[%s4043_s23] sm:$0xff] %v574_v21  ;;  %v573_v24 = vmul.f32 %v4039_v2, %v4041_v22  ;;  %659 = vrot.lane.b32.xlu1 %v4029_v16, %s3592_s13  ;;  %661 = vrot.lane.b32.xlu0 %v4041_v22, %s3592_s13 }
  0xf0   : > { %v575_v26 = vadd.f32 %v573_v24, %v568_v23 }
  0xf2   : > { %577 = vst [vmem:[%s4043_s23 + $0x8] sm:$0xff] %v575_v26  ;;  %663 = vrot.lane.b32.xlu1 %v4052_v25, %s3592_s13  ;;  %684 = vrot.lane.b32.xlu0 %v3923_v36, %s3593_s5  ;;  %s3607_s13 = smov 112  }
  0xf6   : > { %686 = vrot.lane.b32.xlu1 %v3929_v38, %s3593_s5  ;;  %688 = vrot.lane.b32.xlu0 %v3925_v37, %s3593_s5 }
  0xfa   : > { %690 = vrot.lane.b32.xlu1 %v3931_v39, %s3593_s5  ;;  %707 = vrot.lane.b32.xlu0 %v3937_v40, %s3593_s5 }
  0xfe   : > { %709 = vrot.lane.b32.xlu1 %v3939_v41, %s3593_s5  ;;  %711 = vrot.lane.b32.xlu0 %v3952_v46, %s3593_s5 }
 0x102   : > { %713 = vrot.lane.b32.xlu1 %v3954_v47, %s3593_s5  ;;  %731 = vrot.lane.b32.xlu0 %v3975_v56, %s3593_s5 }
 0x106   : > { %733 = vrot.lane.b32.xlu1 %v3977_v57, %s3593_s5  ;;  %735 = vrot.lane.b32.xlu0 %v4003_v5, %s3593_s5 }
 0x10a   : > { %737 = vrot.lane.b32.xlu1 %v4005_v6, %s3593_s5  ;;  %755 = vrot.lane.b32.xlu0 %v4027_v15, %s3593_s5 }
 0x10e   : > { %757 = vrot.lane.b32.xlu1 %v4029_v16, %s3593_s5  ;;  %759 = vrot.lane.b32.xlu0 %v4041_v22, %s3593_s5 }
 0x112   : > { %761 = vrot.lane.b32.xlu1 %v4052_v25, %s3593_s5  ;;  %782 = vrot.lane.b32.xlu0 %v3923_v36, %s3594_s7  ;;  %s3609_s5 = smov 110  }
 0x116   : > { %784 = vrot.lane.b32.xlu1 %v3929_v38, %s3594_s7  ;;  %786 = vrot.lane.b32.xlu0 %v3925_v37, %s3594_s7 }
 0x11a   : > { %788 = vrot.lane.b32.xlu1 %v3931_v39, %s3594_s7  ;;  %805 = vrot.lane.b32.xlu0 %v3937_v40, %s3594_s7 }
 0x11e   : > { %807 = vrot.lane.b32.xlu1 %v3939_v41, %s3594_s7  ;;  %809 = vrot.lane.b32.xlu0 %v3952_v46, %s3594_s7 }
 0x122   : > { %811 = vrot.lane.b32.xlu1 %v3954_v47, %s3594_s7  ;;  %829 = vrot.lane.b32.xlu0 %v3975_v56, %s3594_s7 }
 0x126   : > { %831 = vrot.lane.b32.xlu1 %v3977_v57, %s3594_s7  ;;  %833 = vrot.lane.b32.xlu0 %v4003_v5, %s3594_s7 }
 0x12a   : > { %835 = vrot.lane.b32.xlu1 %v4005_v6, %s3594_s7  ;;  %853 = vrot.lane.b32.xlu0 %v4027_v15, %s3594_s7 }
 0x12e   : > { %855 = vrot.lane.b32.xlu1 %v4029_v16, %s3594_s7  ;;  %857 = vrot.lane.b32.xlu0 %v4041_v22, %s3594_s7 }
 0x132   : > { %859 = vrot.lane.b32.xlu1 %v4052_v25, %s3594_s7  ;;  %880 = vrot.lane.b32.xlu0 %v3923_v36, %s3595_s8  ;;  %s3610_s7 = smov 109  }
 0x136   : > { %882 = vrot.lane.b32.xlu1 %v3929_v38, %s3595_s8  ;;  %884 = vrot.lane.b32.xlu0 %v3925_v37, %s3595_s8 }
 0x13a   : > { %886 = vrot.lane.b32.xlu1 %v3931_v39, %s3595_s8  ;;  %903 = vrot.lane.b32.xlu0 %v3937_v40, %s3595_s8 }
 0x13e   : > { %905 = vrot.lane.b32.xlu1 %v3939_v41, %s3595_s8  ;;  %907 = vrot.lane.b32.xlu0 %v3952_v46, %s3595_s8 }
 0x142   : > { %909 = vrot.lane.b32.xlu1 %v3954_v47, %s3595_s8  ;;  %927 = vrot.lane.b32.xlu0 %v3975_v56, %s3595_s8 }
 0x144   : > { %v587_v27 = vpop.permute.xlu0 %586 }
 0x146   : > { %929 = vrot.lane.b32.xlu1 %v3977_v57, %s3595_s8  ;;  %931 = vrot.lane.b32.xlu0 %v4003_v5, %s3595_s8 }
 0x148   : > { %v589_v28 = vpop.permute.xlu1 %588  ;;  %v591_v29 = vpop.permute.xlu0 %590 }
 0x149   : > { %v595_v45 = vsel %vm594_vm3, %v587_v27, %v589_v28 }
 0x14a   : > { %933 = vrot.lane.b32.xlu1 %v4005_v6, %s3595_s8  ;;  %951 = vrot.lane.b32.xlu0 %v4027_v15, %s3595_s8  ;;  %v599_v54 = vmul.f32 %v595_v45, %v3979_v58 }
 0x14c   : > { %v593_v30 = vpop.permute.xlu1 %592  ;;  %v610_v31 = vpop.permute.xlu0 %609 }
 0x14d   : > { %v596_v55 = vsel %vm594_vm3, %v591_v29, %v593_v30 }
 0x14e   : > { %953 = vrot.lane.b32.xlu1 %v4029_v16, %s3595_s8  ;;  %955 = vrot.lane.b32.xlu0 %v4041_v22, %s3595_s8  ;;  %v600_v8 = vmul.f32 %v596_v55, %v4001_v4 }
 0x150   : > { %v612_v32 = vpop.permute.xlu1 %611  ;;  %v614_v33 = vpop.permute.xlu0 %613 }
 0x151   : > { %v617_v44 = vsel %vm594_vm3, %v610_v31, %v612_v32 }
 0x152   : > { %957 = vrot.lane.b32.xlu1 %v4052_v25, %s3595_s8  ;;  %978 = vrot.lane.b32.xlu0 %v3923_v36, %s3596_s1  ;;  %v621_v49 = vmul.f32 %v617_v44, %v3968_v52  ;;  %s3611_s8 = smov 108  }
 0x154   : > { %v616_v34 = vpop.permute.xlu1 %615  ;;  %v634_v35 = vpop.permute.xlu0 %633  ;;  %v623_v62 = vadd.f32 %v621_v49, %v599_v54 }
 0x155   : > { %v618_v53 = vsel %vm594_vm3, %v614_v33, %v616_v34 }
 0x156   : > { %980 = vrot.lane.b32.xlu1 %v3929_v38, %s3596_s1  ;;  %982 = vrot.lane.b32.xlu0 %v3925_v37, %s3596_s1  ;;  %v622_v63 = vmul.f32 %v618_v53, %v3998_v1 }
 0x158   : > { %v636_v42 = vpop.permute.xlu1 %635  ;;  %v638_v43 = vpop.permute.xlu0 %637  ;;  %v624_v17 = vadd.f32 %v622_v63, %v600_v8 }
 0x159   : > { %v641_v48 = vsel %vm594_vm3, %v634_v35, %v636_v42 }
 0x15a   : > { %984 = vrot.lane.b32.xlu1 %v3931_v39, %s3596_s1  ;;  %1001 = vrot.lane.b32.xlu0 %v3937_v40, %s3596_s1  ;;  %v645_v59 = vmul.f32 %v641_v48, %v3984_v60 }
 0x15c   : > { %v640_v50 = vpop.permute.xlu1 %639  ;;  %v658_v51 = vpop.permute.xlu0 %657  ;;  %v647_v12 = vadd.f32 %v645_v59, %v623_v62 }
 0x15d   : > { %v642_v61 = vsel %vm594_vm3, %v638_v43, %v640_v50 }
 0x15e   : > { %1003 = vrot.lane.b32.xlu1 %v3939_v41, %s3596_s1  ;;  %1005 = vrot.lane.b32.xlu0 %v3952_v46, %s3596_s1  ;;  %v646_v13 = vmul.f32 %v642_v61, %v4011_v9 }
 0x160   : > { %v660_v3 = vpop.permute.xlu1 %659  ;;  %v662_v7 = vpop.permute.xlu0 %661  ;;  %v648_v23 = vadd.f32 %v646_v13, %v624_v17 }
 0x161   : > { %v665_v11 = vsel %vm594_vm3, %v658_v51, %v660_v3 }
 0x162   : > { %v669_v14 = vmul.f32 %v665_v11, %v4017_v10  ;;  %1007 = vrot.lane.b32.xlu1 %v3954_v47, %s3596_s1  ;;  %1025 = vrot.lane.b32.xlu0 %v3975_v56, %s3596_s1 }
 0x164   : > { %v671_v18 = vadd.f32 %v669_v14, %v647_v12  ;;  %v664_v19 = vpop.permute.xlu1 %663  ;;  %v685_v20 = vpop.permute.xlu0 %684 }
 0x165   : > { %v666_v21 = vsel %vm594_vm3, %v662_v7, %v664_v19  ;;  %vm2162_vm3 = vcmask 908288  }
 0x166   : > { %3282 = vst [vmem:[%s4043_s23 + $0x10] sm:$0xff] %v671_v18  ;;  %v670_v24 = vmul.f32 %v666_v21, %v4039_v2  ;;  %1027 = vrot.lane.b32.xlu1 %v3977_v57, %s3596_s1  ;;  %1029 = vrot.lane.b32.xlu0 %v4003_v5, %s3596_s1 }
 0x168   : > { %v672_v26 = vadd.f32 %v670_v24, %v648_v23  ;;  %v687_v27 = vpop.permute.xlu1 %686  ;;  %v689_v28 = vpop.permute.xlu0 %688 }
 0x169   : > { %v693_v44 = vsel %vm692_vm4, %v685_v20, %v687_v27 }
 0x16a   : > { %3283 = vst [vmem:[%s4043_s23 + $0x18] sm:$0xff] %v672_v26  ;;  %1031 = vrot.lane.b32.xlu1 %v4005_v6, %s3596_s1  ;;  %1049 = vrot.lane.b32.xlu0 %v4027_v15, %s3596_s1  ;;  %v697_v53 = vmul.f32 %v693_v44, %v3979_v58 }
 0x16c   : > { %v691_v29 = vpop.permute.xlu1 %690  ;;  %v708_v30 = vpop.permute.xlu0 %707 }
 0x16d   : > { %v694_v54 = vsel %vm692_vm4, %v689_v28, %v691_v29 }
 0x16e   : > { %1051 = vrot.lane.b32.xlu1 %v4029_v16, %s3596_s1  ;;  %1053 = vrot.lane.b32.xlu0 %v4041_v22, %s3596_s1  ;;  %v698_v7 = vmul.f32 %v694_v54, %v4001_v4 }
 0x170   : > { %v710_v31 = vpop.permute.xlu1 %709  ;;  %v712_v32 = vpop.permute.xlu0 %711 }
 0x171   : > { %v715_v43 = vsel %vm692_vm4, %v708_v30, %v710_v31 }
 0x172   : > { %1055 = vrot.lane.b32.xlu1 %v4052_v25, %s3596_s1  ;;  %1076 = vrot.lane.b32.xlu0 %v3923_v36, %s3597_s30  ;;  %v719_v48 = vmul.f32 %v715_v43, %v3968_v52  ;;  %s3612_s1 = smov 107  }
 0x174   : > { %v714_v33 = vpop.permute.xlu1 %713  ;;  %v732_v34 = vpop.permute.xlu0 %731  ;;  %v721_v61 = vadd.f32 %v719_v48, %v697_v53 }
 0x175   : > { %v716_v51 = vsel %vm692_vm4, %v712_v32, %v714_v33 }
 0x176   : > { %1078 = vrot.lane.b32.xlu1 %v3929_v38, %s3597_s30  ;;  %1080 = vrot.lane.b32.xlu0 %v3925_v37, %s3597_s30  ;;  %v720_v62 = vmul.f32 %v716_v51, %v3998_v1 }
 0x178   : > { %v734_v35 = vpop.permute.xlu1 %733  ;;  %v736_v42 = vpop.permute.xlu0 %735  ;;  %v722_v14 = vadd.f32 %v720_v62, %v698_v7 }
 0x179   : > { %v739_v45 = vsel %vm692_vm4, %v732_v34, %v734_v35 }
 0x17a   : > { %1082 = vrot.lane.b32.xlu1 %v3931_v39, %s3597_s30  ;;  %1099 = vrot.lane.b32.xlu0 %v3937_v40, %s3597_s30  ;;  %v743_v55 = vmul.f32 %v739_v45, %v3984_v60 }
 0x17c   : > { %v738_v49 = vpop.permute.xlu1 %737  ;;  %v756_v50 = vpop.permute.xlu0 %755  ;;  %v745_v11 = vadd.f32 %v743_v55, %v721_v61 }
 0x17d   : > { %v740_v59 = vsel %vm692_vm4, %v736_v42, %v738_v49 }
 0x17e   : > { %1101 = vrot.lane.b32.xlu1 %v3939_v41, %s3597_s30  ;;  %1103 = vrot.lane.b32.xlu0 %v3952_v46, %s3597_s30  ;;  %v744_v12 = vmul.f32 %v740_v59, %v4011_v9 }
 0x180   : > { %v758_v63 = vpop.permute.xlu1 %757  ;;  %v760_v3 = vpop.permute.xlu0 %759  ;;  %v746_v21 = vadd.f32 %v744_v12, %v722_v14 }
 0x181   : > { %v763_v8 = vsel %vm692_vm4, %v756_v50, %v758_v63 }
 0x182   : > { %v767_v13 = vmul.f32 %v763_v8, %v4017_v10  ;;  %1105 = vrot.lane.b32.xlu1 %v3954_v47, %s3597_s30  ;;  %1123 = vrot.lane.b32.xlu0 %v3975_v56, %s3597_s30 }
 0x184   : > { %v769_v17 = vadd.f32 %v767_v13, %v745_v11  ;;  %v762_v18 = vpop.permute.xlu1 %761  ;;  %v783_v19 = vpop.permute.xlu0 %782 }
 0x185   : > { %v764_v20 = vsel %vm692_vm4, %v760_v3, %v762_v18  ;;  %vm2260_vm4 = vcmask 900096  }
 0x186   : > { %3284 = vst [vmem:[%s4043_s23 + $0x20] sm:$0xff] %v769_v17  ;;  %v768_v23 = vmul.f32 %v764_v20, %v4039_v2  ;;  %1125 = vrot.lane.b32.xlu1 %v3977_v57, %s3597_s30  ;;  %1127 = vrot.lane.b32.xlu0 %v4003_v5, %s3597_s30 }
 0x188   : > { %v770_v24 = vadd.f32 %v768_v23, %v746_v21  ;;  %v785_v26 = vpop.permute.xlu1 %784  ;;  %v787_v27 = vpop.permute.xlu0 %786 }
 0x189   : > { %v791_v43 = vsel %vm790_vm5, %v783_v19, %v785_v26 }
 0x18a   : > { %3285 = vst [vmem:[%s4043_s23 + $0x28] sm:$0xff] %v770_v24  ;;  %1129 = vrot.lane.b32.xlu1 %v4005_v6, %s3597_s30  ;;  %1147 = vrot.lane.b32.xlu0 %v4027_v15, %s3597_s30  ;;  %v795_v51 = vmul.f32 %v791_v43, %v3979_v58 }
 0x18c   : > { %v789_v28 = vpop.permute.xlu1 %788  ;;  %v806_v29 = vpop.permute.xlu0 %805 }
 0x18d   : > { %v792_v53 = vsel %vm790_vm5, %v787_v27, %v789_v28 }
 0x18e   : > { %1149 = vrot.lane.b32.xlu1 %v4029_v16, %s3597_s30  ;;  %1151 = vrot.lane.b32.xlu0 %v4041_v22, %s3597_s30  ;;  %v796_v3 = vmul.f32 %v792_v53, %v4001_v4 }
 0x190   : > { %v808_v30 = vpop.permute.xlu1 %807  ;;  %v810_v31 = vpop.permute.xlu0 %809 }
 0x191   : > { %v813_v42 = vsel %vm790_vm5, %v806_v29, %v808_v30 }
 0x192   : > { %1153 = vrot.lane.b32.xlu1 %v4052_v25, %s3597_s30  ;;  %1174 = vrot.lane.b32.xlu0 %v3923_v36, %s3598_s20  ;;  %v817_v45 = vmul.f32 %v813_v42, %v3968_v52  ;;  %s3613_s30 = smov 106  }
 0x194   : > { %v812_v32 = vpop.permute.xlu1 %811  ;;  %v830_v33 = vpop.permute.xlu0 %829  ;;  %v819_v59 = vadd.f32 %v817_v45, %v795_v51 }
 0x195   : > { %v814_v50 = vsel %vm790_vm5, %v810_v31, %v812_v32 }
 0x196   : > { %1176 = vrot.lane.b32.xlu1 %v3929_v38, %s3598_s20  ;;  %1178 = vrot.lane.b32.xlu0 %v3925_v37, %s3598_s20  ;;  %v818_v61 = vmul.f32 %v814_v50, %v3998_v1 }
 0x198   : > { %v832_v34 = vpop.permute.xlu1 %831  ;;  %v834_v35 = vpop.permute.xlu0 %833  ;;  %v820_v13 = vadd.f32 %v818_v61, %v796_v3 }
 0x199   : > { %v837_v44 = vsel %vm790_vm5, %v830_v33, %v832_v34 }
 0x19a   : > { %1180 = vrot.lane.b32.xlu1 %v3931_v39, %s3598_s20  ;;  %1197 = vrot.lane.b32.xlu0 %v3937_v40, %s3598_s20  ;;  %v841_v54 = vmul.f32 %v837_v44, %v3984_v60 }
 0x19c   : > { %v836_v48 = vpop.permute.xlu1 %835  ;;  %v854_v49 = vpop.permute.xlu0 %853  ;;  %v843_v8 = vadd.f32 %v841_v54, %v819_v59 }
 0x19d   : > { %v838_v55 = vsel %vm790_vm5, %v834_v35, %v836_v48 }
 0x19e   : > { %1199 = vrot.lane.b32.xlu1 %v3939_v41, %s3598_s20  ;;  %1201 = vrot.lane.b32.xlu0 %v3952_v46, %s3598_s20  ;;  %v842_v11 = vmul.f32 %v838_v55, %v4011_v9 }
 0x1a0   : > { %v856_v62 = vpop.permute.xlu1 %855  ;;  %v858_v63 = vpop.permute.xlu0 %857  ;;  %v844_v20 = vadd.f32 %v842_v11, %v820_v13 }
 0x1a1   : > { %v861_v7 = vsel %vm790_vm5, %v854_v49, %v856_v62 }
 0x1a2   : > { %v865_v12 = vmul.f32 %v861_v7, %v4017_v10  ;;  %1203 = vrot.lane.b32.xlu1 %v3954_v47, %s3598_s20  ;;  %1221 = vrot.lane.b32.xlu0 %v3975_v56, %s3598_s20 }
 0x1a4   : > { %v867_v14 = vadd.f32 %v865_v12, %v843_v8  ;;  %v860_v17 = vpop.permute.xlu1 %859  ;;  %v881_v18 = vpop.permute.xlu0 %880 }
 0x1a5   : > { %v862_v19 = vsel %vm790_vm5, %v858_v63, %v860_v17  ;;  %vm2358_vm5 = vcmask 891904  }
 0x1a6   : > { %3286 = vst [vmem:[%s4043_s23 + $0x30] sm:$0xff] %v867_v14  ;;  %v866_v21 = vmul.f32 %v862_v19, %v4039_v2  ;;  %1223 = vrot.lane.b32.xlu1 %v3977_v57, %s3598_s20  ;;  %1225 = vrot.lane.b32.xlu0 %v4003_v5, %s3598_s20 }
 0x1a8   : > { %v868_v23 = vadd.f32 %v866_v21, %v844_v20  ;;  %v883_v24 = vpop.permute.xlu1 %882  ;;  %v885_v26 = vpop.permute.xlu0 %884 }
 0x1a9   : > { %v889_v42 = vsel %vm888_vm6, %v881_v18, %v883_v24 }
 0x1aa   : > { %3287 = vst [vmem:[%s4043_s23 + $0x38] sm:$0xff] %v868_v23  ;;  %1227 = vrot.lane.b32.xlu1 %v4005_v6, %s3598_s20  ;;  %1245 = vrot.lane.b32.xlu0 %v4027_v15, %s3598_s20  ;;  %v893_v50 = vmul.f32 %v889_v42, %v3979_v58 }
 0x1ac   : > { %v887_v27 = vpop.permute.xlu1 %886  ;;  %v904_v28 = vpop.permute.xlu0 %903 }
 0x1ad   : > { %v890_v51 = vsel %vm888_vm6, %v885_v26, %v887_v27 }
 0x1ae   : > { %1247 = vrot.lane.b32.xlu1 %v4029_v16, %s3598_s20  ;;  %1249 = vrot.lane.b32.xlu0 %v4041_v22, %s3598_s20  ;;  %v894_v63 = vmul.f32 %v890_v51, %v4001_v4 }
 0x1b0   : > { %v906_v29 = vpop.permute.xlu1 %905  ;;  %v908_v30 = vpop.permute.xlu0 %907 }
 0x1b1   : > { %v911_v35 = vsel %vm888_vm6, %v904_v28, %v906_v29 }
 0x1b2   : > { %1251 = vrot.lane.b32.xlu1 %v4052_v25, %s3598_s20  ;;  %1272 = vrot.lane.b32.xlu0 %v3923_v36, %s3599_s24  ;;  %v915_v44 = vmul.f32 %v911_v35, %v3968_v52  ;;  %s3614_s20 = smov 105  }
 0x1b4   : > { %v910_v31 = vpop.permute.xlu1 %909  ;;  %v928_v32 = vpop.permute.xlu0 %927  ;;  %v917_v55 = vadd.f32 %v915_v44, %v893_v50 }
 0x1b5   : > { %v912_v49 = vsel %vm888_vm6, %v908_v30, %v910_v31 }
 0x1b6   : > { %1274 = vrot.lane.b32.xlu1 %v3929_v38, %s3599_s24  ;;  %1276 = vrot.lane.b32.xlu0 %v3925_v37, %s3599_s24  ;;  %v916_v59 = vmul.f32 %v912_v49, %v3998_v1 }
 0x1b8   : > { %v930_v33 = vpop.permute.xlu1 %929  ;;  %v932_v34 = vpop.permute.xlu0 %931  ;;  %v918_v12 = vadd.f32 %v916_v59, %v894_v63 }
 0x1b9   : > { %v935_v43 = vsel %vm888_vm6, %v928_v32, %v930_v33 }
 0x1ba   : > { %1278 = vrot.lane.b32.xlu1 %v3931_v39, %s3599_s24  ;;  %1295 = vrot.lane.b32.xlu0 %v3937_v40, %s3599_s24  ;;  %v939_v53 = vmul.f32 %v935_v43, %v3984_v60 }
 0x1bc   : > { %v934_v45 = vpop.permute.xlu1 %933  ;;  %v952_v48 = vpop.permute.xlu0 %951  ;;  %v941_v7 = vadd.f32 %v939_v53, %v917_v55 }
 0x1bd   : > { %v936_v54 = vsel %vm888_vm6, %v932_v34, %v934_v45 }
 0x1be   : > { %1297 = vrot.lane.b32.xlu1 %v3939_v41, %s3599_s24  ;;  %1299 = vrot.lane.b32.xlu0 %v3952_v46, %s3599_s24  ;;  %v940_v8 = vmul.f32 %v936_v54, %v4011_v9 }
 0x1c0   : > { %v954_v61 = vpop.permute.xlu1 %953  ;;  %v956_v62 = vpop.permute.xlu0 %955  ;;  %v942_v19 = vadd.f32 %v940_v8, %v918_v12 }
 0x1c1   : > { %v959_v3 = vsel %vm888_vm6, %v952_v48, %v954_v61 }
 0x1c2   : > { %v963_v11 = vmul.f32 %v959_v3, %v4017_v10  ;;  %1301 = vrot.lane.b32.xlu1 %v3954_v47, %s3599_s24  ;;  %1319 = vrot.lane.b32.xlu0 %v3975_v56, %s3599_s24 }
 0x1c4   : > { %v965_v13 = vadd.f32 %v963_v11, %v941_v7  ;;  %v958_v14 = vpop.permute.xlu1 %957  ;;  %v979_v17 = vpop.permute.xlu0 %978 }
 0x1c5   : > { %v960_v18 = vsel %vm888_vm6, %v956_v62, %v958_v14  ;;  %vm2456_vm6 = vcmask 883712  }
 0x1c6   : > { %3288 = vst [vmem:[%s4043_s23 + $0x40] sm:$0xff] %v965_v13  ;;  %v964_v20 = vmul.f32 %v960_v18, %v4039_v2  ;;  %1321 = vrot.lane.b32.xlu1 %v3977_v57, %s3599_s24  ;;  %1323 = vrot.lane.b32.xlu0 %v4003_v5, %s3599_s24 }
 0x1c8   : > { %v966_v21 = vadd.f32 %v964_v20, %v942_v19  ;;  %v981_v23 = vpop.permute.xlu1 %980  ;;  %v983_v24 = vpop.permute.xlu0 %982 }
 0x1c9   : > { %v987_v35 = vsel %vm986_vm7, %v979_v17, %v981_v23 }
 0x1ca   : > { %3289 = vst [vmem:[%s4043_s23 + $0x48] sm:$0xff] %v966_v21  ;;  %1325 = vrot.lane.b32.xlu1 %v4005_v6, %s3599_s24  ;;  %1343 = vrot.lane.b32.xlu0 %v4027_v15, %s3599_s24  ;;  %v991_v49 = vmul.f32 %v987_v35, %v3979_v58 }
 0x1cc   : > { %v985_v26 = vpop.permute.xlu1 %984  ;;  %v1002_v27 = vpop.permute.xlu0 %1001 }
 0x1cd   : > { %v988_v50 = vsel %vm986_vm7, %v983_v24, %v985_v26 }
 0x1ce   : > { %1345 = vrot.lane.b32.xlu1 %v4029_v16, %s3599_s24  ;;  %1347 = vrot.lane.b32.xlu0 %v4041_v22, %s3599_s24  ;;  %v992_v62 = vmul.f32 %v988_v50, %v4001_v4 }
 0x1d0   : > { %v1004_v28 = vpop.permute.xlu1 %1003  ;;  %v1006_v29 = vpop.permute.xlu0 %1005 }
 0x1d1   : > { %v1009_v34 = vsel %vm986_vm7, %v1002_v27, %v1004_v28 }
 0x1d2   : > { %1349 = vrot.lane.b32.xlu1 %v4052_v25, %s3599_s24  ;;  %1370 = vrot.lane.b32.xlu0 %v3923_v36, %s3600_s4  ;;  %v1013_v43 = vmul.f32 %v1009_v34, %v3968_v52  ;;  %s3615_s24 = smov 104  }
 0x1d4   : > { %v1008_v30 = vpop.permute.xlu1 %1007  ;;  %v1026_v31 = vpop.permute.xlu0 %1025  ;;  %v1015_v54 = vadd.f32 %v1013_v43, %v991_v49 }
 0x1d5   : > { %v1010_v48 = vsel %vm986_vm7, %v1006_v29, %v1008_v30 }
 0x1d6   : > { %1372 = vrot.lane.b32.xlu1 %v3929_v38, %s3600_s4  ;;  %1374 = vrot.lane.b32.xlu0 %v3925_v37, %s3600_s4  ;;  %v1014_v55 = vmul.f32 %v1010_v48, %v3998_v1 }
 0x1d8   : > { %v1028_v32 = vpop.permute.xlu1 %1027  ;;  %v1030_v33 = vpop.permute.xlu0 %1029  ;;  %v1016_v11 = vadd.f32 %v1014_v55, %v992_v62 }
 0x1d9   : > { %v1033_v42 = vsel %vm986_vm7, %v1026_v31, %v1028_v32 }
 0x1da   : > { %1376 = vrot.lane.b32.xlu1 %v3931_v39, %s3600_s4  ;;  %1393 = vrot.lane.b32.xlu0 %v3937_v40, %s3600_s4  ;;  %v1037_v51 = vmul.f32 %v1033_v42, %v3984_v60 }
 0x1dc   : > { %v1032_v44 = vpop.permute.xlu1 %1031  ;;  %v1050_v45 = vpop.permute.xlu0 %1049  ;;  %v1039_v3 = vadd.f32 %v1037_v51, %v1015_v54 }
 0x1dd   : > { %v1034_v53 = vsel %vm986_vm7, %v1030_v33, %v1032_v44 }
 0x1de   : > { %1395 = vrot.lane.b32.xlu1 %v3939_v41, %s3600_s4  ;;  %1397 = vrot.lane.b32.xlu0 %v3952_v46, %s3600_s4  ;;  %v1038_v7 = vmul.f32 %v1034_v53, %v4011_v9 }
 0x1e0   : > { %v1052_v59 = vpop.permute.xlu1 %1051  ;;  %v1054_v61 = vpop.permute.xlu0 %1053  ;;  %v1040_v18 = vadd.f32 %v1038_v7, %v1016_v11 }
 0x1e1   : > { %v1057_v63 = vsel %vm986_vm7, %v1050_v45, %v1052_v59 }
 0x1e2   : > { %v1061_v8 = vmul.f32 %v1057_v63, %v4017_v10  ;;  %1399 = vrot.lane.b32.xlu1 %v3954_v47, %s3600_s4  ;;  %1417 = vrot.lane.b32.xlu0 %v3975_v56, %s3600_s4 }
 0x1e4   : > { %v1063_v12 = vadd.f32 %v1061_v8, %v1039_v3  ;;  %v1056_v13 = vpop.permute.xlu1 %1055  ;;  %v1077_v14 = vpop.permute.xlu0 %1076 }
 0x1e5   : > { %v1058_v17 = vsel %vm986_vm7, %v1054_v61, %v1056_v13  ;;  %vm2554_vm7 = vcmask 875520  }
 0x1e6   : > { %3290 = vst [vmem:[%s4043_s23 + $0x50] sm:$0xff] %v1063_v12  ;;  %v1062_v19 = vmul.f32 %v1058_v17, %v4039_v2  ;;  %1419 = vrot.lane.b32.xlu1 %v3977_v57, %s3600_s4  ;;  %1421 = vrot.lane.b32.xlu0 %v4003_v5, %s3600_s4 }
 0x1e8   : > { %v1064_v20 = vadd.f32 %v1062_v19, %v1040_v18  ;;  %v1079_v21 = vpop.permute.xlu1 %1078  ;;  %v1081_v23 = vpop.permute.xlu0 %1080 }
 0x1e9   : > { %v1085_v34 = vsel %vm1084_vm8, %v1077_v14, %v1079_v21 }
 0x1ea   : > { %3291 = vst [vmem:[%s4043_s23 + $0x58] sm:$0xff] %v1064_v20  ;;  %1423 = vrot.lane.b32.xlu1 %v4005_v6, %s3600_s4  ;;  %1441 = vrot.lane.b32.xlu0 %v4027_v15, %s3600_s4  ;;  %v1089_v48 = vmul.f32 %v1085_v34, %v3979_v58 }
 0x1ec   : > { %v1083_v24 = vpop.permute.xlu1 %1082  ;;  %v1100_v26 = vpop.permute.xlu0 %1099 }
 0x1ed   : > { %v1086_v49 = vsel %vm1084_vm8, %v1081_v23, %v1083_v24 }
 0x1ee   : > { %1443 = vrot.lane.b32.xlu1 %v4029_v16, %s3600_s4  ;;  %1445 = vrot.lane.b32.xlu0 %v4041_v22, %s3600_s4  ;;  %v1090_v61 = vmul.f32 %v1086_v49, %v4001_v4 }
 0x1f0   : > { %v1102_v27 = vpop.permute.xlu1 %1101  ;;  %v1104_v28 = vpop.permute.xlu0 %1103 }
 0x1f1   : > { %v1107_v33 = vsel %vm1084_vm8, %v1100_v26, %v1102_v27 }
 0x1f2   : > { %1447 = vrot.lane.b32.xlu1 %v4052_v25, %s3600_s4  ;;  %1468 = vrot.lane.b32.xlu0 %v3923_v36, %s3601_s11  ;;  %v1111_v42 = vmul.f32 %v1107_v33, %v3968_v52  ;;  %s3616_s4 = smov 103  }
 0x1f4   : > { %v1106_v29 = vpop.permute.xlu1 %1105  ;;  %v1124_v30 = vpop.permute.xlu0 %1123  ;;  %v1113_v53 = vadd.f32 %v1111_v42, %v1089_v48 }
 0x1f5   : > { %v1108_v45 = vsel %vm1084_vm8, %v1104_v28, %v1106_v29 }
 0x1f6   : > { %1470 = vrot.lane.b32.xlu1 %v3929_v38, %s3601_s11  ;;  %1472 = vrot.lane.b32.xlu0 %v3925_v37, %s3601_s11  ;;  %v1112_v54 = vmul.f32 %v1108_v45, %v3998_v1 }
 0x1f8   : > { %v1126_v31 = vpop.permute.xlu1 %1125  ;;  %v1128_v32 = vpop.permute.xlu0 %1127  ;;  %v1114_v8 = vadd.f32 %v1112_v54, %v1090_v61 }
 0x1f9   : > { %v1131_v35 = vsel %vm1084_vm8, %v1124_v30, %v1126_v31 }
 0x1fa   : > { %1474 = vrot.lane.b32.xlu1 %v3931_v39, %s3601_s11  ;;  %1491 = vrot.lane.b32.xlu0 %v3937_v40, %s3601_s11  ;;  %v1135_v50 = vmul.f32 %v1131_v35, %v3984_v60 }
 0x1fc   : > { %v1130_v43 = vpop.permute.xlu1 %1129  ;;  %v1148_v44 = vpop.permute.xlu0 %1147  ;;  %v1137_v63 = vadd.f32 %v1135_v50, %v1113_v53 }
 0x1fd   : > { %v1132_v51 = vsel %vm1084_vm8, %v1128_v32, %v1130_v43 }
 0x1fe   : > { %1493 = vrot.lane.b32.xlu1 %v3939_v41, %s3601_s11  ;;  %1495 = vrot.lane.b32.xlu0 %v3952_v46, %s3601_s11  ;;  %v1136_v3 = vmul.f32 %v1132_v51, %v4011_v9 }
 0x200   : > { %v1150_v55 = vpop.permute.xlu1 %1149  ;;  %v1152_v59 = vpop.permute.xlu0 %1151  ;;  %v1138_v17 = vadd.f32 %v1136_v3, %v1114_v8 }
 0x201   : > { %v1155_v62 = vsel %vm1084_vm8, %v1148_v44, %v1150_v55 }
 0x202   : > { %v1159_v7 = vmul.f32 %v1155_v62, %v4017_v10  ;;  %1497 = vrot.lane.b32.xlu1 %v3954_v47, %s3601_s11  ;;  %1515 = vrot.lane.b32.xlu0 %v3975_v56, %s3601_s11 }
 0x204   : > { %v1161_v11 = vadd.f32 %v1159_v7, %v1137_v63  ;;  %v1154_v12 = vpop.permute.xlu1 %1153  ;;  %v1175_v13 = vpop.permute.xlu0 %1174 }
 0x205   : > { %v1156_v14 = vsel %vm1084_vm8, %v1152_v59, %v1154_v12  ;;  %vm2652_vm8 = vcmask 867328  }
 0x206   : > { %3292 = vst [vmem:[%s4043_s23 + $0x60] sm:$0xff] %v1161_v11  ;;  %v1160_v18 = vmul.f32 %v1156_v14, %v4039_v2  ;;  %1517 = vrot.lane.b32.xlu1 %v3977_v57, %s3601_s11  ;;  %1519 = vrot.lane.b32.xlu0 %v4003_v5, %s3601_s11 }
 0x208   : > { %v1162_v19 = vadd.f32 %v1160_v18, %v1138_v17  ;;  %v1177_v20 = vpop.permute.xlu1 %1176  ;;  %v1179_v21 = vpop.permute.xlu0 %1178 }
 0x209   : > { %v1183_v33 = vsel %vm1182_vm9, %v1175_v13, %v1177_v20 }
 0x20a   : > { %3293 = vst [vmem:[%s4043_s23 + $0x68] sm:$0xff] %v1162_v19  ;;  %1521 = vrot.lane.b32.xlu1 %v4005_v6, %s3601_s11  ;;  %1539 = vrot.lane.b32.xlu0 %v4027_v15, %s3601_s11  ;;  %v1187_v45 = vmul.f32 %v1183_v33, %v3979_v58 }
 0x20c   : > { %v1181_v23 = vpop.permute.xlu1 %1180  ;;  %v1198_v24 = vpop.permute.xlu0 %1197 }
 0x20d   : > { %v1184_v48 = vsel %vm1182_vm9, %v1179_v21, %v1181_v23 }
 0x20e   : > { %1541 = vrot.lane.b32.xlu1 %v4029_v16, %s3601_s11  ;;  %1543 = vrot.lane.b32.xlu0 %v4041_v22, %s3601_s11  ;;  %v1188_v59 = vmul.f32 %v1184_v48, %v4001_v4 }
 0x210   : > { %v1200_v26 = vpop.permute.xlu1 %1199  ;;  %v1202_v27 = vpop.permute.xlu0 %1201 }
 0x211   : > { %v1205_v32 = vsel %vm1182_vm9, %v1198_v24, %v1200_v26 }
 0x212   : > { %1545 = vrot.lane.b32.xlu1 %v4052_v25, %s3601_s11  ;;  %1566 = vrot.lane.b32.xlu0 %v3923_v36, %s3602_s6  ;;  %v1209_v35 = vmul.f32 %v1205_v32, %v3968_v52  ;;  %s3617_s11 = smov 102  }
 0x214   : > { %v1204_v28 = vpop.permute.xlu1 %1203  ;;  %v1222_v29 = vpop.permute.xlu0 %1221  ;;  %v1211_v51 = vadd.f32 %v1209_v35, %v1187_v45 }
 0x215   : > { %v1206_v44 = vsel %vm1182_vm9, %v1202_v27, %v1204_v28 }
 0x216   : > { %1568 = vrot.lane.b32.xlu1 %v3929_v38, %s3602_s6  ;;  %1570 = vrot.lane.b32.xlu0 %v3925_v37, %s3602_s6  ;;  %v1210_v53 = vmul.f32 %v1206_v44, %v3998_v1 }
 0x218   : > { %v1224_v30 = vpop.permute.xlu1 %1223  ;;  %v1226_v31 = vpop.permute.xlu0 %1225  ;;  %v1212_v7 = vadd.f32 %v1210_v53, %v1188_v59 }
 0x219   : > { %v1229_v34 = vsel %vm1182_vm9, %v1222_v29, %v1224_v30 }
 0x21a   : > { %1572 = vrot.lane.b32.xlu1 %v3931_v39, %s3602_s6  ;;  %1589 = vrot.lane.b32.xlu0 %v3937_v40, %s3602_s6  ;;  %v1233_v49 = vmul.f32 %v1229_v34, %v3984_v60 }
 0x21c   : > { %v1228_v42 = vpop.permute.xlu1 %1227  ;;  %v1246_v43 = vpop.permute.xlu0 %1245  ;;  %v1235_v62 = vadd.f32 %v1233_v49, %v1211_v51 }
 0x21d   : > { %v1230_v50 = vsel %vm1182_vm9, %v1226_v31, %v1228_v42 }
 0x21e   : > { %1591 = vrot.lane.b32.xlu1 %v3939_v41, %s3602_s6  ;;  %1593 = vrot.lane.b32.xlu0 %v3952_v46, %s3602_s6  ;;  %v1234_v63 = vmul.f32 %v1230_v50, %v4011_v9 }
 0x220   : > { %v1248_v54 = vpop.permute.xlu1 %1247  ;;  %v1250_v55 = vpop.permute.xlu0 %1249  ;;  %v1236_v14 = vadd.f32 %v1234_v63, %v1212_v7 }
 0x221   : > { %v1253_v61 = vsel %vm1182_vm9, %v1246_v43, %v1248_v54 }
 0x222   : > { %v1257_v3 = vmul.f32 %v1253_v61, %v4017_v10  ;;  %1595 = vrot.lane.b32.xlu1 %v3954_v47, %s3602_s6  ;;  %1613 = vrot.lane.b32.xlu0 %v3975_v56, %s3602_s6 }
 0x224   : > { %v1259_v8 = vadd.f32 %v1257_v3, %v1235_v62  ;;  %v1252_v11 = vpop.permute.xlu1 %1251  ;;  %v1273_v12 = vpop.permute.xlu0 %1272 }
 0x225   : > { %v1254_v13 = vsel %vm1182_vm9, %v1250_v55, %v1252_v11  ;;  %vm2750_vm9 = vcmask 859136  }
 0x226   : > { %3294 = vst [vmem:[%s4043_s23 + $0x70] sm:$0xff] %v1259_v8  ;;  %v1258_v17 = vmul.f32 %v1254_v13, %v4039_v2  ;;  %1615 = vrot.lane.b32.xlu1 %v3977_v57, %s3602_s6  ;;  %1617 = vrot.lane.b32.xlu0 %v4003_v5, %s3602_s6 }
 0x228   : > { %v1260_v18 = vadd.f32 %v1258_v17, %v1236_v14  ;;  %v1275_v19 = vpop.permute.xlu1 %1274  ;;  %v1277_v20 = vpop.permute.xlu0 %1276 }
 0x229   : > { %v1281_v32 = vsel %vm1280_vm10, %v1273_v12, %v1275_v19 }
 0x22a   : > { %3295 = vst [vmem:[%s4043_s23 + $0x78] sm:$0xff] %v1260_v18  ;;  %1619 = vrot.lane.b32.xlu1 %v4005_v6, %s3602_s6  ;;  %1637 = vrot.lane.b32.xlu0 %v4027_v15, %s3602_s6  ;;  %v1285_v44 = vmul.f32 %v1281_v32, %v3979_v58 }
 0x22c   : > { %v1279_v21 = vpop.permute.xlu1 %1278  ;;  %v1296_v23 = vpop.permute.xlu0 %1295 }
 0x22d   : > { %v1282_v45 = vsel %vm1280_vm10, %v1277_v20, %v1279_v21 }
 0x22e   : > { %1639 = vrot.lane.b32.xlu1 %v4029_v16, %s3602_s6  ;;  %1641 = vrot.lane.b32.xlu0 %v4041_v22, %s3602_s6  ;;  %v1286_v55 = vmul.f32 %v1282_v45, %v4001_v4 }
 0x230   : > { %v1298_v24 = vpop.permute.xlu1 %1297  ;;  %v1300_v26 = vpop.permute.xlu0 %1299 }
 0x231   : > { %v1303_v31 = vsel %vm1280_vm10, %v1296_v23, %v1298_v24 }
 0x232   : > { %1643 = vrot.lane.b32.xlu1 %v4052_v25, %s3602_s6  ;;  %1664 = vrot.lane.b32.xlu0 %v3923_v36, %s3603_s10  ;;  %v1307_v34 = vmul.f32 %v1303_v31, %v3968_v52  ;;  %s3340_s6 = smul.u32 6912, %s3577_s17  ;;  %s3127_s17 = scalar_lea.sflag [#allocation14], %s3814_s9 }
 0x234   : > { %v1302_v27 = vpop.permute.xlu1 %1301  ;;  %v1320_v28 = vpop.permute.xlu0 %1319  ;;  %v1309_v50 = vadd.f32 %v1307_v34, %v1285_v44 }
 0x235   : > { %v1304_v43 = vsel %vm1280_vm10, %v1300_v26, %v1302_v27 }
 0x236   : > { %1666 = vrot.lane.b32.xlu1 %v3929_v38, %s3603_s10  ;;  %1668 = vrot.lane.b32.xlu0 %v3925_v37, %s3603_s10  ;;  %v1308_v51 = vmul.f32 %v1304_v43, %v3998_v1 }
 0x238   : > { %v1322_v29 = vpop.permute.xlu1 %1321  ;;  %v1324_v30 = vpop.permute.xlu0 %1323  ;;  %v1310_v3 = vadd.f32 %v1308_v51, %v1286_v55 }
 0x239   : > { %v1327_v33 = vsel %vm1280_vm10, %v1320_v28, %v1322_v29 }
 0x23a   : > { %1670 = vrot.lane.b32.xlu1 %v3931_v39, %s3603_s10  ;;  %1687 = vrot.lane.b32.xlu0 %v3937_v40, %s3603_s10  ;;  %v1331_v48 = vmul.f32 %v1327_v33, %v3984_v60 }
 0x23c   : > { %v1326_v35 = vpop.permute.xlu1 %1325  ;;  %v1344_v42 = vpop.permute.xlu0 %1343  ;;  %v1333_v61 = vadd.f32 %v1331_v48, %v1309_v50 }
 0x23d   : > { %v1328_v49 = vsel %vm1280_vm10, %v1324_v30, %v1326_v35 }
 0x23e   : > { %1689 = vrot.lane.b32.xlu1 %v3939_v41, %s3603_s10  ;;  %1691 = vrot.lane.b32.xlu0 %v3952_v46, %s3603_s10  ;;  %v1332_v62 = vmul.f32 %v1328_v49, %v4011_v9 }
 0x240   : > { %v1346_v53 = vpop.permute.xlu1 %1345  ;;  %v1348_v54 = vpop.permute.xlu0 %1347  ;;  %v1334_v13 = vadd.f32 %v1332_v62, %v1310_v3 }
 0x241   : > { %v1351_v59 = vsel %vm1280_vm10, %v1344_v42, %v1346_v53 }
 0x242   : > { %v1355_v63 = vmul.f32 %v1351_v59, %v4017_v10  ;;  %1693 = vrot.lane.b32.xlu1 %v3954_v47, %s3603_s10  ;;  %1711 = vrot.lane.b32.xlu0 %v3975_v56, %s3603_s10 }
 0x244   : > { %v1357_v7 = vadd.f32 %v1355_v63, %v1333_v61  ;;  %v1350_v8 = vpop.permute.xlu1 %1349  ;;  %v1371_v11 = vpop.permute.xlu0 %1370 }
 0x245   : > { %v1352_v12 = vsel %vm1280_vm10, %v1348_v54, %v1350_v8  ;;  %vm2848_vm10 = vcmask 850944  }
 0x246   : > { %3296 = vst [vmem:[%s4043_s23 + $0x80] sm:$0xff] %v1357_v7  ;;  %v1356_v14 = vmul.f32 %v1352_v12, %v4039_v2  ;;  %1713 = vrot.lane.b32.xlu1 %v3977_v57, %s3603_s10  ;;  %1715 = vrot.lane.b32.xlu0 %v4003_v5, %s3603_s10 }
 0x248   : > { %v1358_v17 = vadd.f32 %v1356_v14, %v1334_v13  ;;  %v1373_v18 = vpop.permute.xlu1 %1372  ;;  %v1375_v19 = vpop.permute.xlu0 %1374 }
 0x249   : > { %v1379_v31 = vsel %vm1378_vm11, %v1371_v11, %v1373_v18 }
 0x24a   : > { %3297 = vst [vmem:[%s4043_s23 + $0x88] sm:$0xff] %v1358_v17  ;;  %1717 = vrot.lane.b32.xlu1 %v4005_v6, %s3603_s10  ;;  %1735 = vrot.lane.b32.xlu0 %v4027_v15, %s3603_s10  ;;  %v1383_v43 = vmul.f32 %v1379_v31, %v3979_v58 }
 0x24c   : > { %v1377_v20 = vpop.permute.xlu1 %1376  ;;  %v1394_v21 = vpop.permute.xlu0 %1393 }
 0x24d   : > { %v1380_v44 = vsel %vm1378_vm11, %v1375_v19, %v1377_v20 }
 0x24e   : > { %1737 = vrot.lane.b32.xlu1 %v4029_v16, %s3603_s10  ;;  %1739 = vrot.lane.b32.xlu0 %v4041_v22, %s3603_s10  ;;  %v1384_v54 = vmul.f32 %v1380_v44, %v4001_v4 }
 0x250   : > { %v1396_v23 = vpop.permute.xlu1 %1395  ;;  %v1398_v24 = vpop.permute.xlu0 %1397 }
 0x251   : > { %v1401_v30 = vsel %vm1378_vm11, %v1394_v21, %v1396_v23 }
 0x252   : > { %1741 = vrot.lane.b32.xlu1 %v4052_v25, %s3603_s10  ;;  %1762 = vrot.lane.b32.xlu0 %v3923_v36, %s3604_s29  ;;  %v1405_v33 = vmul.f32 %v1401_v30, %v3968_v52  ;;  %s3142_s10 = sshll.u32 %s4043_s23, 4  ;;  %s5289_s10 = int_to_ptr.vmem [resolvable:$true] %s3142_s10 }
 0x254   : > { %v1400_v26 = vpop.permute.xlu1 %1399  ;;  %v1418_v27 = vpop.permute.xlu0 %1417  ;;  %v1407_v49 = vadd.f32 %v1405_v33, %v1383_v43 }
 0x255   : > { %v1402_v42 = vsel %vm1378_vm11, %v1398_v24, %v1400_v26 }
 0x256   : > { %1764 = vrot.lane.b32.xlu1 %v3929_v38, %s3604_s29  ;;  %1766 = vrot.lane.b32.xlu0 %v3925_v37, %s3604_s29  ;;  %v1406_v50 = vmul.f32 %v1402_v42, %v3998_v1 }
 0x258   : > { %v1420_v28 = vpop.permute.xlu1 %1419  ;;  %v1422_v29 = vpop.permute.xlu0 %1421  ;;  %v1408_v63 = vadd.f32 %v1406_v50, %v1384_v54 }
 0x259   : > { %v1425_v32 = vsel %vm1378_vm11, %v1418_v27, %v1420_v28 }
 0x25a   : > { %1768 = vrot.lane.b32.xlu1 %v3931_v39, %s3604_s29  ;;  %1785 = vrot.lane.b32.xlu0 %v3937_v40, %s3604_s29  ;;  %v1429_v45 = vmul.f32 %v1425_v32, %v3984_v60 }
 0x25c   : > { %v1424_v34 = vpop.permute.xlu1 %1423  ;;  %v1442_v35 = vpop.permute.xlu0 %1441  ;;  %v1431_v59 = vadd.f32 %v1429_v45, %v1407_v49 }
 0x25d   : > { %v1426_v48 = vsel %vm1378_vm11, %v1422_v29, %v1424_v34 }
 0x25e   : > { %1787 = vrot.lane.b32.xlu1 %v3939_v41, %s3604_s29  ;;  %1789 = vrot.lane.b32.xlu0 %v3952_v46, %s3604_s29  ;;  %v1430_v61 = vmul.f32 %v1426_v48, %v4011_v9 }
 0x260   : > { %v1444_v51 = vpop.permute.xlu1 %1443  ;;  %v1446_v53 = vpop.permute.xlu0 %1445  ;;  %v1432_v12 = vadd.f32 %v1430_v61, %v1408_v63 }
 0x261   : > { %v1449_v55 = vsel %vm1378_vm11, %v1442_v35, %v1444_v51 }
 0x262   : > { %v1453_v62 = vmul.f32 %v1449_v55, %v4017_v10  ;;  %1791 = vrot.lane.b32.xlu1 %v3954_v47, %s3604_s29  ;;  %1809 = vrot.lane.b32.xlu0 %v3975_v56, %s3604_s29 }
 0x264   : > { %v1455_v3 = vadd.f32 %v1453_v62, %v1431_v59  ;;  %v1448_v7 = vpop.permute.xlu1 %1447  ;;  %v1469_v8 = vpop.permute.xlu0 %1468 }
 0x265   : > { %v1450_v11 = vsel %vm1378_vm11, %v1446_v53, %v1448_v7  ;;  %vm2946_vm11 = vcmask 842752  }
 0x266   : > { %3298 = vst [vmem:[%s4043_s23 + $0x90] sm:$0xff] %v1455_v3  ;;  %v1454_v13 = vmul.f32 %v1450_v11, %v4039_v2  ;;  %1811 = vrot.lane.b32.xlu1 %v3977_v57, %s3604_s29  ;;  %1813 = vrot.lane.b32.xlu0 %v4003_v5, %s3604_s29 }
 0x268   : > { %v1456_v14 = vadd.f32 %v1454_v13, %v1432_v12  ;;  %v1471_v17 = vpop.permute.xlu1 %1470  ;;  %v1473_v18 = vpop.permute.xlu0 %1472 }
 0x269   : > { %v1477_v30 = vsel %vm1476_vm12, %v1469_v8, %v1471_v17 }
 0x26a   : > { %3299 = vst [vmem:[%s4043_s23 + $0x98] sm:$0xff] %v1456_v14  ;;  %1815 = vrot.lane.b32.xlu1 %v4005_v6, %s3604_s29  ;;  %1833 = vrot.lane.b32.xlu0 %v4027_v15, %s3604_s29  ;;  %v1481_v42 = vmul.f32 %v1477_v30, %v3979_v58 }
 0x26c   : > { %v1475_v19 = vpop.permute.xlu1 %1474  ;;  %v1492_v20 = vpop.permute.xlu0 %1491 }
 0x26d   : > { %v1478_v43 = vsel %vm1476_vm12, %v1473_v18, %v1475_v19 }
 0x26e   : > { %1835 = vrot.lane.b32.xlu1 %v4029_v16, %s3604_s29  ;;  %1837 = vrot.lane.b32.xlu0 %v4041_v22, %s3604_s29  ;;  %v1482_v53 = vmul.f32 %v1478_v43, %v4001_v4 }
 0x270   : > { %v1494_v21 = vpop.permute.xlu1 %1493  ;;  %v1496_v23 = vpop.permute.xlu0 %1495 }
 0x271   : > { %v1499_v29 = vsel %vm1476_vm12, %v1492_v20, %v1494_v21 }
 0x272   : > { %1839 = vrot.lane.b32.xlu1 %v4052_v25, %s3604_s29  ;;  %1860 = vrot.lane.b32.xlu0 %v3923_v36, %s3605_s12  ;;  %v1503_v32 = vmul.f32 %v1499_v29, %v3968_v52 }
 0x274   : > { %v1498_v24 = vpop.permute.xlu1 %1497  ;;  %v1516_v26 = vpop.permute.xlu0 %1515  ;;  %v1505_v48 = vadd.f32 %v1503_v32, %v1481_v42 }
 0x275   : > { %v1500_v35 = vsel %vm1476_vm12, %v1496_v23, %v1498_v24 }
 0x276   : > { %1862 = vrot.lane.b32.xlu1 %v3929_v38, %s3605_s12  ;;  %1864 = vrot.lane.b32.xlu0 %v3925_v37, %s3605_s12  ;;  %v1504_v49 = vmul.f32 %v1500_v35, %v3998_v1 }
 0x278   : > { %v1518_v27 = vpop.permute.xlu1 %1517  ;;  %v1520_v28 = vpop.permute.xlu0 %1519  ;;  %v1506_v62 = vadd.f32 %v1504_v49, %v1482_v53 }
 0x279   : > { %v1523_v31 = vsel %vm1476_vm12, %v1516_v26, %v1518_v27 }
 0x27a   : > { %1866 = vrot.lane.b32.xlu1 %v3931_v39, %s3605_s12  ;;  %1883 = vrot.lane.b32.xlu0 %v3937_v40, %s3605_s12  ;;  %v1527_v44 = vmul.f32 %v1523_v31, %v3984_v60 }
 0x27c   : > { %v1522_v33 = vpop.permute.xlu1 %1521  ;;  %v1540_v34 = vpop.permute.xlu0 %1539  ;;  %v1529_v55 = vadd.f32 %v1527_v44, %v1505_v48 }
 0x27d   : > { %v1524_v45 = vsel %vm1476_vm12, %v1520_v28, %v1522_v33 }
 0x27e   : > { %1885 = vrot.lane.b32.xlu1 %v3939_v41, %s3605_s12  ;;  %1887 = vrot.lane.b32.xlu0 %v3952_v46, %s3605_s12  ;;  %v1528_v59 = vmul.f32 %v1524_v45, %v4011_v9 }
 0x280   : > { %v1542_v50 = vpop.permute.xlu1 %1541  ;;  %v1544_v51 = vpop.permute.xlu0 %1543  ;;  %v1530_v11 = vadd.f32 %v1528_v59, %v1506_v62 }
 0x281   : > { %v1547_v54 = vsel %vm1476_vm12, %v1540_v34, %v1542_v50 }
 0x282   : > { %v1551_v61 = vmul.f32 %v1547_v54, %v4017_v10  ;;  %1889 = vrot.lane.b32.xlu1 %v3954_v47, %s3605_s12  ;;  %1907 = vrot.lane.b32.xlu0 %v3975_v56, %s3605_s12 }
 0x284   : > { %v1553_v63 = vadd.f32 %v1551_v61, %v1529_v55  ;;  %v1546_v3 = vpop.permute.xlu1 %1545  ;;  %v1567_v7 = vpop.permute.xlu0 %1566 }
 0x285   : > { %v1548_v8 = vsel %vm1476_vm12, %v1544_v51, %v1546_v3  ;;  %vm3044_vm12 = vcmask 834560  }
 0x286   : > { %3300 = vst [vmem:[%s4043_s23 + $0xa0] sm:$0xff] %v1553_v63  ;;  %v1552_v12 = vmul.f32 %v1548_v8, %v4039_v2  ;;  %1909 = vrot.lane.b32.xlu1 %v3977_v57, %s3605_s12  ;;  %1911 = vrot.lane.b32.xlu0 %v4003_v5, %s3605_s12 }
 0x288   : > { %v1554_v13 = vadd.f32 %v1552_v12, %v1530_v11  ;;  %v1569_v14 = vpop.permute.xlu1 %1568  ;;  %v1571_v17 = vpop.permute.xlu0 %1570 }
 0x289   : > { %v1575_v29 = vsel %vm1574_vm13, %v1567_v7, %v1569_v14 }
 0x28a   : > { %3301 = vst [vmem:[%s4043_s23 + $0xa8] sm:$0xff] %v1554_v13  ;;  %1913 = vrot.lane.b32.xlu1 %v4005_v6, %s3605_s12  ;;  %1931 = vrot.lane.b32.xlu0 %v4027_v15, %s3605_s12  ;;  %v1579_v35 = vmul.f32 %v1575_v29, %v3979_v58 }
 0x28c   : > { %v1573_v18 = vpop.permute.xlu1 %1572  ;;  %v1590_v19 = vpop.permute.xlu0 %1589 }
 0x28d   : > { %v1576_v42 = vsel %vm1574_vm13, %v1571_v17, %v1573_v18 }
 0x28e   : > { %1933 = vrot.lane.b32.xlu1 %v4029_v16, %s3605_s12  ;;  %1935 = vrot.lane.b32.xlu0 %v4041_v22, %s3605_s12  ;;  %v1580_v51 = vmul.f32 %v1576_v42, %v4001_v4 }
 0x290   : > { %v1592_v20 = vpop.permute.xlu1 %1591  ;;  %v1594_v21 = vpop.permute.xlu0 %1593 }
 0x291   : > { %v1597_v28 = vsel %vm1574_vm13, %v1590_v19, %v1592_v20 }
 0x292   : > { %1937 = vrot.lane.b32.xlu1 %v4052_v25, %s3605_s12  ;;  %1958 = vrot.lane.b32.xlu0 %v3923_v36, %s3606_s25  ;;  %v1601_v31 = vmul.f32 %v1597_v28, %v3968_v52 }
 0x294   : > { %v1596_v23 = vpop.permute.xlu1 %1595  ;;  %v1614_v24 = vpop.permute.xlu0 %1613  ;;  %v1603_v45 = vadd.f32 %v1601_v31, %v1579_v35 }
 0x295   : > { %v1598_v34 = vsel %vm1574_vm13, %v1594_v21, %v1596_v23 }
 0x296   : > { %1960 = vrot.lane.b32.xlu1 %v3929_v38, %s3606_s25  ;;  %1962 = vrot.lane.b32.xlu0 %v3925_v37, %s3606_s25  ;;  %v1602_v48 = vmul.f32 %v1598_v34, %v3998_v1 }
 0x298   : > { %v1616_v26 = vpop.permute.xlu1 %1615  ;;  %v1618_v27 = vpop.permute.xlu0 %1617  ;;  %v1604_v61 = vadd.f32 %v1602_v48, %v1580_v51 }
 0x299   : > { %v1621_v30 = vsel %vm1574_vm13, %v1614_v24, %v1616_v26 }
 0x29a   : > { %1964 = vrot.lane.b32.xlu1 %v3931_v39, %s3606_s25  ;;  %1981 = vrot.lane.b32.xlu0 %v3937_v40, %s3606_s25  ;;  %v1625_v43 = vmul.f32 %v1621_v30, %v3984_v60 }
 0x29c   : > { %v1620_v32 = vpop.permute.xlu1 %1619  ;;  %v1638_v33 = vpop.permute.xlu0 %1637  ;;  %v1627_v54 = vadd.f32 %v1625_v43, %v1603_v45 }
 0x29d   : > { %v1622_v44 = vsel %vm1574_vm13, %v1618_v27, %v1620_v32 }
 0x29e   : > { %1983 = vrot.lane.b32.xlu1 %v3939_v41, %s3606_s25  ;;  %1985 = vrot.lane.b32.xlu0 %v3952_v46, %s3606_s25  ;;  %v1626_v55 = vmul.f32 %v1622_v44, %v4011_v9 }
 0x2a0   : > { %v1640_v49 = vpop.permute.xlu1 %1639  ;;  %v1642_v50 = vpop.permute.xlu0 %1641  ;;  %v1628_v8 = vadd.f32 %v1626_v55, %v1604_v61 }
 0x2a1   : > { %v1645_v53 = vsel %vm1574_vm13, %v1638_v33, %v1640_v49 }
 0x2a2   : > { %v1649_v59 = vmul.f32 %v1645_v53, %v4017_v10  ;;  %1987 = vrot.lane.b32.xlu1 %v3954_v47, %s3606_s25  ;;  %2005 = vrot.lane.b32.xlu0 %v3975_v56, %s3606_s25 }
 0x2a4   : > { %v1651_v62 = vadd.f32 %v1649_v59, %v1627_v54  ;;  %v1644_v63 = vpop.permute.xlu1 %1643  ;;  %v1665_v3 = vpop.permute.xlu0 %1664 }
 0x2a5   : > { %v1646_v7 = vsel %vm1574_vm13, %v1642_v50, %v1644_v63 }
 0x2a6   : > { %3302 = vst [vmem:[%s4043_s23 + $0xb0] sm:$0xff] %v1651_v62  ;;  %v1650_v11 = vmul.f32 %v1646_v7, %v4039_v2  ;;  %2007 = vrot.lane.b32.xlu1 %v3977_v57, %s3606_s25  ;;  %2009 = vrot.lane.b32.xlu0 %v4003_v5, %s3606_s25 }
 0x2a8   : > { %v1652_v12 = vadd.f32 %v1650_v11, %v1628_v8  ;;  %v1667_v13 = vpop.permute.xlu1 %1666  ;;  %v1669_v14 = vpop.permute.xlu0 %1668 }
 0x2a9   : > { %v1673_v28 = vsel %vm1672_vm14, %v1665_v3, %v1667_v13 }
 0x2aa   : > { %3303 = vst [vmem:[%s4043_s23 + $0xb8] sm:$0xff] %v1652_v12  ;;  %2011 = vrot.lane.b32.xlu1 %v4005_v6, %s3606_s25  ;;  %2029 = vrot.lane.b32.xlu0 %v4027_v15, %s3606_s25  ;;  %v1677_v34 = vmul.f32 %v1673_v28, %v3979_v58 }
 0x2ac   : > { %v1671_v17 = vpop.permute.xlu1 %1670  ;;  %v1688_v18 = vpop.permute.xlu0 %1687 }
 0x2ad   : > { %v1674_v35 = vsel %vm1672_vm14, %v1669_v14, %v1671_v17 }
 0x2ae   : > { %2031 = vrot.lane.b32.xlu1 %v4029_v16, %s3606_s25  ;;  %2033 = vrot.lane.b32.xlu0 %v4041_v22, %s3606_s25  ;;  %v1678_v50 = vmul.f32 %v1674_v35, %v4001_v4 }
 0x2b0   : > { %v1690_v19 = vpop.permute.xlu1 %1689  ;;  %v1692_v20 = vpop.permute.xlu0 %1691 }
 0x2b1   : > { %v1695_v27 = vsel %vm1672_vm14, %v1688_v18, %v1690_v19 }
 0x2b2   : > { %2035 = vrot.lane.b32.xlu1 %v4052_v25, %s3606_s25  ;;  %2056 = vrot.lane.b32.xlu0 %v3923_v36, %s3607_s13  ;;  %v1699_v30 = vmul.f32 %v1695_v27, %v3968_v52  ;;  %s5287_s25 = scalar_lea.hbm %s5342_s3, %s3340_s6 }
 0x2b4   : > { %v1694_v21 = vpop.permute.xlu1 %1693  ;;  %v1712_v23 = vpop.permute.xlu0 %1711  ;;  %v1701_v44 = vadd.f32 %v1699_v30, %v1677_v34 }
 0x2b5   : > { %v1696_v33 = vsel %vm1672_vm14, %v1692_v20, %v1694_v21 }
 0x2b6   : > { %2058 = vrot.lane.b32.xlu1 %v3929_v38, %s3607_s13  ;;  %2060 = vrot.lane.b32.xlu0 %v3925_v37, %s3607_s13  ;;  %v1700_v45 = vmul.f32 %v1696_v33, %v3998_v1 }
 0x2b8   : > { %v1714_v24 = vpop.permute.xlu1 %1713  ;;  %v1716_v26 = vpop.permute.xlu0 %1715  ;;  %v1702_v59 = vadd.f32 %v1700_v45, %v1678_v50 }
 0x2b9   : > { %v1719_v29 = vsel %vm1672_vm14, %v1712_v23, %v1714_v24 }
 0x2ba   : > { %2062 = vrot.lane.b32.xlu1 %v3931_v39, %s3607_s13  ;;  %2079 = vrot.lane.b32.xlu0 %v3937_v40, %s3607_s13  ;;  %v1723_v42 = vmul.f32 %v1719_v29, %v3984_v60 }
 0x2bc   : > { %v1718_v31 = vpop.permute.xlu1 %1717  ;;  %v1736_v32 = vpop.permute.xlu0 %1735  ;;  %v1725_v53 = vadd.f32 %v1723_v42, %v1701_v44 }
 0x2bd   : > { %v1720_v43 = vsel %vm1672_vm14, %v1716_v26, %v1718_v31 }
 0x2be   : > { %2081 = vrot.lane.b32.xlu1 %v3939_v41, %s3607_s13  ;;  %2083 = vrot.lane.b32.xlu0 %v3952_v46, %s3607_s13  ;;  %v1724_v54 = vmul.f32 %v1720_v43, %v4011_v9 }
 0x2c0   : > { %v1738_v48 = vpop.permute.xlu1 %1737  ;;  %v1740_v49 = vpop.permute.xlu0 %1739  ;;  %v1726_v7 = vadd.f32 %v1724_v54, %v1702_v59 }
 0x2c1   : > { %v1743_v51 = vsel %vm1672_vm14, %v1736_v32, %v1738_v48 }
 0x2c2   : > { %v1747_v55 = vmul.f32 %v1743_v51, %v4017_v10  ;;  %2085 = vrot.lane.b32.xlu1 %v3954_v47, %s3607_s13  ;;  %2103 = vrot.lane.b32.xlu0 %v3975_v56, %s3607_s13 }
 0x2c4   : > { %v1749_v61 = vadd.f32 %v1747_v55, %v1725_v53  ;;  %v1742_v62 = vpop.permute.xlu1 %1741  ;;  %v1763_v63 = vpop.permute.xlu0 %1762 }
 0x2c5   : > { %v1744_v3 = vsel %vm1672_vm14, %v1740_v49, %v1742_v62 }
 0x2c6   : > { %3304 = vst [vmem:[%s4043_s23 + $0xc0] sm:$0xff] %v1749_v61  ;;  %v1748_v8 = vmul.f32 %v1744_v3, %v4039_v2  ;;  %2105 = vrot.lane.b32.xlu1 %v3977_v57, %s3607_s13  ;;  %2107 = vrot.lane.b32.xlu0 %v4003_v5, %s3607_s13 }
 0x2c8   : > { %v1750_v11 = vadd.f32 %v1748_v8, %v1726_v7  ;;  %v1765_v12 = vpop.permute.xlu1 %1764  ;;  %v1767_v13 = vpop.permute.xlu0 %1766 }
 0x2c9   : > { %v1771_v27 = vsel %vm1770_vm15, %v1763_v63, %v1765_v12 }
 0x2ca   : > { %3305 = vst [vmem:[%s4043_s23 + $0xc8] sm:$0xff] %v1750_v11  ;;  %2109 = vrot.lane.b32.xlu1 %v4005_v6, %s3607_s13  ;;  %2127 = vrot.lane.b32.xlu0 %v4027_v15, %s3607_s13  ;;  %v1775_v33 = vmul.f32 %v1771_v27, %v3979_v58 }
 0x2cc   : > { %v1769_v14 = vpop.permute.xlu1 %1768  ;;  %v1786_v17 = vpop.permute.xlu0 %1785 }
 0x2cd   : > { %v1772_v34 = vsel %vm1770_vm15, %v1767_v13, %v1769_v14 }
 0x2ce   : > { %2129 = vrot.lane.b32.xlu1 %v4029_v16, %s3607_s13  ;;  %2131 = vrot.lane.b32.xlu0 %v4041_v22, %s3607_s13  ;;  %v1776_v49 = vmul.f32 %v1772_v34, %v4001_v4 }
 0x2d0   : > { %v1788_v18 = vpop.permute.xlu1 %1787  ;;  %v1790_v19 = vpop.permute.xlu0 %1789 }
 0x2d1   : > { %v1793_v26 = vsel %vm1770_vm15, %v1786_v17, %v1788_v18 }
 0x2d2   : > { %2133 = vrot.lane.b32.xlu1 %v4052_v25, %s3607_s13  ;;  %2154 = vrot.lane.b32.xlu0 %v3923_v36, %s3608_s22  ;;  %v1797_v29 = vmul.f32 %v1793_v26, %v3968_v52  ;;  %s3499_s13 = scalar_lea.vmem %s5289_s10, 6912 }
 0x2d3   : > { %p3500_p0 = scmp.ne.s32.totalorder %s5289_s10, %s3499_s13 }
 0x2d4   : > { %v1792_v20 = vpop.permute.xlu1 %1791  ;;  %v1810_v21 = vpop.permute.xlu0 %1809  ;;  %v1799_v43 = vadd.f32 %v1797_v29, %v1775_v33 }
 0x2d5   : > { %v1794_v32 = vsel %vm1770_vm15, %v1790_v19, %v1792_v20  ;;  %p3501_p12 = pnand %p3500_p0, %p5353_p3 }
 0x2d6   : > { %2156 = vrot.lane.b32.xlu1 %v3929_v38, %s3608_s22  ;;  %2158 = vrot.lane.b32.xlu0 %v3925_v37, %s3608_s22  ;;  %v1798_v44 = vmul.f32 %v1794_v32, %v3998_v1 }
 0x2d7   : > { %p3502_p13 = pneg %p3501_p12 }
 0x2d8   : > { %v1812_v23 = vpop.permute.xlu1 %1811  ;;  %v1814_v24 = vpop.permute.xlu0 %1813  ;;  %v1800_v55 = vadd.f32 %v1798_v44, %v1776_v49 }
 0x2d9   : > { %v1817_v28 = vsel %vm1770_vm15, %v1810_v21, %v1812_v23 }
 0x2da   : > { %2160 = vrot.lane.b32.xlu1 %v3931_v39, %s3608_s22  ;;  %2177 = vrot.lane.b32.xlu0 %v3937_v40, %s3608_s22  ;;  %v1821_v35 = vmul.f32 %v1817_v28, %v3984_v60 }
 0x2dc   : > { %v1816_v30 = vpop.permute.xlu1 %1815  ;;  %v1834_v31 = vpop.permute.xlu0 %1833  ;;  %v1823_v51 = vadd.f32 %v1821_v35, %v1799_v43 }
 0x2dd   : > { %v1818_v42 = vsel %vm1770_vm15, %v1814_v24, %v1816_v30 }
 0x2de   : > { %2179 = vrot.lane.b32.xlu1 %v3939_v41, %s3608_s22  ;;  %2181 = vrot.lane.b32.xlu0 %v3952_v46, %s3608_s22  ;;  %v1822_v53 = vmul.f32 %v1818_v42, %v4011_v9 }
 0x2e0   : > { %v1836_v45 = vpop.permute.xlu1 %1835  ;;  %v1838_v48 = vpop.permute.xlu0 %1837  ;;  %v1824_v3 = vadd.f32 %v1822_v53, %v1800_v55 }
 0x2e1   : > { %v1841_v50 = vsel %vm1770_vm15, %v1834_v31, %v1836_v45 }
 0x2e2   : > { %v1845_v54 = vmul.f32 %v1841_v50, %v4017_v10  ;;  %2183 = vrot.lane.b32.xlu1 %v3954_v47, %s3608_s22  ;;  %2201 = vrot.lane.b32.xlu0 %v3975_v56, %s3608_s22 }
 0x2e4   : > { %v1847_v59 = vadd.f32 %v1845_v54, %v1823_v51  ;;  %v1840_v61 = vpop.permute.xlu1 %1839  ;;  %v1861_v62 = vpop.permute.xlu0 %1860 }
 0x2e5   : > { %v1842_v63 = vsel %vm1770_vm15, %v1838_v48, %v1840_v61 }
 0x2e6   : > { %3306 = vst [vmem:[%s4043_s23 + $0xd0] sm:$0xff] %v1847_v59  ;;  %v1846_v7 = vmul.f32 %v1842_v63, %v4039_v2  ;;  %2203 = vrot.lane.b32.xlu1 %v3977_v57, %s3608_s22  ;;  %2205 = vrot.lane.b32.xlu0 %v4003_v5, %s3608_s22 }
 0x2e8   : > { %v1848_v8 = vadd.f32 %v1846_v7, %v1824_v3  ;;  %v1863_v11 = vpop.permute.xlu1 %1862  ;;  %v1865_v12 = vpop.permute.xlu0 %1864 }
 0x2e9   : > { %v1869_v26 = vsel %vm1868_vm0, %v1861_v62, %v1863_v11 }
 0x2ea   : > { %3307 = vst [vmem:[%s4043_s23 + $0xd8] sm:$0xff] %v1848_v8  ;;  %2207 = vrot.lane.b32.xlu1 %v4005_v6, %s3608_s22  ;;  %2225 = vrot.lane.b32.xlu0 %v4027_v15, %s3608_s22  ;;  %v1873_v32 = vmul.f32 %v1869_v26, %v3979_v58 }
 0x2ec   : > { %v1867_v13 = vpop.permute.xlu1 %1866  ;;  %v1884_v14 = vpop.permute.xlu0 %1883 }
 0x2ed   : > { %v1870_v33 = vsel %vm1868_vm0, %v1865_v12, %v1867_v13 }
 0x2ee   : > { %2227 = vrot.lane.b32.xlu1 %v4029_v16, %s3608_s22  ;;  %2229 = vrot.lane.b32.xlu0 %v4041_v22, %s3608_s22  ;;  %v1874_v48 = vmul.f32 %v1870_v33, %v4001_v4 }
 0x2f0   : > { %v1886_v17 = vpop.permute.xlu1 %1885  ;;  %v1888_v18 = vpop.permute.xlu0 %1887 }
 0x2f1   : > { %v1891_v24 = vsel %vm1868_vm0, %v1884_v14, %v1886_v17 }
 0x2f2   : > { %2231 = vrot.lane.b32.xlu1 %v4052_v25, %s3608_s22  ;;  %2252 = vrot.lane.b32.xlu0 %v3923_v36, %s3609_s5  ;;  %v1895_v28 = vmul.f32 %v1891_v24, %v3968_v52  ;;  %s3618_s22 = smov [#allocation17]  }
 0x2f4   : > { %v1890_v19 = vpop.permute.xlu1 %1889  ;;  %v1908_v20 = vpop.permute.xlu0 %1907  ;;  %v1897_v42 = vadd.f32 %v1895_v28, %v1873_v32 }
 0x2f5   : > { %v1892_v31 = vsel %vm1868_vm0, %v1888_v18, %v1890_v19 }
 0x2f6   : > { %2254 = vrot.lane.b32.xlu1 %v3929_v38, %s3609_s5  ;;  %2256 = vrot.lane.b32.xlu0 %v3925_v37, %s3609_s5  ;;  %v1896_v43 = vmul.f32 %v1892_v31, %v3998_v1 }
 0x2f8   : > { %v1910_v21 = vpop.permute.xlu1 %1909  ;;  %v1912_v23 = vpop.permute.xlu0 %1911  ;;  %v1898_v54 = vadd.f32 %v1896_v43, %v1874_v48 }
 0x2f9   : > { %v1915_v27 = vsel %vm1868_vm0, %v1908_v20, %v1910_v21 }
 0x2fa   : > { %2258 = vrot.lane.b32.xlu1 %v3931_v39, %s3609_s5  ;;  %2275 = vrot.lane.b32.xlu0 %v3937_v40, %s3609_s5  ;;  %v1919_v34 = vmul.f32 %v1915_v27, %v3984_v60 }
 0x2fc   : > { %v1914_v29 = vpop.permute.xlu1 %1913  ;;  %v1932_v30 = vpop.permute.xlu0 %1931  ;;  %v1921_v50 = vadd.f32 %v1919_v34, %v1897_v42 }
 0x2fd   : > { %v1916_v35 = vsel %vm1868_vm0, %v1912_v23, %v1914_v29 }
 0x2fe   : > { %2277 = vrot.lane.b32.xlu1 %v3939_v41, %s3609_s5  ;;  %2279 = vrot.lane.b32.xlu0 %v3952_v46, %s3609_s5  ;;  %v1920_v51 = vmul.f32 %v1916_v35, %v4011_v9 }
 0x300   : > { %v1934_v44 = vpop.permute.xlu1 %1933  ;;  %v1936_v45 = vpop.permute.xlu0 %1935  ;;  %v1922_v63 = vadd.f32 %v1920_v51, %v1898_v54 }
 0x301   : > { %v1939_v49 = vsel %vm1868_vm0, %v1932_v30, %v1934_v44 }
 0x302   : > { %v1943_v53 = vmul.f32 %v1939_v49, %v4017_v10  ;;  %2281 = vrot.lane.b32.xlu1 %v3954_v47, %s3609_s5  ;;  %2299 = vrot.lane.b32.xlu0 %v3975_v56, %s3609_s5 }
 0x304   : > { %v1945_v55 = vadd.f32 %v1943_v53, %v1921_v50  ;;  %v1938_v59 = vpop.permute.xlu1 %1937  ;;  %v1959_v61 = vpop.permute.xlu0 %1958 }
 0x305   : > { %v1940_v62 = vsel %vm1868_vm0, %v1936_v45, %v1938_v59 }
 0x306   : > { %3308 = vst [vmem:[%s4043_s23 + $0xe0] sm:$0xff] %v1945_v55  ;;  %v1944_v3 = vmul.f32 %v1940_v62, %v4039_v2  ;;  %2301 = vrot.lane.b32.xlu1 %v3977_v57, %s3609_s5  ;;  %2303 = vrot.lane.b32.xlu0 %v4003_v5, %s3609_s5 }
 0x308   : > { %v1946_v7 = vadd.f32 %v1944_v3, %v1922_v63  ;;  %v1961_v8 = vpop.permute.xlu1 %1960  ;;  %v1963_v11 = vpop.permute.xlu0 %1962 }
 0x309   : > { %v1967_v24 = vsel %vm1966_vm1, %v1959_v61, %v1961_v8 }
 0x30a   : > { %3309 = vst [vmem:[%s4043_s23 + $0xe8] sm:$0xff] %v1946_v7  ;;  %2305 = vrot.lane.b32.xlu1 %v4005_v6, %s3609_s5  ;;  %2323 = vrot.lane.b32.xlu0 %v4027_v15, %s3609_s5  ;;  %v1971_v31 = vmul.f32 %v1967_v24, %v3979_v58 }
 0x30c   : > { %v1965_v12 = vpop.permute.xlu1 %1964  ;;  %v1982_v13 = vpop.permute.xlu0 %1981 }
 0x30d   : > { %v1968_v32 = vsel %vm1966_vm1, %v1963_v11, %v1965_v12 }
 0x30e   : > { %2325 = vrot.lane.b32.xlu1 %v4029_v16, %s3609_s5  ;;  %2327 = vrot.lane.b32.xlu0 %v4041_v22, %s3609_s5  ;;  %v1972_v45 = vmul.f32 %v1968_v32, %v4001_v4 }
 0x310   : > { %v1984_v14 = vpop.permute.xlu1 %1983  ;;  %v1986_v17 = vpop.permute.xlu0 %1985 }
 0x311   : > { %v1989_v23 = vsel %vm1966_vm1, %v1982_v13, %v1984_v14 }
 0x312   : > { %2329 = vrot.lane.b32.xlu1 %v4052_v25, %s3609_s5  ;;  %2350 = vrot.lane.b32.xlu0 %v3923_v36, %s3610_s7  ;;  %v1993_v27 = vmul.f32 %v1989_v23, %v3968_v52  ;;  %s3503_s5 = sshll.u32 %s3618_s22, 4  ;;  %s3504_s5 = int_to_ptr.vmem [resolvable:$false] %s3503_s5 }
 0x313   : > { %p3506_p7 = scmp.lt.s32.totalorder %s5289_s10, %s3504_s5 }
 0x314   : > { %v1988_v18 = vpop.permute.xlu1 %1987  ;;  %v2006_v19 = vpop.permute.xlu0 %2005  ;;  %v1995_v35 = vadd.f32 %v1993_v27, %v1971_v31 }
 0x315   : > { %v1990_v30 = vsel %vm1966_vm1, %v1986_v17, %v1988_v18 }
 0x316   : > { %2352 = vrot.lane.b32.xlu1 %v3929_v38, %s3610_s7  ;;  %2354 = vrot.lane.b32.xlu0 %v3925_v37, %s3610_s7  ;;  %v1994_v42 = vmul.f32 %v1990_v30, %v3998_v1 }
 0x318   : > { %v2008_v20 = vpop.permute.xlu1 %2007  ;;  %v2010_v21 = vpop.permute.xlu0 %2009  ;;  %v1996_v53 = vadd.f32 %v1994_v42, %v1972_v45 }
 0x319   : > { %v2013_v26 = vsel %vm1966_vm1, %v2006_v19, %v2008_v20 }
 0x31a   : > { %2356 = vrot.lane.b32.xlu1 %v3931_v39, %s3610_s7  ;;  %2373 = vrot.lane.b32.xlu0 %v3937_v40, %s3610_s7  ;;  %v2017_v33 = vmul.f32 %v2013_v26, %v3984_v60 }
 0x31c   : > { %v2012_v28 = vpop.permute.xlu1 %2011  ;;  %v2030_v29 = vpop.permute.xlu0 %2029  ;;  %v2019_v49 = vadd.f32 %v2017_v33, %v1995_v35 }
 0x31d   : > { %v2014_v34 = vsel %vm1966_vm1, %v2010_v21, %v2012_v28 }
 0x31e   : > { %2375 = vrot.lane.b32.xlu1 %v3939_v41, %s3610_s7  ;;  %2377 = vrot.lane.b32.xlu0 %v3952_v46, %s3610_s7  ;;  %v2018_v50 = vmul.f32 %v2014_v34, %v4011_v9 }
 0x320   : > { %v2032_v43 = vpop.permute.xlu1 %2031  ;;  %v2034_v44 = vpop.permute.xlu0 %2033  ;;  %v2020_v62 = vadd.f32 %v2018_v50, %v1996_v53 }
 0x321   : > { %v2037_v48 = vsel %vm1966_vm1, %v2030_v29, %v2032_v43 }
 0x322   : > { %v2041_v51 = vmul.f32 %v2037_v48, %v4017_v10  ;;  %2379 = vrot.lane.b32.xlu1 %v3954_v47, %s3610_s7  ;;  %2397 = vrot.lane.b32.xlu0 %v3975_v56, %s3610_s7 }
 0x324   : > { %v2043_v54 = vadd.f32 %v2041_v51, %v2019_v49  ;;  %v2036_v55 = vpop.permute.xlu1 %2035  ;;  %v2057_v59 = vpop.permute.xlu0 %2056 }
 0x325   : > { %v2038_v61 = vsel %vm1966_vm1, %v2034_v44, %v2036_v55 }
 0x326   : > { %3310 = vst [vmem:[%s4043_s23 + $0xf0] sm:$0xff] %v2043_v54  ;;  %v2042_v63 = vmul.f32 %v2038_v61, %v4039_v2  ;;  %2399 = vrot.lane.b32.xlu1 %v3977_v57, %s3610_s7  ;;  %2401 = vrot.lane.b32.xlu0 %v4003_v5, %s3610_s7 }
 0x328   : > { %v2044_v3 = vadd.f32 %v2042_v63, %v2020_v62  ;;  %v2059_v7 = vpop.permute.xlu1 %2058  ;;  %v2061_v8 = vpop.permute.xlu0 %2060 }
 0x329   : > { %v2065_v23 = vsel %vm2064_vm2, %v2057_v59, %v2059_v7 }
 0x32a   : > { %3311 = vst [vmem:[%s4043_s23 + $0xf8] sm:$0xff] %v2044_v3  ;;  %2403 = vrot.lane.b32.xlu1 %v4005_v6, %s3610_s7  ;;  %2421 = vrot.lane.b32.xlu0 %v4027_v15, %s3610_s7  ;;  %v2069_v30 = vmul.f32 %v2065_v23, %v3979_v58 }
 0x32c   : > { %v2063_v11 = vpop.permute.xlu1 %2062  ;;  %v2080_v12 = vpop.permute.xlu0 %2079 }
 0x32d   : > { %v2066_v31 = vsel %vm2064_vm2, %v2061_v8, %v2063_v11 }
 0x32e   : > { %2423 = vrot.lane.b32.xlu1 %v4029_v16, %s3610_s7  ;;  %2425 = vrot.lane.b32.xlu0 %v4041_v22, %s3610_s7  ;;  %v2070_v44 = vmul.f32 %v2066_v31, %v4001_v4 }
 0x330   : > { %v2082_v13 = vpop.permute.xlu1 %2081  ;;  %v2084_v14 = vpop.permute.xlu0 %2083 }
 0x331   : > { %v2087_v21 = vsel %vm2064_vm2, %v2080_v12, %v2082_v13 }
 0x332   : > { %2427 = vrot.lane.b32.xlu1 %v4052_v25, %s3610_s7  ;;  %2448 = vrot.lane.b32.xlu0 %v3923_v36, %s3611_s8  ;;  %v2091_v26 = vmul.f32 %v2087_v21, %v3968_v52  ;;  %s3505_s7 = scalar_lea.vmem %s3504_s5, 13824 }
 0x333   : > { %p3507_p10 = scmp.lt.s32.totalorder %s3505_s7, %s3499_s13 }
 0x334   : > { %v2086_v17 = vpop.permute.xlu1 %2085  ;;  %v2104_v18 = vpop.permute.xlu0 %2103  ;;  %v2093_v34 = vadd.f32 %v2091_v26, %v2069_v30 }
 0x335   : > { %v2088_v29 = vsel %vm2064_vm2, %v2084_v14, %v2086_v17  ;;  %p3508_p9 = por %p3507_p10, %p3506_p7 }
 0x336   : > { %2450 = vrot.lane.b32.xlu1 %v3929_v38, %s3611_s8  ;;  %2452 = vrot.lane.b32.xlu0 %v3925_v37, %s3611_s8  ;;  %v2092_v35 = vmul.f32 %v2088_v29, %v3998_v1 }
 0x337   : > { %p3509_p11 = pnand %p3508_p9, %p3502_p13 }
 0x338   : > { %v2106_v19 = vpop.permute.xlu1 %2105  ;;  %v2108_v20 = vpop.permute.xlu0 %2107  ;;  %v2094_v51 = vadd.f32 %v2092_v35, %v2070_v44 }
 0x339   : > { %v2111_v24 = vsel %vm2064_vm2, %v2104_v18, %v2106_v19 }
 0x33a   : > { %2454 = vrot.lane.b32.xlu1 %v3931_v39, %s3611_s8  ;;  %2471 = vrot.lane.b32.xlu0 %v3937_v40, %s3611_s8  ;;  %v2115_v32 = vmul.f32 %v2111_v24, %v3984_v60 }
 0x33c   : > { %v2110_v27 = vpop.permute.xlu1 %2109  ;;  %v2128_v28 = vpop.permute.xlu0 %2127  ;;  %v2117_v48 = vadd.f32 %v2115_v32, %v2093_v34 }
 0x33d   : > { %v2112_v33 = vsel %vm2064_vm2, %v2108_v20, %v2110_v27 }
 0x33e   : > { %2473 = vrot.lane.b32.xlu1 %v3939_v41, %s3611_s8  ;;  %2475 = vrot.lane.b32.xlu0 %v3952_v46, %s3611_s8  ;;  %v2116_v49 = vmul.f32 %v2112_v33, %v4011_v9 }
 0x340   : > { %v2130_v42 = vpop.permute.xlu1 %2129  ;;  %v2132_v43 = vpop.permute.xlu0 %2131  ;;  %v2118_v61 = vadd.f32 %v2116_v49, %v2094_v51 }
 0x341   : > { %v2135_v45 = vsel %vm2064_vm2, %v2128_v28, %v2130_v42 }
 0x342   : > { %v2139_v50 = vmul.f32 %v2135_v45, %v4017_v10  ;;  %2477 = vrot.lane.b32.xlu1 %v3954_v47, %s3611_s8  ;;  %2495 = vrot.lane.b32.xlu0 %v3975_v56, %s3611_s8 }
 0x344   : > { %v2141_v53 = vadd.f32 %v2139_v50, %v2117_v48  ;;  %v2134_v54 = vpop.permute.xlu1 %2133  ;;  %v2155_v55 = vpop.permute.xlu0 %2154 }
 0x345   : > { %v2136_v59 = vsel %vm2064_vm2, %v2132_v43, %v2134_v54 }
 0x346   : > { %3312 = vst [vmem:[%s4043_s23 + $0x100] sm:$0xff] %v2141_v53  ;;  %v2140_v62 = vmul.f32 %v2136_v59, %v4039_v2  ;;  %2497 = vrot.lane.b32.xlu1 %v3977_v57, %s3611_s8  ;;  %2499 = vrot.lane.b32.xlu0 %v4003_v5, %s3611_s8 }
 0x348   : > { %v2142_v63 = vadd.f32 %v2140_v62, %v2118_v61  ;;  %v2157_v3 = vpop.permute.xlu1 %2156  ;;  %v2159_v7 = vpop.permute.xlu0 %2158 }
 0x349   : > { %v2163_v21 = vsel %vm2162_vm3, %v2155_v55, %v2157_v3 }
 0x34a   : > { %3313 = vst [vmem:[%s4043_s23 + $0x108] sm:$0xff] %v2142_v63  ;;  %2501 = vrot.lane.b32.xlu1 %v4005_v6, %s3611_s8  ;;  %2519 = vrot.lane.b32.xlu0 %v4027_v15, %s3611_s8  ;;  %v2167_v29 = vmul.f32 %v2163_v21, %v3979_v58 }
 0x34c   : > { %v2161_v8 = vpop.permute.xlu1 %2160  ;;  %v2178_v11 = vpop.permute.xlu0 %2177 }
 0x34d   : > { %v2164_v30 = vsel %vm2162_vm3, %v2159_v7, %v2161_v8 }
 0x34e   : > { %2521 = vrot.lane.b32.xlu1 %v4029_v16, %s3611_s8  ;;  %2523 = vrot.lane.b32.xlu0 %v4041_v22, %s3611_s8  ;;  %v2168_v43 = vmul.f32 %v2164_v30, %v4001_v4 }
 0x350   : > { %v2180_v12 = vpop.permute.xlu1 %2179  ;;  %v2182_v13 = vpop.permute.xlu0 %2181 }
 0x351   : > { %v2185_v20 = vsel %vm2162_vm3, %v2178_v11, %v2180_v12 }
 0x352   : > { %2525 = vrot.lane.b32.xlu1 %v4052_v25, %s3611_s8  ;;  %2546 = vrot.lane.b32.xlu0 %v3923_v36, %s3612_s1  ;;  %v2189_v24 = vmul.f32 %v2185_v20, %v3968_v52 }
 0x354   : > { %v2184_v14 = vpop.permute.xlu1 %2183  ;;  %v2202_v17 = vpop.permute.xlu0 %2201  ;;  %v2191_v33 = vadd.f32 %v2189_v24, %v2167_v29 }
 0x355   : > { %v2186_v28 = vsel %vm2162_vm3, %v2182_v13, %v2184_v14 }
 0x356   : > { %2548 = vrot.lane.b32.xlu1 %v3929_v38, %s3612_s1  ;;  %2550 = vrot.lane.b32.xlu0 %v3925_v37, %s3612_s1  ;;  %v2190_v34 = vmul.f32 %v2186_v28, %v3998_v1 }
 0x358   : > { %v2204_v18 = vpop.permute.xlu1 %2203  ;;  %v2206_v19 = vpop.permute.xlu0 %2205  ;;  %v2192_v50 = vadd.f32 %v2190_v34, %v2168_v43 }
 0x359   : > { %v2209_v23 = vsel %vm2162_vm3, %v2202_v17, %v2204_v18 }
 0x35a   : > { %2552 = vrot.lane.b32.xlu1 %v3931_v39, %s3612_s1  ;;  %2569 = vrot.lane.b32.xlu0 %v3937_v40, %s3612_s1  ;;  %v2213_v31 = vmul.f32 %v2209_v23, %v3984_v60 }
 0x35c   : > { %v2208_v26 = vpop.permute.xlu1 %2207  ;;  %v2226_v27 = vpop.permute.xlu0 %2225  ;;  %v2215_v45 = vadd.f32 %v2213_v31, %v2191_v33 }
 0x35d   : > { %v2210_v32 = vsel %vm2162_vm3, %v2206_v19, %v2208_v26 }
 0x35e   : > { %2571 = vrot.lane.b32.xlu1 %v3939_v41, %s3612_s1  ;;  %2573 = vrot.lane.b32.xlu0 %v3952_v46, %s3612_s1  ;;  %v2214_v48 = vmul.f32 %v2210_v32, %v4011_v9 }
 0x360   : > { %v2228_v35 = vpop.permute.xlu1 %2227  ;;  %v2230_v42 = vpop.permute.xlu0 %2229  ;;  %v2216_v59 = vadd.f32 %v2214_v48, %v2192_v50 }
 0x361   : > { %v2233_v44 = vsel %vm2162_vm3, %v2226_v27, %v2228_v35 }
 0x362   : > { %v2237_v49 = vmul.f32 %v2233_v44, %v4017_v10  ;;  %2575 = vrot.lane.b32.xlu1 %v3954_v47, %s3612_s1  ;;  %2593 = vrot.lane.b32.xlu0 %v3975_v56, %s3612_s1 }
 0x364   : > { %v2239_v51 = vadd.f32 %v2237_v49, %v2215_v45  ;;  %v2232_v53 = vpop.permute.xlu1 %2231  ;;  %v2253_v54 = vpop.permute.xlu0 %2252 }
 0x365   : > { %v2234_v55 = vsel %vm2162_vm3, %v2230_v42, %v2232_v53 }
 0x366   : > { %3314 = vst [vmem:[%s4043_s23 + $0x110] sm:$0xff] %v2239_v51  ;;  %v2238_v61 = vmul.f32 %v2234_v55, %v4039_v2  ;;  %2595 = vrot.lane.b32.xlu1 %v3977_v57, %s3612_s1  ;;  %2597 = vrot.lane.b32.xlu0 %v4003_v5, %s3612_s1 }
 0x368   : > { %v2240_v62 = vadd.f32 %v2238_v61, %v2216_v59  ;;  %v2255_v63 = vpop.permute.xlu1 %2254  ;;  %v2257_v3 = vpop.permute.xlu0 %2256 }
 0x369   : > { %v2261_v20 = vsel %vm2260_vm4, %v2253_v54, %v2255_v63 }
 0x36a   : > { %3315 = vst [vmem:[%s4043_s23 + $0x118] sm:$0xff] %v2240_v62  ;;  %2599 = vrot.lane.b32.xlu1 %v4005_v6, %s3612_s1  ;;  %2617 = vrot.lane.b32.xlu0 %v4027_v15, %s3612_s1  ;;  %v2265_v28 = vmul.f32 %v2261_v20, %v3979_v58 }
 0x36c   : > { %v2259_v7 = vpop.permute.xlu1 %2258  ;;  %v2276_v8 = vpop.permute.xlu0 %2275 }
 0x36d   : > { %v2262_v29 = vsel %vm2260_vm4, %v2257_v3, %v2259_v7 }
 0x36e   : > { %2619 = vrot.lane.b32.xlu1 %v4029_v16, %s3612_s1  ;;  %2621 = vrot.lane.b32.xlu0 %v4041_v22, %s3612_s1  ;;  %v2266_v42 = vmul.f32 %v2262_v29, %v4001_v4 }
 0x370   : > { %v2278_v11 = vpop.permute.xlu1 %2277  ;;  %v2280_v12 = vpop.permute.xlu0 %2279 }
 0x371   : > { %v2283_v19 = vsel %vm2260_vm4, %v2276_v8, %v2278_v11 }
 0x372   : > { %2623 = vrot.lane.b32.xlu1 %v4052_v25, %s3612_s1  ;;  %2644 = vrot.lane.b32.xlu0 %v3923_v36, %s3613_s30  ;;  %v2287_v23 = vmul.f32 %v2283_v19, %v3968_v52 }
 0x374   : > { %v2282_v13 = vpop.permute.xlu1 %2281  ;;  %v2300_v14 = vpop.permute.xlu0 %2299  ;;  %v2289_v32 = vadd.f32 %v2287_v23, %v2265_v28 }
 0x375   : > { %v2284_v27 = vsel %vm2260_vm4, %v2280_v12, %v2282_v13 }
 0x376   : > { %2646 = vrot.lane.b32.xlu1 %v3929_v38, %s3613_s30  ;;  %2648 = vrot.lane.b32.xlu0 %v3925_v37, %s3613_s30  ;;  %v2288_v33 = vmul.f32 %v2284_v27, %v3998_v1 }
 0x378   : > { %v2302_v17 = vpop.permute.xlu1 %2301  ;;  %v2304_v18 = vpop.permute.xlu0 %2303  ;;  %v2290_v49 = vadd.f32 %v2288_v33, %v2266_v42 }
 0x379   : > { %v2307_v21 = vsel %vm2260_vm4, %v2300_v14, %v2302_v17 }
 0x37a   : > { %2650 = vrot.lane.b32.xlu1 %v3931_v39, %s3613_s30  ;;  %2667 = vrot.lane.b32.xlu0 %v3937_v40, %s3613_s30  ;;  %v2311_v30 = vmul.f32 %v2307_v21, %v3984_v60 }
 0x37c   : > { %v2306_v24 = vpop.permute.xlu1 %2305  ;;  %v2324_v26 = vpop.permute.xlu0 %2323  ;;  %v2313_v44 = vadd.f32 %v2311_v30, %v2289_v32 }
 0x37d   : > { %v2308_v31 = vsel %vm2260_vm4, %v2304_v18, %v2306_v24 }
 0x37e   : > { %2669 = vrot.lane.b32.xlu1 %v3939_v41, %s3613_s30  ;;  %2671 = vrot.lane.b32.xlu0 %v3952_v46, %s3613_s30  ;;  %v2312_v45 = vmul.f32 %v2308_v31, %v4011_v9 }
 0x380   : > { %v2326_v34 = vpop.permute.xlu1 %2325  ;;  %v2328_v35 = vpop.permute.xlu0 %2327  ;;  %v2314_v55 = vadd.f32 %v2312_v45, %v2290_v49 }
 0x381   : > { %v2331_v43 = vsel %vm2260_vm4, %v2324_v26, %v2326_v34 }
 0x382   : > { %v2335_v48 = vmul.f32 %v2331_v43, %v4017_v10  ;;  %2673 = vrot.lane.b32.xlu1 %v3954_v47, %s3613_s30  ;;  %2691 = vrot.lane.b32.xlu0 %v3975_v56, %s3613_s30 }
 0x384   : > { %v2337_v50 = vadd.f32 %v2335_v48, %v2313_v44  ;;  %v2330_v51 = vpop.permute.xlu1 %2329  ;;  %v2351_v53 = vpop.permute.xlu0 %2350 }
 0x385   : > { %v2332_v54 = vsel %vm2260_vm4, %v2328_v35, %v2330_v51 }
 0x386   : > { %3316 = vst [vmem:[%s4043_s23 + $0x120] sm:$0xff] %v2337_v50  ;;  %v2336_v59 = vmul.f32 %v2332_v54, %v4039_v2  ;;  %2693 = vrot.lane.b32.xlu1 %v3977_v57, %s3613_s30  ;;  %2695 = vrot.lane.b32.xlu0 %v4003_v5, %s3613_s30 }
 0x388   : > { %v2338_v61 = vadd.f32 %v2336_v59, %v2314_v55  ;;  %v2353_v62 = vpop.permute.xlu1 %2352  ;;  %v2355_v63 = vpop.permute.xlu0 %2354 }
 0x389   : > { %v2359_v19 = vsel %vm2358_vm5, %v2351_v53, %v2353_v62 }
 0x38a   : > { %3317 = vst [vmem:[%s4043_s23 + $0x128] sm:$0xff] %v2338_v61  ;;  %2697 = vrot.lane.b32.xlu1 %v4005_v6, %s3613_s30  ;;  %2715 = vrot.lane.b32.xlu0 %v4027_v15, %s3613_s30  ;;  %v2363_v27 = vmul.f32 %v2359_v19, %v3979_v58 }
 0x38c   : > { %v2357_v3 = vpop.permute.xlu1 %2356  ;;  %v2374_v7 = vpop.permute.xlu0 %2373 }
 0x38d   : > { %v2360_v28 = vsel %vm2358_vm5, %v2355_v63, %v2357_v3 }
 0x38e   : > { %2717 = vrot.lane.b32.xlu1 %v4029_v16, %s3613_s30  ;;  %2719 = vrot.lane.b32.xlu0 %v4041_v22, %s3613_s30  ;;  %v2364_v35 = vmul.f32 %v2360_v28, %v4001_v4 }
 0x390   : > { %v2376_v8 = vpop.permute.xlu1 %2375  ;;  %v2378_v11 = vpop.permute.xlu0 %2377 }
 0x391   : > { %v2381_v18 = vsel %vm2358_vm5, %v2374_v7, %v2376_v8 }
 0x392   : > { %2721 = vrot.lane.b32.xlu1 %v4052_v25, %s3613_s30  ;;  %2742 = vrot.lane.b32.xlu0 %v3923_v36, %s3614_s20  ;;  %v2385_v21 = vmul.f32 %v2381_v18, %v3968_v52 }
 0x394   : > { %v2380_v12 = vpop.permute.xlu1 %2379  ;;  %v2398_v13 = vpop.permute.xlu0 %2397  ;;  %v2387_v31 = vadd.f32 %v2385_v21, %v2363_v27 }
 0x395   : > { %v2382_v26 = vsel %vm2358_vm5, %v2378_v11, %v2380_v12 }
 0x396   : > { %2744 = vrot.lane.b32.xlu1 %v3929_v38, %s3614_s20  ;;  %2746 = vrot.lane.b32.xlu0 %v3925_v37, %s3614_s20  ;;  %v2386_v32 = vmul.f32 %v2382_v26, %v3998_v1 }
 0x398   : > { %v2400_v14 = vpop.permute.xlu1 %2399  ;;  %v2402_v17 = vpop.permute.xlu0 %2401  ;;  %v2388_v48 = vadd.f32 %v2386_v32, %v2364_v35 }
 0x399   : > { %v2405_v20 = vsel %vm2358_vm5, %v2398_v13, %v2400_v14 }
 0x39a   : > { %2748 = vrot.lane.b32.xlu1 %v3931_v39, %s3614_s20  ;;  %2765 = vrot.lane.b32.xlu0 %v3937_v40, %s3614_s20  ;;  %v2409_v29 = vmul.f32 %v2405_v20, %v3984_v60 }
 0x39c   : > { %v2404_v23 = vpop.permute.xlu1 %2403  ;;  %v2422_v24 = vpop.permute.xlu0 %2421  ;;  %v2411_v43 = vadd.f32 %v2409_v29, %v2387_v31 }
 0x39d   : > { %v2406_v30 = vsel %vm2358_vm5, %v2402_v17, %v2404_v23 }
 0x39e   : > { %2767 = vrot.lane.b32.xlu1 %v3939_v41, %s3614_s20  ;;  %2769 = vrot.lane.b32.xlu0 %v3952_v46, %s3614_s20  ;;  %v2410_v44 = vmul.f32 %v2406_v30, %v4011_v9 }
 0x3a0   : > { %v2424_v33 = vpop.permute.xlu1 %2423  ;;  %v2426_v34 = vpop.permute.xlu0 %2425  ;;  %v2412_v54 = vadd.f32 %v2410_v44, %v2388_v48 }
 0x3a1   : > { %v2429_v42 = vsel %vm2358_vm5, %v2422_v24, %v2424_v33 }
 0x3a2   : > { %v2433_v45 = vmul.f32 %v2429_v42, %v4017_v10  ;;  %2771 = vrot.lane.b32.xlu1 %v3954_v47, %s3614_s20  ;;  %2789 = vrot.lane.b32.xlu0 %v3975_v56, %s3614_s20 }
 0x3a4   : > { %v2435_v49 = vadd.f32 %v2433_v45, %v2411_v43  ;;  %v2428_v50 = vpop.permute.xlu1 %2427  ;;  %v2449_v51 = vpop.permute.xlu0 %2448 }
 0x3a5   : > { %v2430_v53 = vsel %vm2358_vm5, %v2426_v34, %v2428_v50 }
 0x3a6   : > { %3318 = vst [vmem:[%s4043_s23 + $0x130] sm:$0xff] %v2435_v49  ;;  %v2434_v55 = vmul.f32 %v2430_v53, %v4039_v2  ;;  %2791 = vrot.lane.b32.xlu1 %v3977_v57, %s3614_s20  ;;  %2793 = vrot.lane.b32.xlu0 %v4003_v5, %s3614_s20 }
 0x3a8   : > { %v2436_v59 = vadd.f32 %v2434_v55, %v2412_v54  ;;  %v2451_v61 = vpop.permute.xlu1 %2450  ;;  %v2453_v62 = vpop.permute.xlu0 %2452 }
 0x3a9   : > { %v2457_v18 = vsel %vm2456_vm6, %v2449_v51, %v2451_v61 }
 0x3aa   : > { %3319 = vst [vmem:[%s4043_s23 + $0x138] sm:$0xff] %v2436_v59  ;;  %2795 = vrot.lane.b32.xlu1 %v4005_v6, %s3614_s20  ;;  %2813 = vrot.lane.b32.xlu0 %v4027_v15, %s3614_s20  ;;  %v2461_v26 = vmul.f32 %v2457_v18, %v3979_v58 }
 0x3ac   : > { %v2455_v63 = vpop.permute.xlu1 %2454  ;;  %v2472_v3 = vpop.permute.xlu0 %2471 }
 0x3ad   : > { %v2458_v27 = vsel %vm2456_vm6, %v2453_v62, %v2455_v63 }
 0x3ae   : > { %2815 = vrot.lane.b32.xlu1 %v4029_v16, %s3614_s20  ;;  %2817 = vrot.lane.b32.xlu0 %v4041_v22, %s3614_s20  ;;  %v2462_v34 = vmul.f32 %v2458_v27, %v4001_v4 }
 0x3b0   : > { %v2474_v7 = vpop.permute.xlu1 %2473  ;;  %v2476_v8 = vpop.permute.xlu0 %2475 }
 0x3b1   : > { %v2479_v17 = vsel %vm2456_vm6, %v2472_v3, %v2474_v7 }
 0x3b2   : > { %2819 = vrot.lane.b32.xlu1 %v4052_v25, %s3614_s20  ;;  %2840 = vrot.lane.b32.xlu0 %v3923_v36, %s3615_s24  ;;  %v2483_v20 = vmul.f32 %v2479_v17, %v3968_v52 }
 0x3b4   : > { %v2478_v11 = vpop.permute.xlu1 %2477  ;;  %v2496_v12 = vpop.permute.xlu0 %2495  ;;  %v2485_v30 = vadd.f32 %v2483_v20, %v2461_v26 }
 0x3b5   : > { %v2480_v24 = vsel %vm2456_vm6, %v2476_v8, %v2478_v11 }
 0x3b6   : > { %2842 = vrot.lane.b32.xlu1 %v3929_v38, %s3615_s24  ;;  %2844 = vrot.lane.b32.xlu0 %v3925_v37, %s3615_s24  ;;  %v2484_v31 = vmul.f32 %v2480_v24, %v3998_v1 }
 0x3b8   : > { %v2498_v13 = vpop.permute.xlu1 %2497  ;;  %v2500_v14 = vpop.permute.xlu0 %2499  ;;  %v2486_v45 = vadd.f32 %v2484_v31, %v2462_v34 }
 0x3b9   : > { %v2503_v19 = vsel %vm2456_vm6, %v2496_v12, %v2498_v13 }
 0x3ba   : > { %2846 = vrot.lane.b32.xlu1 %v3931_v39, %s3615_s24  ;;  %2863 = vrot.lane.b32.xlu0 %v3937_v40, %s3615_s24  ;;  %v2507_v28 = vmul.f32 %v2503_v19, %v3984_v60 }
 0x3bc   : > { %v2502_v21 = vpop.permute.xlu1 %2501  ;;  %v2520_v23 = vpop.permute.xlu0 %2519  ;;  %v2509_v42 = vadd.f32 %v2507_v28, %v2485_v30 }
 0x3bd   : > { %v2504_v29 = vsel %vm2456_vm6, %v2500_v14, %v2502_v21 }
 0x3be   : > { %2865 = vrot.lane.b32.xlu1 %v3939_v41, %s3615_s24  ;;  %2867 = vrot.lane.b32.xlu0 %v3952_v46, %s3615_s24  ;;  %v2508_v43 = vmul.f32 %v2504_v29, %v4011_v9 }
 0x3c0   : > { %v2522_v32 = vpop.permute.xlu1 %2521  ;;  %v2524_v33 = vpop.permute.xlu0 %2523  ;;  %v2510_v53 = vadd.f32 %v2508_v43, %v2486_v45 }
 0x3c1   : > { %v2527_v35 = vsel %vm2456_vm6, %v2520_v23, %v2522_v32 }
 0x3c2   : > { %v2531_v44 = vmul.f32 %v2527_v35, %v4017_v10  ;;  %2869 = vrot.lane.b32.xlu1 %v3954_v47, %s3615_s24  ;;  %2887 = vrot.lane.b32.xlu0 %v3975_v56, %s3615_s24 }
 0x3c4   : > { %v2533_v48 = vadd.f32 %v2531_v44, %v2509_v42  ;;  %v2526_v49 = vpop.permute.xlu1 %2525  ;;  %v2547_v50 = vpop.permute.xlu0 %2546 }
 0x3c5   : > { %v2528_v51 = vsel %vm2456_vm6, %v2524_v33, %v2526_v49 }
 0x3c6   : > { %3320 = vst [vmem:[%s4043_s23 + $0x140] sm:$0xff] %v2533_v48  ;;  %v2532_v54 = vmul.f32 %v2528_v51, %v4039_v2  ;;  %2889 = vrot.lane.b32.xlu1 %v3977_v57, %s3615_s24  ;;  %2891 = vrot.lane.b32.xlu0 %v4003_v5, %s3615_s24 }
 0x3c8   : > { %v2534_v55 = vadd.f32 %v2532_v54, %v2510_v53  ;;  %v2549_v59 = vpop.permute.xlu1 %2548  ;;  %v2551_v61 = vpop.permute.xlu0 %2550 }
 0x3c9   : > { %v2555_v17 = vsel %vm2554_vm7, %v2547_v50, %v2549_v59 }
 0x3ca   : > { %3321 = vst [vmem:[%s4043_s23 + $0x148] sm:$0xff] %v2534_v55  ;;  %2893 = vrot.lane.b32.xlu1 %v4005_v6, %s3615_s24  ;;  %2911 = vrot.lane.b32.xlu0 %v4027_v15, %s3615_s24  ;;  %v2559_v24 = vmul.f32 %v2555_v17, %v3979_v58 }
 0x3cc   : > { %v2553_v62 = vpop.permute.xlu1 %2552  ;;  %v2570_v63 = vpop.permute.xlu0 %2569 }
 0x3cd   : > { %v2556_v26 = vsel %vm2554_vm7, %v2551_v61, %v2553_v62 }
 0x3ce   : > { %2913 = vrot.lane.b32.xlu1 %v4029_v16, %s3615_s24  ;;  %2938 = vrot.lane.b32.xlu0 %v3923_v36, %s3616_s4  ;;  %v2560_v33 = vmul.f32 %v2556_v26, %v4001_v4 }
 0x3d0   : > { %v2572_v3 = vpop.permute.xlu1 %2571  ;;  %v2574_v7 = vpop.permute.xlu0 %2573 }
 0x3d1   : > { %v2577_v14 = vsel %vm2554_vm7, %v2570_v63, %v2572_v3 }
 0x3d2   : > { %2940 = vrot.lane.b32.xlu1 %v3929_v38, %s3616_s4  ;;  %2942 = vrot.lane.b32.xlu0 %v3925_v37, %s3616_s4  ;;  %v2581_v19 = vmul.f32 %v2577_v14, %v3968_v52 }
 0x3d4   : > { %v2576_v8 = vpop.permute.xlu1 %2575  ;;  %v2594_v11 = vpop.permute.xlu0 %2593  ;;  %v2583_v29 = vadd.f32 %v2581_v19, %v2559_v24 }
 0x3d5   : > { %v2578_v23 = vsel %vm2554_vm7, %v2574_v7, %v2576_v8 }
 0x3d6   : > { %2944 = vrot.lane.b32.xlu1 %v3931_v39, %s3616_s4  ;;  %2961 = vrot.lane.b32.xlu0 %v3937_v40, %s3616_s4  ;;  %v2582_v30 = vmul.f32 %v2578_v23, %v3998_v1 }
 0x3d8   : > { %v2596_v12 = vpop.permute.xlu1 %2595  ;;  %v2598_v13 = vpop.permute.xlu0 %2597 }
 0x3d9   : > { %v2601_v18 = vsel %vm2554_vm7, %v2594_v11, %v2596_v12 }
 0x3da   : > { %2963 = vrot.lane.b32.xlu1 %v3939_v41, %s3616_s4  ;;  %2965 = vrot.lane.b32.xlu0 %v3952_v46, %s3616_s4  ;;  %v2605_v27 = vmul.f32 %v2601_v18, %v3984_v60 }
 0x3dc   : > { %v2600_v20 = vpop.permute.xlu1 %2599  ;;  %v2618_v21 = vpop.permute.xlu0 %2617  ;;  %v2607_v35 = vadd.f32 %v2605_v27, %v2583_v29 }
 0x3dd   : > { %v2602_v28 = vsel %vm2554_vm7, %v2598_v13, %v2600_v20 }
 0x3de   : > { %2967 = vrot.lane.b32.xlu1 %v3954_v47, %s3616_s4  ;;  %3036 = vrot.lane.b32.xlu0 %v3923_v36, %s3617_s11  ;;  %v2606_v42 = vmul.f32 %v2602_v28, %v4011_v9  ;;  %v2584_v36 = vadd.f32 %v2582_v30, %v2560_v33 }
 0x3e0   : > { %v2620_v31 = vpop.permute.xlu1 %2619  ;;  %v2622_v32 = vpop.permute.xlu0 %2621  ;;  %v2608_v50 = vadd.f32 %v2606_v42, %v2584_v36 }
 0x3e1   : > { %v2625_v34 = vsel %vm2554_vm7, %v2618_v21, %v2620_v31 }
 0x3e2   : > { %v2629_v43 = vmul.f32 %v2625_v34, %v4017_v10  ;;  %3038 = vrot.lane.b32.xlu1 %v3929_v38, %s3617_s11  ;;  %3040 = vrot.lane.b32.xlu0 %v3925_v37, %s3617_s11 }
 0x3e4   : > { %v2631_v44 = vadd.f32 %v2629_v43, %v2607_v35  ;;  %v2624_v45 = vpop.permute.xlu1 %2623  ;;  %v2645_v48 = vpop.permute.xlu0 %2644 }
 0x3e5   : > { %v2626_v49 = vsel %vm2554_vm7, %v2622_v32, %v2624_v45 }
 0x3e6   : > { %3322 = vst [vmem:[%s4043_s23 + $0x150] sm:$0xff] %v2631_v44  ;;  %v2630_v51 = vmul.f32 %v2626_v49, %v4039_v2  ;;  %3042 = vrot.lane.b32.xlu1 %v3931_v39, %s3617_s11  ;;  %3059 = vrot.lane.b32.xlu0 %v3937_v40, %s3617_s11 }
 0x3e8   : > { %v2632_v38 = vadd.f32 %v2630_v51, %v2608_v50  ;;  %v2647_v53 = vpop.permute.xlu1 %2646  ;;  %v2649_v54 = vpop.permute.xlu0 %2648 }
 0x3e9   : > { %v2653_v62 = vsel %vm2652_vm8, %v2645_v48, %v2647_v53 }
 0x3ea   : > { %3323 = vst [vmem:[%s4043_s23 + $0x158] sm:$0xff] %v2632_v38  ;;  %3061 = vrot.lane.b32.xlu1 %v3939_v41, %s3617_s11  ;;  %3063 = vrot.lane.b32.xlu0 %v3952_v46, %s3617_s11  ;;  %v2657_v11 = vmul.f32 %v2653_v62, %v3979_v58 }
 0x3ec   : > { %v2651_v37 = vpop.permute.xlu1 %2650  ;;  %v2668_v55 = vpop.permute.xlu0 %2667 }
 0x3ed   : > { %v2654_v12 = vsel %vm2652_vm8, %v2649_v54, %v2651_v37 }
 0x3ee   : > { %3065 = vrot.lane.b32.xlu1 %v3954_v47, %s3617_s11  ;;  %2985 = vrot.lane.b32.xlu0 %v3975_v56, %s3616_s4  ;;  %v2658_v19 = vmul.f32 %v2654_v12, %v4001_v4 }
 0x3f0   : > { %v2670_v39 = vpop.permute.xlu1 %2669  ;;  %v2672_v40 = vpop.permute.xlu0 %2671 }
 0x3f1   : > { %v2675_v61 = vsel %vm2652_vm8, %v2668_v55, %v2670_v39 }
 0x3f2   : > { %2987 = vrot.lane.b32.xlu1 %v3977_v57, %s3616_s4  ;;  %2989 = vrot.lane.b32.xlu0 %v4003_v5, %s3616_s4  ;;  %v2679_v3 = vmul.f32 %v2675_v61, %v3968_v52 }
 0x3f4   : > { %v2674_v41 = vpop.permute.xlu1 %2673  ;;  %v2692_v59 = vpop.permute.xlu0 %2691 }
 0x3f6   : > { %2991 = vrot.lane.b32.xlu1 %v4005_v6, %s3616_s4  ;;  %3083 = vrot.lane.b32.xlu0 %v3975_v56, %s3617_s11  ;;  %v2676_v56 = vsel %vm2652_vm8, %v2672_v40, %v2674_v41 }
 0x3f7   : > { %v2680_v14 = vmul.f32 %v2676_v56, %v3998_v1 }
 0x3f8   : > { %v2694_v46 = vpop.permute.xlu1 %2693  ;;  %v2696_v47 = vpop.permute.xlu0 %2695 }
 0x3f9   : > { %v2699_v63 = vsel %vm2652_vm8, %v2692_v59, %v2694_v46  ;;  %v2682_v24 = vadd.f32 %v2680_v14, %v2658_v19 }
 0x3fa   : > { %3085 = vrot.lane.b32.xlu1 %v3977_v57, %s3617_s11  ;;  %3087 = vrot.lane.b32.xlu0 %v4003_v5, %s3617_s11  ;;  %v2703_v13 = vmul.f32 %v2699_v63, %v3984_v60  ;;  %v2681_v5 = vadd.f32 %v2679_v3, %v2657_v11 }
 0x3fc   : > { %v2698_v7 = vpop.permute.xlu1 %2697  ;;  %v2716_v8 = vpop.permute.xlu0 %2715  ;;  %v2705_v21 = vadd.f32 %v2703_v13, %v2681_v5 }
 0x3fd   : > { %v2700_v57 = vsel %vm2652_vm8, %v2696_v47, %v2698_v7 }
 0x3fe   : > { %3089 = vrot.lane.b32.xlu1 %v4005_v6, %s3617_s11  ;;  %2915 = vrot.lane.b32.xlu0 %v4041_v22, %s3615_s24  ;;  %v2704_v23 = vmul.f32 %v2700_v57, %v4011_v9 }
 0x400   : > { %v2718_v17 = vpop.permute.xlu1 %2717  ;;  %v2720_v18 = vpop.permute.xlu0 %2719  ;;  %v2706_v30 = vadd.f32 %v2704_v23, %v2682_v24 }
 0x401   : > { %v2723_v20 = vsel %vm2652_vm8, %v2716_v8, %v2718_v17 }
 0x402   : > { %v2727_v6 = vmul.f32 %v2723_v20, %v4017_v10  ;;  %2917 = vrot.lane.b32.xlu1 %v4052_v25, %s3615_s24  ;;  %3009 = vrot.lane.b32.xlu0 %v4027_v15, %s3616_s4 }
 0x404   : > { %v2729_v26 = vadd.f32 %v2727_v6, %v2705_v21  ;;  %v2722_v27 = vpop.permute.xlu1 %2721  ;;  %v2743_v28 = vpop.permute.xlu0 %2742 }
 0x405   : > { %v2724_v29 = vsel %vm2652_vm8, %v2720_v18, %v2722_v27 }
 0x406   : > { %3324 = vst [vmem:[%s4043_s23 + $0x160] sm:$0xff] %v2729_v26  ;;  %v2728_v31 = vmul.f32 %v2724_v29, %v4039_v2  ;;  %3011 = vrot.lane.b32.xlu1 %v4029_v16, %s3616_s4  ;;  %3013 = vrot.lane.b32.xlu0 %v4041_v22, %s3616_s4 }
 0x408   : > { %v2730_v32 = vadd.f32 %v2728_v31, %v2706_v30  ;;  %v2745_v33 = vpop.permute.xlu1 %2744  ;;  %v2747_v34 = vpop.permute.xlu0 %2746 }
 0x409   : > { %v2751_v50 = vsel %vm2750_vm9, %v2743_v28, %v2745_v33 }
 0x40a   : > { %3325 = vst [vmem:[%s4043_s23 + $0x168] sm:$0xff] %v2730_v32  ;;  %3015 = vrot.lane.b32.xlu1 %v4052_v25, %s3616_s4  ;;  %3107 = vrot.lane.b32.xlu0 %v4027_v15, %s3617_s11  ;;  %v2755_v54 = vmul.f32 %v2751_v50, %v3979_v58 }
 0x40c   : > { %v2749_v35 = vpop.permute.xlu1 %2748  ;;  %v2766_v42 = vpop.permute.xlu0 %2765 }
 0x40d   : > { %v2752_v37 = vsel %vm2750_vm9, %v2747_v34, %v2749_v35 }
 0x40e   : > { %3109 = vrot.lane.b32.xlu1 %v4029_v16, %s3617_s11  ;;  %3111 = vrot.lane.b32.xlu0 %v4041_v22, %s3617_s11  ;;  %v2756_v47 = vmul.f32 %v2752_v37, %v4001_v4 }
 0x410   : > { %v2768_v43 = vpop.permute.xlu1 %2767  ;;  %v2770_v36 = vpop.permute.xlu0 %2769 }
 0x411   : > { %v2773_v15 = vsel %vm2750_vm9, %v2766_v42, %v2768_v43 }
 0x412   : > { %3113 = vrot.lane.b32.xlu1 %v4052_v25, %s3617_s11  ;;  %v2777_v16 = vmul.f32 %v2773_v15, %v3968_v52 }
 0x414   : > { %v2772_v44 = vpop.permute.xlu1 %2771  ;;  %v2790_v45 = vpop.permute.xlu0 %2789  ;;  %v2779_v39 = vadd.f32 %v2777_v16, %v2755_v54 }
 0x415   : > { %v2774_v53 = vsel %vm2750_vm9, %v2770_v36, %v2772_v44 }
 0x416   : > { %v2778_v40 = vmul.f32 %v2774_v53, %v3998_v1 }
 0x418   : > { %v2792_v48 = vpop.permute.xlu1 %2791  ;;  %v2794_v49 = vpop.permute.xlu0 %2793  ;;  %v2780_v3 = vadd.f32 %v2778_v40, %v2756_v47 }
 0x419   : > { %v2797_v51 = vsel %vm2750_vm9, %v2790_v45, %v2792_v48 }
 0x41a   : > { %v2801_v25 = vmul.f32 %v2797_v51, %v3984_v60 }
 0x41c   : > { %v2796_v38 = vpop.permute.xlu1 %2795  ;;  %v2814_v22 = vpop.permute.xlu0 %2813  ;;  %v2803_v61 = vadd.f32 %v2801_v25, %v2779_v39 }
 0x41d   : > { %v2798_v55 = vsel %vm2750_vm9, %v2794_v49, %v2796_v38 }
 0x41e   : > { %v2802_v62 = vmul.f32 %v2798_v55, %v4011_v9 }
 0x420   : > { %v2816_v41 = vpop.permute.xlu1 %2815  ;;  %v2818_v59 = vpop.permute.xlu0 %2817  ;;  %v2804_v12 = vadd.f32 %v2802_v62, %v2780_v3 }
 0x421   : > { %v2821_v46 = vsel %vm2750_vm9, %v2814_v22, %v2816_v41 }
 0x422   : > { %v2825_v63 = vmul.f32 %v2821_v46, %v4017_v10 }
 0x424   : > { %v2827_v7 = vadd.f32 %v2825_v63, %v2803_v61  ;;  %v2820_v8 = vpop.permute.xlu1 %2819  ;;  %v2841_v56 = vpop.permute.xlu0 %2840 }
 0x425   : > { %v2822_v11 = vsel %vm2750_vm9, %v2818_v59, %v2820_v8 }
 0x426   : > { %3326 = vst [vmem:[%s4043_s23 + $0x170] sm:$0xff] %v2827_v7  ;;  %v2826_v13 = vmul.f32 %v2822_v11, %v4039_v2 }
 0x428   : > { %v2828_v57 = vadd.f32 %v2826_v13, %v2804_v12  ;;  %v2843_v5 = vpop.permute.xlu1 %2842  ;;  %v2845_v14 = vpop.permute.xlu0 %2844 }
 0x429   : > { %v2849_v28 = vsel %vm2848_vm10, %v2841_v56, %v2843_v5 }
 0x42a   : > { %3327 = vst [vmem:[%s4043_s23 + $0x178] sm:$0xff] %v2828_v57  ;;  %v2853_v33 = vmul.f32 %v2849_v28, %v3979_v58 }
 0x42c   : > { %v2847_v17 = vpop.permute.xlu1 %2846  ;;  %v2864_v18 = vpop.permute.xlu0 %2863 }
 0x42d   : > { %v2850_v19 = vsel %vm2848_vm10, %v2845_v14, %v2847_v17 }
 0x42e   : > { %v2854_v57 = vmul.f32 %v2850_v19, %v4001_v4 }
 0x430   : > { %v2866_v20 = vpop.permute.xlu1 %2865  ;;  %v2868_v21 = vpop.permute.xlu0 %2867 }
 0x431   : > { %v2871_v27 = vsel %vm2848_vm10, %v2864_v18, %v2866_v20 }
 0x432   : > { %v2875_v30 = vmul.f32 %v2871_v27, %v3968_v52 }
 0x434   : > { %v2870_v23 = vpop.permute.xlu1 %2869  ;;  %v2888_v6 = vpop.permute.xlu0 %2887  ;;  %v2877_v35 = vadd.f32 %v2875_v30, %v2853_v33 }
 0x435   : > { %v2872_v7 = vsel %vm2848_vm10, %v2868_v21, %v2870_v23 }
 0x436   : > { %v2876_v56 = vmul.f32 %v2872_v7, %v3998_v1 }
 0x438   : > { %v2890_v24 = vpop.permute.xlu1 %2889  ;;  %v2892_v26 = vpop.permute.xlu0 %2891  ;;  %v2878_v18 = vadd.f32 %v2876_v56, %v2854_v57 }
 0x439   : > { %v2895_v29 = vsel %vm2848_vm10, %v2888_v6, %v2890_v24 }
 0x43a   : > { %v2899_v34 = vmul.f32 %v2895_v29, %v3984_v60 }
 0x43c   : > { %v2894_v31 = vpop.permute.xlu1 %2893  ;;  %v2912_v32 = vpop.permute.xlu0 %2911  ;;  %v2901_v44 = vadd.f32 %v2899_v34, %v2877_v35 }
 0x43d   : > { %v2896_v8 = vsel %vm2848_vm10, %v2892_v26, %v2894_v31 }
 0x43e   : > { %v2900_v5 = vmul.f32 %v2896_v8, %v4011_v9 }
 0x440   : > { %v2914_v42 = vpop.permute.xlu1 %2913  ;;  %v2939_v43 = vpop.permute.xlu0 %2938  ;;  %v2902_v26 = vadd.f32 %v2900_v5, %v2878_v18 }
 0x441   : > { %v2919_v36 = vsel %vm2848_vm10, %v2912_v32, %v2914_v42 }
 0x442   : > { %v2923_v45 = vmul.f32 %v2919_v36, %v4017_v10 }
 0x444   : > { %v2925_v48 = vadd.f32 %v2923_v45, %v2901_v44  ;;  %v2941_v49 = vpop.permute.xlu1 %2940  ;;  %v2943_v15 = vpop.permute.xlu0 %2942 }
 0x445   : > { %v2947_v14 = vsel %vm2946_vm11, %v2939_v43, %v2941_v49 }
 0x446   : > { %3328 = vst [vmem:[%s4043_s23 + $0x180] sm:$0xff] %v2925_v48  ;;  %v2951_v27 = vmul.f32 %v2947_v14, %v3979_v58 }
 0x448   : > { %v2945_v50 = vpop.permute.xlu1 %2944  ;;  %v2962_v51 = vpop.permute.xlu0 %2961 }
 0x449   : > { %v2948_v29 = vsel %vm2946_vm11, %v2943_v15, %v2945_v50 }
 0x44a   : > { %v2952_v36 = vmul.f32 %v2948_v29, %v4001_v4 }
 0x44c   : > { %v2964_v16 = vpop.permute.xlu1 %2963  ;;  %v2966_v38 = vpop.permute.xlu0 %2965 }
 0x44d   : > { %v2969_v13 = vsel %vm2946_vm11, %v2962_v51, %v2964_v16 }
 0x44e   : > { %v2973_v20 = vmul.f32 %v2969_v13, %v3968_v52 }
 0x450   : > { %v2968_v22 = vpop.permute.xlu1 %2967  ;;  %v3037_v53 = vpop.permute.xlu0 %3036  ;;  %v2975_v31 = vadd.f32 %v2973_v20, %v2951_v27 }
 0x451   : > { %v2970_v6 = vsel %vm2946_vm11, %v2966_v38, %v2968_v22 }
 0x452   : > { %v2974_v32 = vmul.f32 %v2970_v6, %v3998_v1 }
 0x454   : > { %v3039_v54 = vpop.permute.xlu1 %3038  ;;  %v5233_v25 = vpop.permute.xlu0 %3040  ;;  %v2976_v50 = vadd.f32 %v2974_v32, %v2952_v36 }
 0x455   : > { %v3045_v49 = vsel %vm3044_vm12, %v3037_v53, %v3039_v54 }
 0x458   : > { %v5235_v37 = vpop.permute.xlu1 %3042  ;;  %v3060_v55 = vpop.permute.xlu0 %3059 }
 0x45c   : > { %v3062_v39 = vpop.permute.xlu1 %3061  ;;  %v3064_v40 = vpop.permute.xlu0 %3063 }
 0x45d   : > { %v3067_v42 = vsel %vm3044_vm12, %v3060_v55, %v3062_v39  ;;  %v3049_v39 = vmul.f32 %v3045_v49, %v3979_v58 }
 0x45e   : > { %v3071_v51 = vmul.f32 %v3067_v42, %v3968_v52  ;;  %v3046_v52 = vsel %vm3044_vm12, %v5233_v25, %v5235_v37 }
 0x460   : > { %v3066_v41 = vpop.permute.xlu1 %3065  ;;  %v2986_v59 = vpop.permute.xlu0 %2985 }
 0x461   : > { %v3068_v22 = vsel %vm3044_vm12, %v3064_v40, %v3066_v41  ;;  %v3073_v40 = vadd.f32 %v3071_v51, %v3049_v39 }
 0x462   : > { %v3072_v41 = vmul.f32 %v3068_v22, %v3998_v1 }
 0x464   : > { %v2988_v46 = vpop.permute.xlu1 %2987  ;;  %v2990_v47 = vpop.permute.xlu0 %2989 }
 0x465   : > { %v2993_v17 = vsel %vm2946_vm11, %v2986_v59, %v2988_v46 }
 0x466   : > { %v2997_v19 = vmul.f32 %v2993_v17, %v3984_v60 }
 0x468   : > { %v2992_v61 = vpop.permute.xlu1 %2991  ;;  %v3084_v62 = vpop.permute.xlu0 %3083  ;;  %v2999_v44 = vadd.f32 %v2997_v19, %v2975_v31 }
 0x469   : > { %v2994_v30 = vsel %vm2946_vm11, %v2990_v47, %v2992_v61 }
 0x46a   : > { %v2998_v45 = vmul.f32 %v2994_v30, %v4011_v9 }
 0x46c   : > { %v3086_v63 = vpop.permute.xlu1 %3085  ;;  %v3088_v3 = vpop.permute.xlu0 %3087  ;;  %v3000_v59 = vadd.f32 %v2998_v45, %v2976_v50 }
 0x46d   : > { %v3091_v15 = vsel %vm3044_vm12, %v3084_v62, %v3086_v63  ;;  %v3050_v62 = vmul.f32 %v3046_v52, %v4001_v4 }
 0x46e   : > { %v3095_v46 = vmul.f32 %v3091_v15, %v3984_v60 }
 0x46f   : > { %v3074_v37 = vadd.f32 %v3072_v41, %v3050_v62 }
 0x470   : > { %v3090_v11 = vpop.permute.xlu1 %3089  ;;  %v2916_v12 = vpop.permute.xlu0 %2915  ;;  %v3097_v63 = vadd.f32 %v3095_v46, %v3073_v40 }
 0x471   : > { %v3092_v47 = vsel %vm3044_vm12, %v3088_v3, %v3090_v11 }
 0x472   : > { %v3096_v7 = vmul.f32 %v3092_v47, %v4011_v9 }
 0x474   : > { %v2918_v21 = vpop.permute.xlu1 %2917  ;;  %v3010_v23 = vpop.permute.xlu0 %3009  ;;  %v3098_v11 = vadd.f32 %v3096_v7, %v3074_v37 }
 0x475   : > { %v2920_v24 = vsel %vm2848_vm10, %v2916_v12, %v2918_v21 }
 0x476   : > { %v2924_v28 = vmul.f32 %v2920_v24, %v4039_v2 }
 0x478   : > { %v2926_v33 = vadd.f32 %v2924_v28, %v2902_v26  ;;  %v3012_v34 = vpop.permute.xlu1 %3011  ;;  %v3014_v35 = vpop.permute.xlu0 %3013 }
 0x479   : > { %v3017_v43 = vsel %vm2946_vm11, %v3010_v23, %v3012_v34 }
 0x47a   : > { %3329 = vst [vmem:[%s4043_s23 + $0x188] sm:$0xff] %v2926_v33  ;;  %v3021_v48 = vmul.f32 %v3017_v43, %v4017_v10 }
 0x47c   : > { %v3023_v16 = vadd.f32 %v3021_v48, %v2999_v44  ;;  %v3016_v38 = vpop.permute.xlu1 %3015  ;;  %v3108_v54 = vpop.permute.xlu0 %3107 }
 0x47d   : > { %v3018_v55 = vsel %vm2946_vm11, %v3014_v35, %v3016_v38 }
 0x47e   : > { %3330 = vst [vmem:[%s4043_s23 + $0x190] sm:$0xff] %v3023_v16  ;;  %v3022_v53 = vmul.f32 %v3018_v55, %v4039_v2 }
 0x480   : > { %v3024_v58 = vadd.f32 %v3022_v53, %v3000_v59  ;;  %v3110_v61 = vpop.permute.xlu1 %3109  ;;  %v3112_v1 = vpop.permute.xlu0 %3111 }
 0x481   : > { %v3115_v60 = vsel %vm3044_vm12, %v3108_v54, %v3110_v61 }
 0x482   : > { %3331 = vst [vmem:[%s4043_s23 + $0x198] sm:$0xff] %v3024_v58  ;;  %v3119_v25 = vmul.f32 %v3115_v60, %v4017_v10 }
 0x484   : > { %v3121_v3 = vadd.f32 %v3119_v25, %v3097_v63  ;;  %v3114_v8 = vpop.permute.xlu1 %3113 }
 0x485   : > { %v3116_v56 = vsel %vm3044_vm12, %v3112_v1, %v3114_v8 }
 0x486   : > { %3332 = vst [vmem:[%s4043_s23 + $0x1a0] sm:$0xff] %v3121_v3  ;;  %v3120_v4 = vmul.f32 %v3116_v56, %v4039_v2 }
 0x488   : > { %v3122_v9 = vadd.f32 %v3120_v4, %v3098_v11 }
 0x48a   : > { %3333 = vst [vmem:[%s4043_s23 + $0x1a8] sm:$0xff] %v3122_v9 }
 0x48b   : > { %3512 = shalt.err (!%p3509_p11)
}
 0x48c   : > { %s3513_s23 = scalar_lea.hbm %s5287_s25, 6912  ;;  %s3517_s30 = scalar_lea.hbm %s5342_s3, 13824 }
 0x48d   : > { %p3514_p1 = scmp.ne.s32.totalorder %s5287_s25, %s3513_s23  ;;  %p3518_p5 = scmp.lt.u32.totalorder %s5287_s25, %s5342_s3 }
 0x48e   : > { %p3519_p4 = scmp.lt.u32.totalorder %s3517_s30, %s3513_s23  ;;  %p3521_p0 = scmp.lt.u32.totalorder %s3513_s23, %s5287_s25 }
 0x48f   : > { %p3515_p6 = pnand %p3514_p1, %p5353_p3 }
 0x490   : > { %p3520_p8 = por %p3519_p4, %p3518_p5 }
 0x491   : > { %p3516_p2 = pneg %p3515_p6 }
 0x492   : > { %p3522_p12 = por %p3521_p0, %p3520_p8 }
 0x494   : > { %p3523_p13 = pnand %p3522_p12, %p3516_p2 }
 0x496   : > { %3526 = shalt.err (!%p3523_p13)
}
 0x497   : > { %s3619_s4 = smov 128   ;;  %s3620_s11 = smov 8  }
 0x498   : > { %3345 = dma.vmem_to_hbm [thread:$0]  (%p5353_p3), %s5289_s10, 6912, %s5287_s25, %s3127_s17, %s3619_s4, %s3619_s4, %s3620_s11  }
 0x499 PF: > { %s3157_s6 = sand.u32 1, %s3565_s14   ;;  %p5354_p7 = scmp.ne.s32.totalorder %s5348_s28, 0 }
 0x49a   : > { %p5355_p10 = scmp.ge.s32.totalorder %s3585_s19, 2  ;;  %s3158_s29 = scalar_lea.sflag [#allocation14], %s3157_s6 }
 0x49c   : > { %p3355_p9 = pnand %p5355_p10, %p5354_p7 }
 0x49e   : > { %3560 = dma.done.wait (!%p3355_p9), %s3158_s29, 6912  }
 0x49f   : > { %3562 = vsyncadd (!%p3355_p9), %s3158_s29, 4294960384  ;;  %s24_s19 = sadd.s32 1, %s3585_s19   ;;  %s5356_s14 = smov %s3569_s15 }
 0x4a0   : > { %p21_p11 = scmp.ge.s32.totalorder %s24_s19, 4   ;;  %s5357_s15 = smov %s3573_s16 }
 0x4a1   : > { %s5358_s16 = smov %s3702_s27  ;;  %s5359_s17 = smov %s3581_s18 }
 0x4a2   : > { %s5360_s18 = smov %s5362_s21  ;;  %23 = sbr.rel (!%p21_p11) target bundleno = 10 (0xa), region = 165 }
 0x4a9   :  { %3163 = vsyncpa [#allocation13], 1 }
 0x4aa   :  { %3165 = vsyncpa [#allocation13 + $0x1], 1 }
 0x4ab   :  { %3166 = vsyncpa [#allocation16], 1 }
 0x4ac   :  { %3168 = vsyncpa [#allocation16 + $0x1], 1 }
 0x4ad   :  { %3169 = vsyncpa [#allocation14], 1 }
 0x4ae   :  { %3171 = vsyncpa [#allocation14 + $0x1], 1 }

</bundles_post_ra>
